<compile_context>
chip_gen: v6e
topology: v6e:2x2x1
jax: 0.10.0
libtpu: 0.0.40
codegen_flags: <defaults>
</compile_context>

<pallas_src>
import functools
import math

import jax
import jax.numpy as jnp
from jax import lax
from jax.experimental import pallas as pl
from jax.experimental.pallas import tpu as pltpu

EPS = 1e-5

_VMEM_LIMIT_BYTES = 48 * 1024 * 1024    # <= ~48 MiB: headroom on v7x's 64 MiB/TC
_LOGITS_TILE_BYTES = 6 * 1024 * 1024    # target bytes of f32 logits per block


# ---------------------------------------------------------------------------
# Separable 3-point minima (erosion building blocks).
# Out-of-bounds neighbours are foreground (=1.0), matching the pure-JAX /
# skimage reference which pads the mask with ones before eroding.
# ---------------------------------------------------------------------------

def _min3_lane(v):
    """3-point min along the lane (last) axis."""
    size = v.shape[-1]
    if size == 1:
        return v
    ax = v.ndim - 1
    ids = lax.broadcasted_iota(jnp.int32, v.shape, ax)
    left = jnp.where(ids == 0, 1.0, pltpu.roll(v, shift=1, axis=ax))          # x-1
    right = jnp.where(ids == size - 1, 1.0, pltpu.roll(v, shift=size - 1, axis=ax))  # x+1
    return jnp.minimum(v, jnp.minimum(left, right))


def _min3_sublane(v):
    """3-point min along the second-to-last (sublane) axis."""
    size = v.shape[-2]
    if size == 1:
        return v
    ax = v.ndim - 2
    ids = lax.broadcasted_iota(jnp.int32, v.shape, ax)
    up = jnp.where(ids == 0, 1.0, pltpu.roll(v, shift=1, axis=ax))            # y-1
    down = jnp.where(ids == size - 1, 1.0, pltpu.roll(v, shift=size - 1, axis=ax))   # y+1
    return jnp.minimum(v, jnp.minimum(up, down))


def _min3_z(v, prev_plane, next_plane):
    """3-point min along axis 0; boundary neighbours come from the halo planes."""
    if v.shape[0] == 1:
        up, down = prev_plane, next_plane
    else:
        up = jnp.concatenate([prev_plane, v[:-1]], axis=0)
        down = jnp.concatenate([v[1:], next_plane], axis=0)
    return jnp.minimum(v, jnp.minimum(up, down))


# ---------------------------------------------------------------------------
# Fused kernel: cross entropy + compactness-prior partials
# ---------------------------------------------------------------------------

def _fused_kernel(x_ref, t_ref, prev_ref, next_ref, out_ref, *,
                  num_classes, channel, depth, tile_d):
    n_i = pl.program_id(0)            # batch index
    d_i = pl.program_id(1)            # z-tile index
    n_d = pl.num_programs(1)

    h, w = x_ref.shape[-2], x_ref.shape[-1]

    # ---- tail mask for the cdiv grid (last z-tile may be partial) ----------
    rem = depth - d_i * tile_d                                   # valid planes left
    z_ids = lax.broadcasted_iota(jnp.int32, (tile_d, h, w), 0)
    valid = z_ids < rem                                          # (td,H,W) bool

    # ---- pixel-wise softmax cross entropy (mean handled in the wrapper) ----
    t = t_ref[0].astype(jnp.int32)                               # (td,H,W), int8 in HBM
    m = x_ref[0, 0].astype(jnp.float32)
    for c in range(1, num_classes):
        m = jnp.maximum(m, x_ref[0, c].astype(jnp.float32))
    denom = jnp.zeros_like(m)
    picked = jnp.zeros_like(m)
    for c in range(num_classes):
        xc = x_ref[0, c].astype(jnp.float32)
        denom = denom + jnp.exp(xc - m)
        picked = picked + jnp.where(t == c, xc, 0.0)
    nll = (jnp.log(denom) + m) - picked                          # (td,H,W)
    ce_part = jnp.sum(jnp.where(valid, nll, 0.0))

    # ---- Compactness prior on channel `channel`, batch 0 only --------------
    # Threshold raw logits (> 0.5) like the reference; padding planes are set
    # to foreground so the erosion of the last valid plane sees the correct
    # out-of-volume convention.
    ch = x_ref[0, channel].astype(jnp.float32)
    fg = jnp.where(valid, (ch > 0.5).astype(jnp.float32), 1.0)   # (td,H,W)

    prev = (prev_ref[0, 0] > 0.5).astype(jnp.float32)            # (1,H,W) plane z0-1
    nxt = (next_ref[0, 0] > 0.5).astype(jnp.float32)             # (1,H,W) plane z0+td
    prev = jnp.maximum(prev, (d_i == 0).astype(jnp.float32))     # OOB => foreground
    nxt = jnp.maximum(nxt, (d_i == n_d - 1).astype(jnp.float32))

    # Separable decomposition of the 18-connectivity (+center) erosion:
    #   selem = offsets with at least one zero coordinate
    #         = (dz=0 plane) U (dy=0 plane) U (dx=0 plane)
    ex = _min3_lane(fg)
    ey = _min3_sublane(fg)
    exy = _min3_sublane(ex)
    ezx = _min3_z(ex, _min3_lane(prev), _min3_lane(nxt))
    ezy = _min3_z(ey, _min3_sublane(prev), _min3_sublane(nxt))
    eroded = jnp.minimum(exy, jnp.minimum(ezx, ezy))

    is_b0 = (n_i == 0).astype(jnp.float32)     # prior reads y_pred[0, channel] only
    area_part = jnp.sum(jnp.where(valid, fg, 0.0)) * is_b0
    er_part = jnp.sum(jnp.where(valid, eroded, 0.0)) * is_b0

    # ---- per-grid-point partials into a lane-dense (8,128) block -----------
    row = lax.broadcasted_iota(jnp.int32, (1, 1, 8, 128), 2)
    out_ref[...] = jnp.where(row == 0, ce_part,
                   jnp.where(row == 1, area_part,
                   jnp.where(row == 2, er_part, 0.0)))


def _ce_loss_partials(y_pred, y_true, *, channel, tile_d=None):
    """Runs the fused kernel; returns (ce_sum, foreground_area, eroded_sum)."""
    N, C, D, H, W = y_pred.shape
    assert y_true.shape == (N, D, H, W), (y_pred.shape, y_true.shape)
    assert jnp.issubdtype(y_true.dtype, jnp.integer), y_true.dtype
    assert 0 <= channel < C

    if tile_d is None:
        tile_d = _LOGITS_TILE_BYTES // (C * H * W * 4)
    tile_d = min(D, max(1, int(tile_d)))
    n_d = pl.cdiv(D, tile_d)

    kernel = functools.partial(_fused_kernel, num_classes=C, channel=channel,
                               depth=D, tile_d=tile_d)

    out = pl.pallas_call(
        kernel,
        out_shape=jax.ShapeDtypeStruct((N, n_d, 8, 128), jnp.float32),
        grid=(N, n_d),
        in_specs=[
            # full-channel logits z-tile for batch n
            pl.BlockSpec((1, C, tile_d, H, W), lambda n, d: (n, 0, d, 0, 0)),
            # int labels z-tile for batch n
            pl.BlockSpec((1, tile_d, H, W), lambda n, d: (n, d, 0, 0)),
            # one-plane z-halos of channel `channel`, batch 0, clamped at the
            # volume edges (kernel overrides those with foreground)
            pl.BlockSpec((1, 1, 1, H, W),
                         lambda n, d: (0, channel,
                                       jnp.maximum(d * tile_d - 1, 0), 0, 0)),
            pl.BlockSpec((1, 1, 1, H, W),
                         lambda n, d: (0, channel,
                                       jnp.minimum(d * tile_d + tile_d, D - 1), 0, 0)),
        ],
        out_specs=pl.BlockSpec((1, 1, 8, 128), lambda n, d: (n, d, 0, 0)),
        compiler_params=pltpu.CompilerParams(
            dimension_semantics=("parallel", "parallel"),
            vmem_limit_bytes=_VMEM_LIMIT_BYTES),
    )(y_pred, y_true, y_pred, y_pred)

    ce_sum = jnp.sum(out[:, :, 0, 0])
    area = jnp.sum(out[:, :, 1, 0])
    eroded = jnp.sum(out[:, :, 2, 0])
    return ce_sum, area, eroded


# ---------------------------------------------------------------------------
# CELoss.forward
# ---------------------------------------------------------------------------

def ce_loss(y_pred, y_true, *, channel=2, tile_d=None):
    """fluospotter CELoss.forward with the Compactness shape prior fused in:

        loss = CrossEntropyLoss(y_pred, y_true) + prior(y_pred[:, 2].squeeze(0))

    y_pred: (N, C, D, H, W) logits; y_true: (N, D, H, W) integer labels
    (int8 recommended to minimize HBM traffic).
    """
    # TODO(synk): the PyTorch prior runs skimage.measure.label and computes
    # compactness per connected component; union-find labeling has no clean
    # Pallas equivalent, so the whole thresholded foreground is treated as one
    # component (exact when the mask has <= 1 component).
    # TODO(synk): only the default Compactness prior is fused; arbitrary
    # user-supplied shape_priors lists are not supported by the fused kernel.
    N, C, D, H, W = y_pred.shape
    ce_sum, area, eroded = _ce_loss_partials(y_pred, y_true,
                                             channel=channel, tile_d=tile_d)
    ce = ce_sum / jnp.float32(N * D * H * W)
    perim = area - eroded                      # inner-boundary voxels = mask & ~eroded
    compactness = (4.0 * math.pi * area) / (perim * perim + EPS) / D
    prior = 1.0 / (compactness + EPS)
    return ce + prior


# ---------------------------------------------------------------------------
# Pure-JAX reference (for the self-check only)
# ---------------------------------------------------------------------------

_OFFSETS_18 = [(dz, dy, dx)
               for dz in (-1, 0, 1) for dy in (-1, 0, 1) for dx in (-1, 0, 1)
               if abs(dz) + abs(dy) + abs(dx) <= 2]


def _ce_loss_ref(y_pred, y_true, channel=2):
    x = y_pred.astype(jnp.float32)
    lse = jax.nn.logsumexp(x, axis=1)                                      # (N,D,H,W)
    picked = jnp.take_along_axis(x, y_true[:, None].astype(jnp.int32), axis=1)[:, 0]
    ce = jnp.mean(lse - picked)

    vol = x[0, channel]                                                    # (D,H,W)
    Z, H, W = vol.shape
    maskp = jnp.pad((vol > 0.5).astype(jnp.float32), 1, constant_values=1.0)
    mask = maskp[1:1 + Z, 1:1 + H, 1:1 + W]
    eroded = jnp.ones_like(mask)
    for dz, dy, dx in _OFFSETS_18:
        eroded = jnp.minimum(
            eroded, maskp[1 + dz:1 + dz + Z, 1 + dy:1 + dy + H, 1 + dx:1 + dx + W])
    perim = jnp.sum(mask * (1.0 - eroded))
    area = jnp.sum(mask)
    compactness = (4.0 * math.pi * area) / (perim * perim + EPS) / Z
    prior = 1.0 / (compactness + EPS)
    return ce + prior


if __name__ == "__main__":
    key = jax.random.PRNGKey(0)
    tests = [
        # (N, C, D, H, W, tile_d) -- small shapes, lane-dense W
        dict(N=1, C=3, D=8, H=32, W=128, tile_d=None),   # single tile
        dict(N=1, C=3, D=8, H=32, W=128, tile_d=3),      # cdiv tail + z-halos
        dict(N=2, C=4, D=5, H=32, W=256, tile_d=2),      # multi-batch, partial tail
    ]
    for i, cfg in enumerate(tests):
        k1, k2 = jax.random.split(jax.random.fold_in(key, i))
        y_pred = jax.random.normal(
            k1, (cfg["N"], cfg["C"], cfg["D"], cfg["H"], cfg["W"]), dtype=jnp.float32)
        y_true = jax.random.randint(
            k2, (cfg["N"], cfg["D"], cfg["H"], cfg["W"]), 0, cfg["C"],
            dtype=jnp.int32).astype(jnp.int8)            # int8 labels: less HBM traffic

        loss = ce_loss(y_pred, y_true, tile_d=cfg["tile_d"])
        jax.block_until_ready(loss)

        ref = _ce_loss_ref(y_pred, y_true)
        assert jnp.allclose(loss, ref, rtol=1e-4, atol=1e-4), (i, loss, ref)

    print("KERNEL_OK")
</pallas_src>

<mosaic_0001>
module attributes {stable_mosaic.version = 11 : i64} {
  func.func @_fused_kernel(%arg0: i32, %arg1: i32, %arg2: memref<1x3x8x32x128xf32, #tpu.memory_space<vmem>>, %arg3: memref<1x8x32x128xi8, #tpu.memory_space<vmem>>, %arg4: memref<1x1x1x32x128xf32, #tpu.memory_space<vmem>>, %arg5: memref<1x1x1x32x128xf32, #tpu.memory_space<vmem>>, %arg6: memref<1x1x8x128xf32, #tpu.memory_space<vmem>>) attributes {dimension_semantics = [#tpu.dimension_semantics<parallel>, #tpu.dimension_semantics<parallel>], iteration_bounds = array<i64: 1, 1>, scalar_prefetch = 0 : i64, scratch_operands = 0 : i64, tpu.core_type = #tpu.core_type<tc>, window_params = [{transform_indices = @transform_0, window_bounds = array<i64: 1, 3, 8, 32, 128>}, {transform_indices = @transform_1, window_bounds = array<i64: 1, 8, 32, 128>}, {transform_indices = @transform_2, window_bounds = array<i64: 1, 1, 1, 32, 128>}, {transform_indices = @transform_3, window_bounds = array<i64: 1, 1, 1, 32, 128>}, {transform_indices = @transform_4, window_bounds = array<i64: 1, 1, 8, 128>}]} {
    %c8_i32 = arith.constant 8 : i32
    %0 = arith.muli %arg1, %c8_i32 : i32
    %c8_i32_0 = arith.constant 8 : i32
    %1 = arith.subi %c8_i32_0, %0 : i32
    %2 = tpu.iota {dimensions = array<i32: 0>} : vector<8x32x128xi32>
    %3 = vector.broadcast %1 : i32 to vector<8x32x128xi32>
    %4 = arith.cmpi slt, %2, %3 : vector<8x32x128xi32>
    %c0 = arith.constant 0 : index
    %c0_1 = arith.constant 0 : index
    %c0_2 = arith.constant 0 : index
    %c0_3 = arith.constant 0 : index
    %5 = vector.load %arg3[%c0, %c0_1, %c0_2, %c0_3] : memref<1x8x32x128xi8, #tpu.memory_space<vmem>>, vector<1x8x32x128xi8>
    %6 = vector.shape_cast %5 : vector<1x8x32x128xi8> to vector<8x32x128xi8>
    %7 = arith.extsi %6 : vector<8x32x128xi8> to vector<8x32x128xi32>
    %c0_4 = arith.constant 0 : index
    %c0_5 = arith.constant 0 : index
    %c0_6 = arith.constant 0 : index
    %c0_7 = arith.constant 0 : index
    %c0_8 = arith.constant 0 : index
    %8 = vector.load %arg2[%c0_4, %c0_5, %c0_6, %c0_7, %c0_8] : memref<1x3x8x32x128xf32, #tpu.memory_space<vmem>>, vector<1x1x8x32x128xf32>
    %9 = vector.shape_cast %8 : vector<1x1x8x32x128xf32> to vector<8x32x128xf32>
    %c0_9 = arith.constant 0 : index
    %c1 = arith.constant 1 : index
    %c0_10 = arith.constant 0 : index
    %c0_11 = arith.constant 0 : index
    %c0_12 = arith.constant 0 : index
    %10 = vector.load %arg2[%c0_9, %c1, %c0_10, %c0_11, %c0_12] : memref<1x3x8x32x128xf32, #tpu.memory_space<vmem>>, vector<1x1x8x32x128xf32>
    %11 = vector.shape_cast %10 : vector<1x1x8x32x128xf32> to vector<8x32x128xf32>
    %12 = arith.maximumf %9, %11 : vector<8x32x128xf32>
    %c0_13 = arith.constant 0 : index
    %c2 = arith.constant 2 : index
    %c0_14 = arith.constant 0 : index
    %c0_15 = arith.constant 0 : index
    %c0_16 = arith.constant 0 : index
    %13 = vector.load %arg2[%c0_13, %c2, %c0_14, %c0_15, %c0_16] : memref<1x3x8x32x128xf32, #tpu.memory_space<vmem>>, vector<1x1x8x32x128xf32>
    %14 = vector.shape_cast %13 : vector<1x1x8x32x128xf32> to vector<8x32x128xf32>
    %15 = arith.maximumf %12, %14 : vector<8x32x128xf32>
    %cst = arith.constant 0.000000e+00 : f32
    %16 = vector.broadcast %cst : f32 to vector<8x32x128xf32>
    %cst_17 = arith.constant 0.000000e+00 : f32
    %17 = vector.broadcast %cst_17 : f32 to vector<8x32x128xf32>
    %c0_18 = arith.constant 0 : index
    %c0_19 = arith.constant 0 : index
    %c0_20 = arith.constant 0 : index
    %c0_21 = arith.constant 0 : index
    %c0_22 = arith.constant 0 : index
    %18 = vector.load %arg2[%c0_18, %c0_19, %c0_20, %c0_21, %c0_22] : memref<1x3x8x32x128xf32, #tpu.memory_space<vmem>>, vector<1x1x8x32x128xf32>
    %19 = vector.shape_cast %18 : vector<1x1x8x32x128xf32> to vector<8x32x128xf32>
    %20 = arith.subf %19, %15 : vector<8x32x128xf32>
    %21 = math.exp %20 : vector<8x32x128xf32>
    %22 = arith.addf %16, %21 : vector<8x32x128xf32>
    %c0_i32 = arith.constant 0 : i32
    %23 = vector.broadcast %c0_i32 : i32 to vector<8x32x128xi32>
    %24 = arith.cmpi eq, %7, %23 : vector<8x32x128xi32>
    %cst_23 = arith.constant 0.000000e+00 : f32
    %25 = vector.broadcast %cst_23 : f32 to vector<8x32x128xf32>
    %26 = arith.select %24, %19, %25 : vector<8x32x128xi1>, vector<8x32x128xf32>
    %27 = arith.addf %17, %26 : vector<8x32x128xf32>
    %c0_24 = arith.constant 0 : index
    %c1_25 = arith.constant 1 : index
    %c0_26 = arith.constant 0 : index
    %c0_27 = arith.constant 0 : index
    %c0_28 = arith.constant 0 : index
    %28 = vector.load %arg2[%c0_24, %c1_25, %c0_26, %c0_27, %c0_28] : memref<1x3x8x32x128xf32, #tpu.memory_space<vmem>>, vector<1x1x8x32x128xf32>
    %29 = vector.shape_cast %28 : vector<1x1x8x32x128xf32> to vector<8x32x128xf32>
    %30 = arith.subf %29, %15 : vector<8x32x128xf32>
    %31 = math.exp %30 : vector<8x32x128xf32>
    %32 = arith.addf %22, %31 : vector<8x32x128xf32>
    %c1_i32 = arith.constant 1 : i32
    %33 = vector.broadcast %c1_i32 : i32 to vector<8x32x128xi32>
    %34 = arith.cmpi eq, %7, %33 : vector<8x32x128xi32>
    %cst_29 = arith.constant 0.000000e+00 : f32
    %35 = vector.broadcast %cst_29 : f32 to vector<8x32x128xf32>
    %36 = arith.select %34, %29, %35 : vector<8x32x128xi1>, vector<8x32x128xf32>
    %37 = arith.addf %27, %36 : vector<8x32x128xf32>
    %c0_30 = arith.constant 0 : index
    %c2_31 = arith.constant 2 : index
    %c0_32 = arith.constant 0 : index
    %c0_33 = arith.constant 0 : index
    %c0_34 = arith.constant 0 : index
    %38 = vector.load %arg2[%c0_30, %c2_31, %c0_32, %c0_33, %c0_34] : memref<1x3x8x32x128xf32, #tpu.memory_space<vmem>>, vector<1x1x8x32x128xf32>
    %39 = vector.shape_cast %38 : vector<1x1x8x32x128xf32> to vector<8x32x128xf32>
    %40 = arith.subf %39, %15 : vector<8x32x128xf32>
    %41 = math.exp %40 : vector<8x32x128xf32>
    %42 = arith.addf %32, %41 : vector<8x32x128xf32>
    %c2_i32 = arith.constant 2 : i32
    %43 = vector.broadcast %c2_i32 : i32 to vector<8x32x128xi32>
    %44 = arith.cmpi eq, %7, %43 : vector<8x32x128xi32>
    %cst_35 = arith.constant 0.000000e+00 : f32
    %45 = vector.broadcast %cst_35 : f32 to vector<8x32x128xf32>
    %46 = arith.select %44, %39, %45 : vector<8x32x128xi1>, vector<8x32x128xf32>
    %47 = arith.addf %37, %46 : vector<8x32x128xf32>
    %48 = math.log %42 : vector<8x32x128xf32>
    %49 = arith.addf %48, %15 : vector<8x32x128xf32>
    %50 = arith.subf %49, %47 : vector<8x32x128xf32>
    %cst_36 = arith.constant 0.000000e+00 : f32
    %51 = vector.broadcast %cst_36 : f32 to vector<8x32x128xf32>
    %52 = arith.select %4, %50, %51 : vector<8x32x128xi1>, vector<8x32x128xf32>
    %53 = vector.shape_cast %52 : vector<8x32x128xf32> to vector<1x8x32x128xf32>
    %cst_37 = arith.constant dense<0.000000e+00> : vector<1xf32>
    %54 = vector.multi_reduction <add>, %53, %cst_37 [1, 2, 3] : vector<1x8x32x128xf32> to vector<1xf32>
    %55 = vector.shape_cast %54 : vector<1xf32> to vector<1x1x1x1xf32>
    %56 = vector.extract %55[0, 0, 0, 0] : f32 from vector<1x1x1x1xf32>
    %c0_38 = arith.constant 0 : index
    %c2_39 = arith.constant 2 : index
    %c0_40 = arith.constant 0 : index
    %c0_41 = arith.constant 0 : index
    %c0_42 = arith.constant 0 : index
    %57 = vector.load %arg2[%c0_38, %c2_39, %c0_40, %c0_41, %c0_42] : memref<1x3x8x32x128xf32, #tpu.memory_space<vmem>>, vector<1x1x8x32x128xf32>
    %58 = vector.shape_cast %57 : vector<1x1x8x32x128xf32> to vector<8x32x128xf32>
    %cst_43 = arith.constant 5.000000e-01 : f32
    %59 = vector.broadcast %cst_43 : f32 to vector<8x32x128xf32>
    %60 = arith.cmpf ogt, %58, %59 : vector<8x32x128xf32>
    %61 = arith.extui %60 : vector<8x32x128xi1> to vector<8x32x128xi32>
    %62 = arith.sitofp %61 : vector<8x32x128xi32> to vector<8x32x128xf32>
    %cst_44 = arith.constant 1.000000e+00 : f32
    %63 = vector.broadcast %cst_44 : f32 to vector<8x32x128xf32>
    %64 = arith.select %4, %62, %63 : vector<8x32x128xi1>, vector<8x32x128xf32>
    %c0_45 = arith.constant 0 : index
    %c0_46 = arith.constant 0 : index
    %c0_47 = arith.constant 0 : index
    %c0_48 = arith.constant 0 : index
    %c0_49 = arith.constant 0 : index
    %65 = vector.load %arg4[%c0_45, %c0_46, %c0_47, %c0_48, %c0_49] : memref<1x1x1x32x128xf32, #tpu.memory_space<vmem>>, vector<1x1x1x32x128xf32>
    %66 = vector.shape_cast %65 : vector<1x1x1x32x128xf32> to vector<1x32x128xf32>
    %cst_50 = arith.constant 5.000000e-01 : f32
    %67 = vector.broadcast %cst_50 : f32 to vector<1x32x128xf32>
    %68 = arith.cmpf ogt, %66, %67 : vector<1x32x128xf32>
    %69 = arith.extui %68 : vector<1x32x128xi1> to vector<1x32x128xi32>
    %70 = arith.sitofp %69 : vector<1x32x128xi32> to vector<1x32x128xf32>
    %c0_51 = arith.constant 0 : index
    %c0_52 = arith.constant 0 : index
    %c0_53 = arith.constant 0 : index
    %c0_54 = arith.constant 0 : index
    %c0_55 = arith.constant 0 : index
    %71 = vector.load %arg5[%c0_51, %c0_52, %c0_53, %c0_54, %c0_55] : memref<1x1x1x32x128xf32, #tpu.memory_space<vmem>>, vector<1x1x1x32x128xf32>
    %72 = vector.shape_cast %71 : vector<1x1x1x32x128xf32> to vector<1x32x128xf32>
    %cst_56 = arith.constant 5.000000e-01 : f32
    %73 = vector.broadcast %cst_56 : f32 to vector<1x32x128xf32>
    %74 = arith.cmpf ogt, %72, %73 : vector<1x32x128xf32>
    %75 = arith.extui %74 : vector<1x32x128xi1> to vector<1x32x128xi32>
    %76 = arith.sitofp %75 : vector<1x32x128xi32> to vector<1x32x128xf32>
    %c0_i32_57 = arith.constant 0 : i32
    %77 = arith.cmpi eq, %arg1, %c0_i32_57 : i32
    %78 = arith.extui %77 : i1 to i32
    %79 = arith.sitofp %78 : i32 to f32
    %80 = vector.broadcast %79 : f32 to vector<1x32x128xf32>
    %81 = arith.maximumf %70, %80 : vector<1x32x128xf32>
    %c0_i32_58 = arith.constant 0 : i32
    %82 = arith.cmpi eq, %arg1, %c0_i32_58 : i32
    %83 = arith.extui %82 : i1 to i32
    %84 = arith.sitofp %83 : i32 to f32
    %85 = vector.broadcast %84 : f32 to vector<1x32x128xf32>
    %86 = arith.maximumf %76, %85 : vector<1x32x128xf32>
    %87 = tpu.iota {dimensions = array<i32: 2>} : vector<8x32x128xi32>
    %c0_i32_59 = arith.constant 0 : i32
    %88 = vector.broadcast %c0_i32_59 : i32 to vector<8x32x128xi32>
    %89 = arith.cmpi eq, %87, %88 : vector<8x32x128xi32>
    %c1_i32_60 = arith.constant 1 : i32
    %90 = tpu.dynamic_rotate %64 by %c1_i32_60 dim 2 : vector<8x32x128xf32>, i32 -> vector<8x32x128xf32>
    %cst_61 = arith.constant 1.000000e+00 : f32
    %91 = vector.broadcast %cst_61 : f32 to vector<8x32x128xf32>
    %92 = arith.select %89, %91, %90 : vector<8x32x128xi1>, vector<8x32x128xf32>
    %c127_i32 = arith.constant 127 : i32
    %93 = vector.broadcast %c127_i32 : i32 to vector<8x32x128xi32>
    %94 = arith.cmpi eq, %87, %93 : vector<8x32x128xi32>
    %c127_i32_62 = arith.constant 127 : i32
    %95 = tpu.dynamic_rotate %64 by %c127_i32_62 dim 2 : vector<8x32x128xf32>, i32 -> vector<8x32x128xf32>
    %cst_63 = arith.constant 1.000000e+00 : f32
    %96 = vector.broadcast %cst_63 : f32 to vector<8x32x128xf32>
    %97 = arith.select %94, %96, %95 : vector<8x32x128xi1>, vector<8x32x128xf32>
    %98 = arith.minimumf %92, %97 : vector<8x32x128xf32>
    %99 = arith.minimumf %64, %98 : vector<8x32x128xf32>
    %100 = tpu.iota {dimensions = array<i32: 1>} : vector<8x32x128xi32>
    %c0_i32_64 = arith.constant 0 : i32
    %101 = vector.broadcast %c0_i32_64 : i32 to vector<8x32x128xi32>
    %102 = arith.cmpi eq, %100, %101 : vector<8x32x128xi32>
    %c1_i32_65 = arith.constant 1 : i32
    %103 = tpu.dynamic_rotate %64 by %c1_i32_65 dim 1 : vector<8x32x128xf32>, i32 -> vector<8x32x128xf32>
    %cst_66 = arith.constant 1.000000e+00 : f32
    %104 = vector.broadcast %cst_66 : f32 to vector<8x32x128xf32>
    %105 = arith.select %102, %104, %103 : vector<8x32x128xi1>, vector<8x32x128xf32>
    %c31_i32 = arith.constant 31 : i32
    %106 = vector.broadcast %c31_i32 : i32 to vector<8x32x128xi32>
    %107 = arith.cmpi eq, %100, %106 : vector<8x32x128xi32>
    %c31_i32_67 = arith.constant 31 : i32
    %108 = tpu.dynamic_rotate %64 by %c31_i32_67 dim 1 : vector<8x32x128xf32>, i32 -> vector<8x32x128xf32>
    %cst_68 = arith.constant 1.000000e+00 : f32
    %109 = vector.broadcast %cst_68 : f32 to vector<8x32x128xf32>
    %110 = arith.select %107, %109, %108 : vector<8x32x128xi1>, vector<8x32x128xf32>
    %111 = arith.minimumf %105, %110 : vector<8x32x128xf32>
    %112 = arith.minimumf %64, %111 : vector<8x32x128xf32>
    %113 = tpu.iota {dimensions = array<i32: 1>} : vector<8x32x128xi32>
    %c0_i32_69 = arith.constant 0 : i32
    %114 = vector.broadcast %c0_i32_69 : i32 to vector<8x32x128xi32>
    %115 = arith.cmpi eq, %113, %114 : vector<8x32x128xi32>
    %c1_i32_70 = arith.constant 1 : i32
    %116 = tpu.dynamic_rotate %99 by %c1_i32_70 dim 1 : vector<8x32x128xf32>, i32 -> vector<8x32x128xf32>
    %cst_71 = arith.constant 1.000000e+00 : f32
    %117 = vector.broadcast %cst_71 : f32 to vector<8x32x128xf32>
    %118 = arith.select %115, %117, %116 : vector<8x32x128xi1>, vector<8x32x128xf32>
    %c31_i32_72 = arith.constant 31 : i32
    %119 = vector.broadcast %c31_i32_72 : i32 to vector<8x32x128xi32>
    %120 = arith.cmpi eq, %113, %119 : vector<8x32x128xi32>
    %c31_i32_73 = arith.constant 31 : i32
    %121 = tpu.dynamic_rotate %99 by %c31_i32_73 dim 1 : vector<8x32x128xf32>, i32 -> vector<8x32x128xf32>
    %cst_74 = arith.constant 1.000000e+00 : f32
    %122 = vector.broadcast %cst_74 : f32 to vector<8x32x128xf32>
    %123 = arith.select %120, %122, %121 : vector<8x32x128xi1>, vector<8x32x128xf32>
    %124 = arith.minimumf %118, %123 : vector<8x32x128xf32>
    %125 = arith.minimumf %99, %124 : vector<8x32x128xf32>
    %126 = tpu.iota {dimensions = array<i32: 2>} : vector<1x32x128xi32>
    %c0_i32_75 = arith.constant 0 : i32
    %127 = vector.broadcast %c0_i32_75 : i32 to vector<1x32x128xi32>
    %128 = arith.cmpi eq, %126, %127 : vector<1x32x128xi32>
    %c1_i32_76 = arith.constant 1 : i32
    %129 = tpu.dynamic_rotate %81 by %c1_i32_76 dim 2 : vector<1x32x128xf32>, i32 -> vector<1x32x128xf32>
    %cst_77 = arith.constant 1.000000e+00 : f32
    %130 = vector.broadcast %cst_77 : f32 to vector<1x32x128xf32>
    %131 = arith.select %128, %130, %129 : vector<1x32x128xi1>, vector<1x32x128xf32>
    %c127_i32_78 = arith.constant 127 : i32
    %132 = vector.broadcast %c127_i32_78 : i32 to vector<1x32x128xi32>
    %133 = arith.cmpi eq, %126, %132 : vector<1x32x128xi32>
    %c127_i32_79 = arith.constant 127 : i32
    %134 = tpu.dynamic_rotate %81 by %c127_i32_79 dim 2 : vector<1x32x128xf32>, i32 -> vector<1x32x128xf32>
    %cst_80 = arith.constant 1.000000e+00 : f32
    %135 = vector.broadcast %cst_80 : f32 to vector<1x32x128xf32>
    %136 = arith.select %133, %135, %134 : vector<1x32x128xi1>, vector<1x32x128xf32>
    %137 = arith.minimumf %131, %136 : vector<1x32x128xf32>
    %138 = arith.minimumf %81, %137 : vector<1x32x128xf32>
    %139 = tpu.iota {dimensions = array<i32: 2>} : vector<1x32x128xi32>
    %c0_i32_81 = arith.constant 0 : i32
    %140 = vector.broadcast %c0_i32_81 : i32 to vector<1x32x128xi32>
    %141 = arith.cmpi eq, %139, %140 : vector<1x32x128xi32>
    %c1_i32_82 = arith.constant 1 : i32
    %142 = tpu.dynamic_rotate %86 by %c1_i32_82 dim 2 : vector<1x32x128xf32>, i32 -> vector<1x32x128xf32>
    %cst_83 = arith.constant 1.000000e+00 : f32
    %143 = vector.broadcast %cst_83 : f32 to vector<1x32x128xf32>
    %144 = arith.select %141, %143, %142 : vector<1x32x128xi1>, vector<1x32x128xf32>
    %c127_i32_84 = arith.constant 127 : i32
    %145 = vector.broadcast %c127_i32_84 : i32 to vector<1x32x128xi32>
    %146 = arith.cmpi eq, %139, %145 : vector<1x32x128xi32>
    %c127_i32_85 = arith.constant 127 : i32
    %147 = tpu.dynamic_rotate %86 by %c127_i32_85 dim 2 : vector<1x32x128xf32>, i32 -> vector<1x32x128xf32>
    %cst_86 = arith.constant 1.000000e+00 : f32
    %148 = vector.broadcast %cst_86 : f32 to vector<1x32x128xf32>
    %149 = arith.select %146, %148, %147 : vector<1x32x128xi1>, vector<1x32x128xf32>
    %150 = arith.minimumf %144, %149 : vector<1x32x128xf32>
    %151 = arith.minimumf %86, %150 : vector<1x32x128xf32>
    %152 = vector.extract_strided_slice %99 {offsets = [0, 0, 0], sizes = [7, 32, 128], strides = [1, 1, 1]} : vector<8x32x128xf32> to vector<7x32x128xf32>
    %153 = tpu.concatenate %138, %152 in 0 : vector<1x32x128xf32>, vector<7x32x128xf32> -> vector<8x32x128xf32>
    %154 = vector.extract_strided_slice %99 {offsets = [1, 0, 0], sizes = [7, 32, 128], strides = [1, 1, 1]} : vector<8x32x128xf32> to vector<7x32x128xf32>
    %155 = tpu.concatenate %154, %151 in 0 : vector<7x32x128xf32>, vector<1x32x128xf32> -> vector<8x32x128xf32>
    %156 = arith.minimumf %153, %155 : vector<8x32x128xf32>
    %157 = arith.minimumf %99, %156 : vector<8x32x128xf32>
    %158 = tpu.iota {dimensions = array<i32: 1>} : vector<1x32x128xi32>
    %c0_i32_87 = arith.constant 0 : i32
    %159 = vector.broadcast %c0_i32_87 : i32 to vector<1x32x128xi32>
    %160 = arith.cmpi eq, %158, %159 : vector<1x32x128xi32>
    %c1_i32_88 = arith.constant 1 : i32
    %161 = tpu.dynamic_rotate %81 by %c1_i32_88 dim 1 : vector<1x32x128xf32>, i32 -> vector<1x32x128xf32>
    %cst_89 = arith.constant 1.000000e+00 : f32
    %162 = vector.broadcast %cst_89 : f32 to vector<1x32x128xf32>
    %163 = arith.select %160, %162, %161 : vector<1x32x128xi1>, vector<1x32x128xf32>
    %c31_i32_90 = arith.constant 31 : i32
    %164 = vector.broadcast %c31_i32_90 : i32 to vector<1x32x128xi32>
    %165 = arith.cmpi eq, %158, %164 : vector<1x32x128xi32>
    %c31_i32_91 = arith.constant 31 : i32
    %166 = tpu.dynamic_rotate %81 by %c31_i32_91 dim 1 : vector<1x32x128xf32>, i32 -> vector<1x32x128xf32>
    %cst_92 = arith.constant 1.000000e+00 : f32
    %167 = vector.broadcast %cst_92 : f32 to vector<1x32x128xf32>
    %168 = arith.select %165, %167, %166 : vector<1x32x128xi1>, vector<1x32x128xf32>
    %169 = arith.minimumf %163, %168 : vector<1x32x128xf32>
    %170 = arith.minimumf %81, %169 : vector<1x32x128xf32>
    %171 = tpu.iota {dimensions = array<i32: 1>} : vector<1x32x128xi32>
    %c0_i32_93 = arith.constant 0 : i32
    %172 = vector.broadcast %c0_i32_93 : i32 to vector<1x32x128xi32>
    %173 = arith.cmpi eq, %171, %172 : vector<1x32x128xi32>
    %c1_i32_94 = arith.constant 1 : i32
    %174 = tpu.dynamic_rotate %86 by %c1_i32_94 dim 1 : vector<1x32x128xf32>, i32 -> vector<1x32x128xf32>
    %cst_95 = arith.constant 1.000000e+00 : f32
    %175 = vector.broadcast %cst_95 : f32 to vector<1x32x128xf32>
    %176 = arith.select %173, %175, %174 : vector<1x32x128xi1>, vector<1x32x128xf32>
    %c31_i32_96 = arith.constant 31 : i32
    %177 = vector.broadcast %c31_i32_96 : i32 to vector<1x32x128xi32>
    %178 = arith.cmpi eq, %171, %177 : vector<1x32x128xi32>
    %c31_i32_97 = arith.constant 31 : i32
    %179 = tpu.dynamic_rotate %86 by %c31_i32_97 dim 1 : vector<1x32x128xf32>, i32 -> vector<1x32x128xf32>
    %cst_98 = arith.constant 1.000000e+00 : f32
    %180 = vector.broadcast %cst_98 : f32 to vector<1x32x128xf32>
    %181 = arith.select %178, %180, %179 : vector<1x32x128xi1>, vector<1x32x128xf32>
    %182 = arith.minimumf %176, %181 : vector<1x32x128xf32>
    %183 = arith.minimumf %86, %182 : vector<1x32x128xf32>
    %184 = vector.extract_strided_slice %112 {offsets = [0, 0, 0], sizes = [7, 32, 128], strides = [1, 1, 1]} : vector<8x32x128xf32> to vector<7x32x128xf32>
    %185 = tpu.concatenate %170, %184 in 0 : vector<1x32x128xf32>, vector<7x32x128xf32> -> vector<8x32x128xf32>
    %186 = vector.extract_strided_slice %112 {offsets = [1, 0, 0], sizes = [7, 32, 128], strides = [1, 1, 1]} : vector<8x32x128xf32> to vector<7x32x128xf32>
    %187 = tpu.concatenate %186, %183 in 0 : vector<7x32x128xf32>, vector<1x32x128xf32> -> vector<8x32x128xf32>
    %188 = arith.minimumf %185, %187 : vector<8x32x128xf32>
    %189 = arith.minimumf %112, %188 : vector<8x32x128xf32>
    %190 = arith.minimumf %157, %189 : vector<8x32x128xf32>
    %191 = arith.minimumf %125, %190 : vector<8x32x128xf32>
    %c0_i32_99 = arith.constant 0 : i32
    %192 = arith.cmpi eq, %arg0, %c0_i32_99 : i32
    %193 = arith.extui %192 : i1 to i32
    %194 = arith.sitofp %193 : i32 to f32
    %cst_100 = arith.constant 0.000000e+00 : f32
    %195 = vector.broadcast %cst_100 : f32 to vector<8x32x128xf32>
    %196 = arith.select %4, %64, %195 : vector<8x32x128xi1>, vector<8x32x128xf32>
    %197 = vector.shape_cast %196 : vector<8x32x128xf32> to vector<1x8x32x128xf32>
    %cst_101 = arith.constant dense<0.000000e+00> : vector<1xf32>
    %198 = vector.multi_reduction <add>, %197, %cst_101 [1, 2, 3] : vector<1x8x32x128xf32> to vector<1xf32>
    %199 = vector.shape_cast %198 : vector<1xf32> to vector<1x1x1x1xf32>
    %200 = vector.extract %199[0, 0, 0, 0] : f32 from vector<1x1x1x1xf32>
    %201 = arith.mulf %200, %194 : f32
    %cst_102 = arith.constant 0.000000e+00 : f32
    %202 = vector.broadcast %cst_102 : f32 to vector<8x32x128xf32>
    %203 = arith.select %4, %191, %202 : vector<8x32x128xi1>, vector<8x32x128xf32>
    %204 = vector.shape_cast %203 : vector<8x32x128xf32> to vector<1x8x32x128xf32>
    %cst_103 = arith.constant dense<0.000000e+00> : vector<1xf32>
    %205 = vector.multi_reduction <add>, %204, %cst_103 [1, 2, 3] : vector<1x8x32x128xf32> to vector<1xf32>
    %206 = vector.shape_cast %205 : vector<1xf32> to vector<1x1x1x1xf32>
    %207 = vector.extract %206[0, 0, 0, 0] : f32 from vector<1x1x1x1xf32>
    %208 = arith.mulf %207, %194 : f32
    %209 = tpu.iota {dimensions = array<i32: 2>} : vector<1x1x8x128xi32>
    %c0_i32_104 = arith.constant 0 : i32
    %210 = vector.broadcast %c0_i32_104 : i32 to vector<1x1x8x128xi32>
    %211 = arith.cmpi eq, %209, %210 : vector<1x1x8x128xi32>
    %c1_i32_105 = arith.constant 1 : i32
    %212 = vector.broadcast %c1_i32_105 : i32 to vector<1x1x8x128xi32>
    %213 = arith.cmpi eq, %209, %212 : vector<1x1x8x128xi32>
    %c2_i32_106 = arith.constant 2 : i32
    %214 = vector.broadcast %c2_i32_106 : i32 to vector<1x1x8x128xi32>
    %215 = arith.cmpi eq, %209, %214 : vector<1x1x8x128xi32>
    %cst_107 = arith.constant 0.000000e+00 : f32
    %216 = vector.broadcast %208 : f32 to vector<1x1x8x128xf32>
    %217 = vector.broadcast %cst_107 : f32 to vector<1x1x8x128xf32>
    %218 = arith.select %215, %216, %217 : vector<1x1x8x128xi1>, vector<1x1x8x128xf32>
    %219 = vector.broadcast %201 : f32 to vector<1x1x8x128xf32>
    %220 = arith.select %213, %219, %218 : vector<1x1x8x128xi1>, vector<1x1x8x128xf32>
    %221 = vector.broadcast %56 : f32 to vector<1x1x8x128xf32>
    %222 = arith.select %211, %221, %220 : vector<1x1x8x128xi1>, vector<1x1x8x128xf32>
    %c0_108 = arith.constant 0 : index
    %c0_109 = arith.constant 0 : index
    %c0_110 = arith.constant 0 : index
    %c0_111 = arith.constant 0 : index
    %223 = vector.load %arg6[%c0_108, %c0_109, %c0_110, %c0_111] : memref<1x1x8x128xf32, #tpu.memory_space<vmem>>, vector<1x1x8x128xf32>
    tpu.vector_store %arg6[%c0_108, %c0_109, %c0_110, %c0_111], %222 {strides = array<i32>} : memref<1x1x8x128xf32, #tpu.memory_space<vmem>>, vector<1x1x8x128xf32>,
    return
  }
  func.func @transform_0(%arg0: i32, %arg1: i32) -> (i32, i32, i32, i32, i32) {
    %c0_i32 = arith.constant 0 : i32
    %c0_i32_0 = arith.constant 0 : i32
    %c0_i32_1 = arith.constant 0 : i32
    %c0_i32_2 = arith.constant 0 : i32
    return %arg0, %c0_i32, %arg1, %c0_i32_0, %c0_i32_1 : i32, i32, i32, i32, i32
  }
  func.func @transform_1(%arg0: i32, %arg1: i32) -> (i32, i32, i32, i32) {
    %c0_i32 = arith.constant 0 : i32
    %c0_i32_0 = arith.constant 0 : i32
    %c0_i32_1 = arith.constant 0 : i32
    return %arg0, %arg1, %c0_i32, %c0_i32_0 : i32, i32, i32, i32
  }
  func.func @transform_2(%arg0: i32, %arg1: i32) -> (i32, i32, i32, i32, i32) {
    %c8_i32 = arith.constant 8 : i32
    %0 = arith.muli %arg1, %c8_i32 : i32
    %c1_i32 = arith.constant 1 : i32
    %1 = arith.subi %0, %c1_i32 : i32
    %c0_i32 = arith.constant 0 : i32
    %2 = arith.maxsi %1, %c0_i32 : i32
    %c0_i32_0 = arith.constant 0 : i32
    %c2_i32 = arith.constant 2 : i32
    %c0_i32_1 = arith.constant 0 : i32
    %c0_i32_2 = arith.constant 0 : i32
    %c0_i32_3 = arith.constant 0 : i32
    return %c0_i32_0, %c2_i32, %2, %c0_i32_1, %c0_i32_2 : i32, i32, i32, i32, i32
  }
  func.func @transform_3(%arg0: i32, %arg1: i32) -> (i32, i32, i32, i32, i32) {
    %c8_i32 = arith.constant 8 : i32
    %0 = arith.muli %arg1, %c8_i32 : i32
    %c8_i32_0 = arith.constant 8 : i32
    %1 = arith.addi %0, %c8_i32_0 : i32
    %c7_i32 = arith.constant 7 : i32
    %2 = arith.minsi %1, %c7_i32 : i32
    %c0_i32 = arith.constant 0 : i32
    %c2_i32 = arith.constant 2 : i32
    %c0_i32_1 = arith.constant 0 : i32
    %c0_i32_2 = arith.constant 0 : i32
    %c0_i32_3 = arith.constant 0 : i32
    return %c0_i32, %c2_i32, %2, %c0_i32_1, %c0_i32_2 : i32, i32, i32, i32, i32
  }
  func.func @transform_4(%arg0: i32, %arg1: i32) -> (i32, i32, i32, i32) {
    %c0_i32 = arith.constant 0 : i32
    %c0_i32_0 = arith.constant 0 : i32
    %c0_i32_1 = arith.constant 0 : i32
    return %arg0, %arg1, %c0_i32, %c0_i32_0 : i32, i32, i32, i32
  }
}

</mosaic_0001>

<bundles_post_ra>
// kernel: tpu_custom_call.1
= control target key start
LH: loop header
LB: loop body
LE: loop exit
PB: predicated region body
PF: predicated region fallthrough
CT: control target
= control target key end

     0   :  { %9 = vsyncpa [#allocation3], 0  ;;  %s6423_s0 = inlined_call_operand.hbm [shape: f32[1,3,8,32,128], index: 0, kind: input, shape index: {}]   ;;  %s6424_s1 = inlined_call_operand.hbm [shape: s8[1,8,32,128], index: 1, kind: input, shape index: {}]   ;;  %s6425_s2 = inlined_call_operand.hbm [shape: f32[1,3,8,32,128], index: 2, kind: input, shape index: {}]   ;;  %s6426_s3 = inlined_call_operand.hbm [shape: f32[1,3,8,32,128], index: 3, kind: input, shape index: {}]   ;;  %s6427_s4 = inlined_call_operand.hbm [shape: f32[1,1,8,128], index: 4, kind: output, shape index: {}]  }
   0x1   :  { %10 = vsyncpa [#allocation6], 0 }
   0x2   :  { %11 = vsyncpa [#allocation9], 0 }
   0x3   :  { %12 = vsyncpa [#allocation4], 0  ;;  %s3283_s15 = smov [#allocation5]   ;;  %s3284_s17 = smov [#allocation2]  }
   0x4   :  { %s30_s16 = sshll.u32 %s3283_s15, 4  ;;  %s18_s18 = sshll.u32 %s3284_s17, 4  ;;  %s31_s16 = int_to_ptr.vmem [resolvable:$true] %s30_s16  ;;  %s19_s18 = int_to_ptr.vmem [resolvable:$true] %s18_s18 }
   0x5   :  { %s3177_s19 = scalar_lea.vmem %s31_s16, 1024  ;;  %p3182_p1 = scmp.lt.s32.totalorder %s31_s16, %s31_s16 }
   0x6   :  { %p3178_p0 = scmp.ne.s32.totalorder %s31_s16, %s3177_s19  ;;  %p3183_p2 = scmp.lt.s32.totalorder %s3177_s19, %s3177_s19 }
   0x8   :  { %p3184_p3 = por %p3183_p2, %p3182_p1 }
   0xa   :  { %p3185_p4 = pnand %p3184_p3, %p3178_p0 }
   0xc   :  { %3188 = shalt.err (!%p3185_p4)
}
   0xd   :  { %s3285_s20 = smov 128   ;;  %s3286_s21 = smov 8  }
   0xe   :  { %36 = dma.hbm_to_vmem [thread:$0]  %s6424_s1, 1024, %s31_s16, [#allocation6], %s3285_s20, %s3285_s20, %s3286_s21  }
   0xf   :  { %s3197_s24 = scalar_lea.vmem %s19_s18, 12288  ;;  %p3202_p6 = scmp.lt.s32.totalorder %s19_s18, %s19_s18 }
  0x10   :  { %p3198_p5 = scmp.ne.s32.totalorder %s19_s18, %s3197_s24  ;;  %p3203_p7 = scmp.lt.s32.totalorder %s3197_s24, %s3197_s24 }
  0x12   :  { %p3204_p8 = por %p3203_p7, %p3202_p6 }
  0x14   :  { %p3205_p9 = pnand %p3204_p8, %p3198_p5 }
  0x16   :  { %3208 = shalt.err (!%p3205_p9)
}
  0x17   :  { %24 = dma.hbm_to_vmem [thread:$0]  %s6423_s0, 12288, %s19_s18, [#allocation3], %s3285_s20, %s3285_s20, %s3286_s21  }
  0x18   :  { %s2639_s29 = scalar_lea.hbm %s6425_s2, 8192  ;;  %s3287_s30 = smov [#allocation7]  }
  0x19   :  { %s50_s1 = sshll.u32 %s3287_s30, 4  ;;  %s2644_s7 = scalar_lea.hbm %s6426_s3, 11776  ;;  %s51_s1 = int_to_ptr.vmem [resolvable:$true] %s50_s1 }
  0x1a   :  { %s3219_s8 = scalar_lea.vmem %s51_s1, 512  ;;  %p3224_p11 = scmp.lt.s32.totalorder %s51_s1, %s51_s1 }
  0x1b   :  { %p3220_p10 = scmp.ne.s32.totalorder %s51_s1, %s3219_s8  ;;  %p3225_p12 = scmp.lt.s32.totalorder %s3219_s8, %s3219_s8 }
  0x1d   :  { %p3226_p13 = por %p3225_p12, %p3224_p11 }
  0x1f   :  { %p3227_p0 = pnand %p3226_p13, %p3220_p10 }
  0x21   :  { %3230 = shalt.err (!%p3227_p0)
}
  0x22   :  { %56 = dma.hbm_to_vmem [thread:$0]  %s2639_s29, 512, %s51_s1, [#allocation6], %s3285_s20, %s3285_s20, %s3286_s21  }
  0x23   :  { %s3288_s0 = smov [#allocation8]  }
  0x24   :  { %s70_s2 = sshll.u32 %s3288_s0, 4  ;;  %s71_s2 = int_to_ptr.vmem [resolvable:$true] %s70_s2 }
  0x25   :  { %s3242_s9 = scalar_lea.vmem %s71_s2, 512  ;;  %p3247_p2 = scmp.lt.s32.totalorder %s71_s2, %s71_s2 }
  0x26   :  { %p3243_p1 = scmp.ne.s32.totalorder %s71_s2, %s3242_s9  ;;  %p3248_p3 = scmp.lt.s32.totalorder %s3242_s9, %s3242_s9 }
  0x28   :  { %p3249_p4 = por %p3248_p3, %p3247_p2 }
  0x2a   :  { %p3250_p5 = pnand %p3249_p4, %p3243_p1 }
  0x2c   :  { %3253 = shalt.err (!%p3250_p5)
}
  0x2d   :  { %76 = dma.hbm_to_vmem [thread:$0]  %s2644_s7, 512, %s71_s2, [#allocation9], %s3285_s20, %s3285_s20, %s3286_s21  }
  0x2e   :  { %3275 = dma.done.wait [#allocation3], 12288  }
  0x2f   :  { %3276 = vsyncadd [#allocation3], 4294955008 }
  0x30   :  { %3277 = dma.done.wait [#allocation6], 1536  }
  0x31   :  { %3278 = vsyncadd [#allocation6], 4294965760 }
  0x32   :  { %3279 = dma.done.wait [#allocation9], 512  }
  0x33   :  { %3280 = vsyncadd [#allocation9], 4294966784  ;;  %v3342_v0 = vld [vmem:[#allocation2 + $0x208] sm:$0xff]  ;;  %v3344_v1 = vld [vmem:[#allocation2 + $0x210] sm:$0xff]  ;;  %v6428_v5 = vmov 0.0   ;;  %s3290_s3 = smov 1  }
  0x34   :  { %vm1183_vm0 = vcmp.gt.f32.partialorder %v3342_v0, 0.5  ;;  %vm1184_vm1 = vcmp.gt.f32.partialorder %v3344_v1, 0.5  ;;  %v3348_v2 = vld [vmem:[#allocation2 + $0x8] sm:$0xff]  ;;  %v3350_v3 = vld [vmem:[#allocation2 + $0x10] sm:$0xff]  ;;  %v3390_v22 = vld [vmem:[#allocation2 + $0x200] sm:$0xff]  ;;  %s3291_s10 = smov 127  }
  0x35   :  { %v3352_v4 = vld [vmem:[#allocation2 + $0x108] sm:$0xff]  ;;  %v3355_v6 = vsel %vm1183_vm0, 1.0, %v6428_v5  ;;  %v3358_v7 = vsel %vm1184_vm1, 1.0, %v6428_v5  ;;  %v3360_v8 = vld [vmem:[#allocation2 + $0x110] sm:$0xff]  ;;  %v3392_v23 = vld [vmem:[#allocation2 + $0x218] sm:$0xff]  ;;  %vm1182_vm2 = vcmp.gt.f32.partialorder %v3390_v22, 0.5 }
  0x36   :  { %6600 = vst [vmem:[#allocation15_spill] sm:$0xff] %v3355_v6  ;;  %v214_v9 = vmax.f32 %v3348_v2, %v3352_v4  ;;  %v3366_v10 = vpack.i.bf16 %v3358_v7, %v3355_v6  ;;  %v215_v11 = vmax.f32 %v3350_v3, %v3360_v8  ;;  %v3394_v26 = vld [vmem:[#allocation2] sm:$0xff]  ;;  %v3398_v29 = vld [vmem:[#allocation2 + $0x18] sm:$0xff]  ;;  %vm1185_vm3 = vcmp.gt.f32.partialorder %v3392_v23, 0.5  ;;  %v3439_v54 = vld [vmem:[#allocation2 + $0x228] sm:$0xff]  ;;  %s3292_s14 = smov [#allocation10]  }
  0x37   :  { %v3396_v27 = vld [vmem:[#allocation2 + $0x100] sm:$0xff]  ;;  %v3400_v30 = vld [vmem:[#allocation2 + $0x118] sm:$0xff]  ;;  %v3405_v32 = vsel %vm1182_vm2, 1.0, %v6428_v5  ;;  %v3410_v34 = vsel %vm1185_vm3, 1.0, %v6428_v5  ;;  %vm1187_vm6 = vcmp.gt.f32.partialorder %v3439_v54, 0.5  ;;  %v3458_v62 = vld [vmem:[#allocation2 + $0x28] sm:$0xff] }
  0x38   :  { %v3371_v12 = vmax.f32 %v214_v9, %v3342_v0  ;;  %2712 = vrot.lane.b32.xlu1 %v3366_v10, %s3290_s3  ;;  %v3376_v13 = vmax.f32 %v215_v11, %v3344_v1  ;;  %6601 = vst [vmem:[#allocation16_spill] sm:$0xff] %v3405_v32  ;;  %v213_v33 = vmax.f32 %v3394_v26, %v3396_v27  ;;  %v108_v41 = vld [vmem:[#allocation5] sm:$0xff]  ;;  %v3456_v61 = vsel %vm1187_vm6, 1.0, %v6428_v5  ;;  %v3462_v9 = vld [vmem:[#allocation2 + $0x128] sm:$0xff]  ;;  %s2625_s15 = sshll.u32 %s3292_s14, 4  ;;  %s2626_s15 = int_to_ptr.vmem [resolvable:$true] %s2625_s15 }
  0x39   :  { %v216_v35 = vmax.f32 %v3398_v29, %v3400_v30  ;;  %v2701_v36 = vpack.i.bf16 %v3410_v34, %v3405_v32  ;;  %v3435_v50 = vunpack.c.1.s8 %v108_v41  ;;  %v3437_v53 = vld [vmem:[#allocation2 + $0x220] sm:$0xff]  ;;  %v3441_v55 = vunpack.c.2.s8 %v108_v41  ;;  %s3255_s16 = scalar_lea.vmem %s2626_s15, 128  ;;  %p3260_p7 = scmp.lt.s32.totalorder %s2626_s15, %s2626_s15 }
  0x3a   :  { %v311_v14 = vsub.f32 %v3348_v2, %v3371_v12  ;;  %v535_v15 = vsub.f32 %v3352_v4, %v3371_v12  ;;  %v312_v16 = vsub.f32 %v3350_v3, %v3376_v13  ;;  %v536_v17 = vsub.f32 %v3360_v8, %v3376_v13  ;;  %v3446_v58 = vld [vmem:[#allocation2 + $0x20] sm:$0xff]  ;;  %p3256_p6 = scmp.ne.s32.totalorder %s2626_s15, %s3255_s16  ;;  %p3261_p8 = scmp.lt.s32.totalorder %s3255_s16, %s3255_s16 }
  0x3b   :  { %v759_v18 = vsub.f32 %v3342_v0, %v3371_v12  ;;  %v760_v21 = vsub.f32 %v3344_v1, %v3376_v13  ;;  %v3417_v37 = vmax.f32 %v213_v33, %v3390_v22  ;;  %v3420_v38 = vmax.f32 %v216_v35, %v3392_v23  ;;  %2702 = vrot.lane.b32.xlu0 %v2701_v36, %s3290_s3  ;;  %v3460_v63 = vld [vmem:[#allocation2 + $0x120] sm:$0xff] }
  0x3c   :  { %v344_v19 = vmul.f32 1.442695, %v311_v14  ;;  %v568_v20 = vmul.f32 1.442695, %v535_v15  ;;  %v346_v24 = vmul.f32 1.442695, %v312_v16  ;;  %2717 = vrot.lane.b32.xlu1 %v3366_v10, %s3291_s10  ;;  %v3465_v15 = vunpack.c.0.s8 %v108_v41  ;;  %p3262_p9 = por %p3261_p8, %p3260_p7 }
  0x3d   :  { %v570_v25 = vmul.f32 1.442695, %v536_v17  ;;  %v792_v28 = vmul.f32 1.442695, %v759_v18  ;;  %v794_v31 = vmul.f32 1.442695, %v760_v21  ;;  %v310_v39 = vsub.f32 %v3394_v26, %v3417_v37 }
  0x3e   :  { %2896 = vpow2.f32 %v344_v19  ;;  %v534_v40 = vsub.f32 %v3396_v27, %v3417_v37  ;;  %v313_v42 = vsub.f32 %v3398_v29, %v3420_v38  ;;  %v537_v43 = vsub.f32 %v3400_v30, %v3420_v38  ;;  %p3263_p10 = pnand %p3262_p9, %p3256_p6 }
  0x3f   :  { %2898 = vpow2.f32 %v346_v24  ;;  %v342_v44 = vmul.f32 1.442695, %v310_v39  ;;  %v758_v48 = vsub.f32 %v3390_v22, %v3417_v37  ;;  %v761_v49 = vsub.f32 %v3392_v23, %v3420_v38  ;;  %2707 = vrot.lane.b32.xlu0 %v2701_v36, %s3291_s10 }
  0x40   :  { %2900 = vpow2.f32 %v568_v20  ;;  %v566_v45 = vmul.f32 1.442695, %v534_v40  ;;  %v348_v46 = vmul.f32 1.442695, %v313_v42  ;;  %v572_v47 = vmul.f32 1.442695, %v537_v43 }
  0x41   :  { %2902 = vpow2.f32 %v570_v25  ;;  %v790_v51 = vmul.f32 1.442695, %v758_v48  ;;  %v796_v52 = vmul.f32 1.442695, %v761_v49  ;;  %vm439_vm4 = vcmp.eq.s32.totalorder %v3435_v50, 0 }
  0x42   :  { %2904 = vpow2.f32 %v792_v28  ;;  %vm1186_vm5 = vcmp.gt.f32.partialorder %v3437_v53, 0.5  ;;  %vm663_vm7 = vcmp.eq.s32.totalorder %v3435_v50, 1  ;;  %vm440_vm8 = vcmp.eq.s32.totalorder %v3441_v55, 0 }
  0x43   :  { %2906 = vpow2.f32 %v794_v31  ;;  %v3453_v60 = vsel %vm1186_vm5, 1.0, %v6428_v5  ;;  %v471_v17 = vsel %vm439_vm4, %v3348_v2, 0.0  ;;  %vm664_vm9 = vcmp.eq.s32.totalorder %v3441_v55, 1 }
  0x44   :  { %2908 = vpow2.f32 %v342_v44  ;;  %v3469_v10 = vpack.i.bf16 %v3456_v61, %v3453_v60  ;;  %v3475_v19 = vunpack.c.3.s8 %v108_v41  ;;  %v695_v21 = vsel %vm663_vm7, %v3352_v4, 0.0 }
  0x45   :  { %2910 = vpow2.f32 %v348_v46  ;;  %v217_v25 = vmax.f32 %v3446_v58, %v3460_v63  ;;  %v218_v28 = vmax.f32 %v3458_v62, %v3462_v9  ;;  %v472_v31 = vsel %vm440_vm8, %v3350_v3, 0.0 }
  0x46   :  { %2912 = vpow2.f32 %v566_v45  ;;  %vm887_vm10 = vcmp.eq.s32.totalorder %v3435_v50, 2  ;;  %2727 = vrot.lane.b32.xlu1 %v3469_v10, %s3291_s10  ;;  %v696_v33 = vsel %vm664_vm9, %v3360_v8, 0.0  ;;  %v3495_v36 = vadd.f32 %v695_v21, %v471_v17  ;;  %2722 = vrot.lane.b32.xlu0 %v3469_v10, %s3290_s3 }
  0x47   :  { %2914 = vpow2.f32 %v572_v47  ;;  %v3490_v4 = vmax.f32 %v217_v25, %v3437_v53  ;;  %v3493_v35 = vmax.f32 %v218_v28, %v3439_v54  ;;  %vm888_vm11 = vcmp.eq.s32.totalorder %v3441_v55, 2  ;;  %v1311_v55 = vld [vmem:[#allocation7 + $0x8] sm:$0xff]  ;;  %v1312_v25 = vld [vmem:[#allocation7 + $0x10] sm:$0xff] }
  0x48   :  { %2916 = vpow2.f32 %v790_v51  ;;  %vm438_vm12 = vcmp.eq.s32.totalorder %v3465_v15, 0  ;;  %vm441_vm13 = vcmp.eq.s32.totalorder %v3475_v19, 0  ;;  %vm662_vm14 = vcmp.eq.s32.totalorder %v3465_v15, 1 }
  0x49   :  { %2918 = vpow2.f32 %v796_v52  ;;  %v314_v3 = vsub.f32 %v3446_v58, %v3490_v4  ;;  %v315_v8 = vsub.f32 %v3458_v62, %v3493_v35  ;;  %v538_v39 = vsub.f32 %v3460_v63, %v3490_v4 }
  0x4a   :  { %v539_v40 = vsub.f32 %v3462_v9, %v3493_v35  ;;  %vm665_vm15 = vcmp.eq.s32.totalorder %v3475_v19, 1  ;;  %v762_v42 = vsub.f32 %v3437_v53, %v3490_v4  ;;  %v763_v47 = vsub.f32 %v3439_v54, %v3493_v35 }
  0x4b   :  { %v2897_v56 = vpop.eup %2896  ;;  %v350_v44 = vmul.f32 1.442695, %v314_v3  ;;  %v352_v45 = vmul.f32 1.442695, %v315_v8  ;;  %v574_v46 = vmul.f32 1.442695, %v538_v39  ;;  %v728_v49 = vadd.f32 %v696_v33, %v472_v31 }
  0x4c   :  { %v2899_v57 = vpop.eup %2898  ;;  %v919_v51 = vsel %vm887_vm10, %v3342_v0, 0.0  ;;  %v920_v52 = vsel %vm888_vm11, %v3344_v1, 0.0  ;;  %v694_v0 = vsel %vm662_vm14, %v3396_v27, 0.0  ;;  %v697_v1 = vsel %vm665_vm15, %v3400_v30, 0.0  ;;  %v3547_v33 = vld [vmem:[#allocation2 + $0x130] sm:$0xff]  ;;  %v3549_v39 = vld [vmem:[#allocation5 + $0x8] sm:$0xff] }
  0x4d   :  { %v2901_v59 = vpop.eup %2900  ;;  %v800_v21 = vmul.f32 1.442695, %v763_v47  ;;  %vm1315_vm1 = vcmp.gt.f32.partialorder %v1311_v55, 0.5  ;;  %vm886_vm3 = vcmp.eq.s32.totalorder %v3465_v15, 2  ;;  %vm889_vm4 = vcmp.eq.s32.totalorder %v3475_v19, 2 }
  0x4e   :  { %v2903_v11 = vpop.eup %2902  ;;  %v631_v14 = vadd.f32 %v2901_v59, %v2897_v56  ;;  %v576_v56 = vmul.f32 1.442695, %v539_v40  ;;  %v470_v59 = vsel %vm438_vm12, %v3394_v26, 0.0  ;;  %v3532_v26 = vld [vmem:[#allocation2 + $0x230] sm:$0xff]  ;;  %v2678_v30 = vsel %vm1315_vm1, 1.0, %v6428_v5 }
  0x4f   :  { %v2905_v16 = vpop.eup %2904  ;;  %v632_v18 = vadd.f32 %v2903_v11, %v2899_v57  ;;  %v473_v11 = vsel %vm441_vm13, %v3398_v29, 0.0  ;;  %v798_v29 = vmul.f32 1.442695, %v762_v42  ;;  %vm1188_vm2 = vcmp.gt.f32.partialorder %v3532_v26, 0.5 }
  0x50   :  { %v2907_v20 = vpop.eup %2906  ;;  %v855_v24 = vadd.f32 %v2905_v16, %v631_v14  ;;  %v1310_v16 = vld [vmem:[#allocation7] sm:$0xff]  ;;  %v3543_v31 = vmax.f32 %v2678_v30, 1.0  ;;  %vm1316_vm5 = vcmp.gt.f32.partialorder %v1312_v25, 0.5  ;;  %v726_v8 = vadd.f32 %v694_v0, %v470_v59  ;;  %v1313_v59 = vld [vmem:[#allocation7 + $0x18] sm:$0xff] }
  0x51   :  { %v856_v2 = vadd.f32 %v2907_v20, %v632_v18  ;;  %v2909_v41 = vpop.eup %2908  ;;  %vm1314_vm0 = vcmp.gt.f32.partialorder %v1310_v16, 0.5  ;;  %v3554_v10 = vsel %vm1188_vm2, 1.0, %v6428_v5  ;;  %v2679_v40 = vsel %vm1316_vm5, 1.0, %v6428_v5 }
  0x52   :  { %2920 = vlog2.f32 %v855_v24  ;;  %v2911_v43 = vpop.eup %2910  ;;  %v2677_v27 = vsel %vm1314_vm0, 1.0, %v6428_v5  ;;  %6603 = vst [vmem:[#allocation18_spill] sm:$0xff] %v3543_v31  ;;  %v3579_v19 = vadd.f32 %v920_v52, %v728_v49  ;;  %v3589_v16 = vunpack.c.1.s8 %v3549_v39 }
  0x53   :  { %2922 = vlog2.f32 %v856_v2  ;;  %v2913_v48 = vpop.eup %2912  ;;  %v3540_v28 = vmax.f32 %v2677_v27, 1.0  ;;  %v3545_v2 = vld [vmem:[#allocation2 + $0x30] sm:$0xff]  ;;  %vm1317_vm8 = vcmp.gt.f32.partialorder %v1313_v59, 0.5 }
  0x54   :  { %v2915_v57 = vpop.eup %2914  ;;  %v630_v14 = vadd.f32 %v2913_v48, %v2909_v41  ;;  %2924 = vpow2.f32 %v350_v44  ;;  %v729_v41 = vadd.f32 %v697_v1, %v473_v11  ;;  %v918_v44 = vsel %vm886_vm3, %v3390_v22, 0.0 }
  0x55   :  { %v2917_v17 = vpop.eup %2916  ;;  %v633_v50 = vadd.f32 %v2915_v57, %v2911_v43  ;;  %2926 = vpow2.f32 %v352_v45  ;;  %6602 = vst [vmem:[#allocation17_spill] sm:$0xff] %v3540_v28  ;;  %v2736_v42 = vpack.i.bf16 %v3543_v31, %v3540_v28  ;;  %v3559_v43 = vmax.f32 %v2679_v40, 1.0  ;;  %v3584_v57 = vld [vmem:[#allocation2 + $0x238] sm:$0xff]  ;;  %v3830_v28 = vld [vmem:[#allocation2 + $0x270] sm:$0xff] }
  0x56   :  { %v2919_v18 = vpop.eup %2918  ;;  %v854_v20 = vadd.f32 %v2917_v17, %v630_v14  ;;  %2928 = vpow2.f32 %v574_v46  ;;  %v921_v45 = vsel %vm889_vm4, %v3392_v23, 0.0  ;;  %v219_v46 = vmax.f32 %v3545_v2, %v3547_v33  ;;  %v3591_v17 = vld [vmem:[#allocation2 + $0x38] sm:$0xff] }
  0x57   :  { %v857_v24 = vadd.f32 %v2919_v18, %v633_v50  ;;  %2930 = vpow2.f32 %v576_v56  ;;  %6604 = vst [vmem:[#allocation19_spill] sm:$0xff] %v3559_v43  ;;  %v3570_v56 = vunpack.c.0.s8 %v3549_v39  ;;  %2737 = vrot.lane.b32.xlu1 %v2736_v42, %s3291_s10  ;;  %2732 = vrot.lane.b32.xlu0 %v2736_v42, %s3290_s3  ;;  %v2746_v15 = vpack.i.bf16 %v3559_v43, %v3554_v10  ;;  %v3593_v50 = vld [vmem:[#allocation2 + $0x138] sm:$0xff] }
  0x58   :  { %2932 = vlog2.f32 %v854_v20  ;;  %v3577_v22 = vadd.f32 %v919_v51, %v3495_v36  ;;  %v3582_v23 = vmax.f32 %v219_v46, %v3532_v26  ;;  %v950_v11 = vadd.f32 %v918_v44, %v726_v8 }
  0x59   :  { %2934 = vlog2.f32 %v857_v24  ;;  %v3586_v14 = vadd.f32 %v921_v45, %v729_v41  ;;  %vm442_vm6 = vcmp.eq.s32.totalorder %v3570_v56, 0  ;;  %vm1189_vm7 = vcmp.gt.f32.partialorder %v3584_v57, 0.5 }
  0x5a   :  { %2936 = vpow2.f32 %v798_v29  ;;  %v316_v49 = vsub.f32 %v3545_v2, %v3582_v23  ;;  %v540_v52 = vsub.f32 %v3547_v33, %v3582_v23  ;;  %v764_v0 = vsub.f32 %v3532_v26, %v3582_v23 }
  0x5b   :  { %2938 = vpow2.f32 %v800_v21  ;;  %2747 = vrot.lane.b32.xlu1 %v2746_v15, %s3291_s10  ;;  %2742 = vrot.lane.b32.xlu0 %v2746_v15, %s3290_s3  ;;  %v220_v24 = vmax.f32 %v3591_v17, %v3593_v50  ;;  %vm443_vm9 = vcmp.eq.s32.totalorder %v3589_v16, 0  ;;  %v3610_v27 = vsel %vm1189_vm7, 1.0, %v6428_v5 }
  0x5c   :  { %v354_v20 = vmul.f32 1.442695, %v316_v49  ;;  %v578_v29 = vmul.f32 1.442695, %v540_v52  ;;  %v802_v21 = vmul.f32 1.442695, %v764_v0 }
  0x5d   :  { %v2680_v30 = vsel %vm1317_vm8, 1.0, %v6428_v5  ;;  %vm666_vm10 = vcmp.eq.s32.totalorder %v3570_v56, 1  ;;  %v3618_v45 = vmax.f32 %v220_v24, %v3584_v57  ;;  %vm667_vm11 = vcmp.eq.s32.totalorder %v3589_v16, 1  ;;  %v3640_v24 = vld [vmem:[#allocation2 + $0x248] sm:$0xff] }
  0x5e   :  { %2940 = vpow2.f32 %v354_v20  ;;  %v3614_v41 = vmax.f32 %v2680_v30, 1.0  ;;  %v3650_v30 = vld [vmem:[#allocation2 + $0x40] sm:$0xff]  ;;  %vm890_vm13 = vcmp.eq.s32.totalorder %v3570_v56, 2  ;;  %vm891_vm14 = vcmp.eq.s32.totalorder %v3589_v16, 2 }
  0x5f   :  { %v2921_v3 = vpop.eup %2920  ;;  %2942 = vpow2.f32 %v578_v29  ;;  %v541_v49 = vsub.f32 %v3593_v50, %v3618_v45  ;;  %v3634_v29 = vld [vmem:[#allocation2 + $0x240] sm:$0xff]  ;;  %vm1191_vm15 = vcmp.gt.f32.partialorder %v3640_v24, 0.5 }
  0x60   :  { %v2923_v47 = vpop.eup %2922  ;;  %v985_v48 = vmul.f32 0.6931472, %v2921_v3  ;;  %6605 = vst [vmem:[#allocation20_spill] sm:$0xff] %v3614_v41  ;;  %2944 = vpow2.f32 %v802_v21  ;;  %vm1190_vm12 = vcmp.gt.f32.partialorder %v3634_v29, 0.5 }
  0x61   :  { %v2925_v36 = vpop.eup %2924  ;;  %v987_v51 = vmul.f32 0.6931472, %v2923_v47 }
  0x62   :  { %v2927_v1 = vpop.eup %2926  ;;  %v1047_v55 = vadd.f32 %v985_v48, %v3371_v12 }
  0x63   :  { %v2929_v18 = vpop.eup %2928  ;;  %v1048_v8 = vadd.f32 %v987_v51, %v3376_v13  ;;  %v2756_v13 = vpack.i.bf16 %v3614_v41, %v3610_v27  ;;  %v317_v51 = vsub.f32 %v3591_v17, %v3618_v45 }
  0x64   :  { %v2931_v25 = vpop.eup %2930  ;;  %v634_v12 = vadd.f32 %v2929_v18, %v2925_v36  ;;  %v1079_v47 = vsub.f32 %v1047_v55, %v3577_v22  ;;  %v580_v18 = vmul.f32 1.442695, %v541_v49 }
  0x65   :  { %v2933_v3 = vpop.eup %2932  ;;  %v635_v40 = vadd.f32 %v2931_v25, %v2927_v1  ;;  %v1080_v52 = vsub.f32 %v1048_v8, %v3579_v19  ;;  %2757 = vrot.lane.b32.xlu1 %v2756_v13, %s3291_s10  ;;  %v765_v1 = vsub.f32 %v3584_v57, %v3618_v45  ;;  %v698_v25 = vsel %vm666_vm10, %v3460_v63, 0.0  ;;  %2752 = vrot.lane.b32.xlu0 %v2756_v13, %s3290_s3  ;;  %v3661_v63 = vld [vmem:[#allocation2 + $0x48] sm:$0xff] }
  0x66   :  { %v2935_v42 = vpop.eup %2934  ;;  %v983_v44 = vmul.f32 0.6931472, %v2933_v3  ;;  %v3666_v8 = vsel %vm1191_vm15, 1.0, %v6428_v5 }
  0x67   :  { %v2937_v46 = vpop.eup %2936  ;;  %v989_v48 = vmul.f32 0.6931472, %v2935_v42  ;;  %v804_v20 = vmul.f32 1.442695, %v765_v1 }
  0x68   :  { %v2939_v15 = vpop.eup %2938  ;;  %v1046_v59 = vadd.f32 %v983_v44, %v3417_v37  ;;  %v858_v36 = vadd.f32 %v2937_v46, %v634_v12  ;;  %v356_v37 = vmul.f32 1.442695, %v317_v51  ;;  %v922_v46 = vsel %vm890_vm13, %v3437_v53, 0.0 }
  0x69   :  { %v1049_v0 = vadd.f32 %v989_v48, %v3420_v38  ;;  %v859_v22 = vadd.f32 %v2939_v15, %v635_v40  ;;  %v474_v38 = vsel %vm442_vm6, %v3446_v58, 0.0  ;;  %v3652_v58 = vld [vmem:[#allocation2 + $0x140] sm:$0xff]  ;;  %v3679_v15 = vunpack.c.2.s8 %v3549_v39 }
  0x6a   :  { %v1078_v55 = vsub.f32 %v1046_v59, %v950_v11  ;;  %2946 = vlog2.f32 %v858_v36  ;;  %v475_v11 = vsel %vm443_vm9, %v3458_v62, 0.0  ;;  %v3659_v62 = vsel %vm1190_vm12, 1.0, %v6428_v5 }
  0x6b   :  { %2948 = vlog2.f32 %v859_v22  ;;  %v1081_v19 = vsub.f32 %v1049_v0, %v3586_v14  ;;  %v699_v14 = vsel %vm667_vm11, %v3462_v9, 0.0  ;;  %v3663_v9 = vld [vmem:[#allocation2 + $0x148] sm:$0xff]  ;;  %v730_v40 = vadd.f32 %v698_v25, %v474_v38  ;;  %v2941_v44 = vpop.eup %2940 }
  0x6c   :  { %v1142_v21 = vadd.f32 %v1079_v47, %v1078_v55  ;;  %2950 = vpow2.f32 %v356_v37  ;;  %v731_v42 = vadd.f32 %v699_v14, %v475_v11  ;;  %v3670_v56 = vpack.i.bf16 %v3666_v8, %v3659_v62  ;;  %v2943_v13 = vpop.eup %2942 }
  0x6d   :  { %2952 = vpow2.f32 %v580_v18  ;;  %v221_v16 = vmax.f32 %v3650_v30, %v3652_v58  ;;  %v923_v47 = vsel %vm891_vm14, %v3439_v54, 0.0  ;;  %v222_v48 = vmax.f32 %v3661_v63, %v3663_v9  ;;  %v2945_v36 = vpop.eup %2944 }
  0x6e   :  { %v1143_v12 = vadd.f32 %v1142_v21, %v1080_v52  ;;  %2954 = vpow2.f32 %v804_v20  ;;  %2767 = vrot.lane.b32.xlu1 %v3670_v56, %s3291_s10  ;;  %v636_v51 = vadd.f32 %v2943_v13, %v2941_v44  ;;  %v954_v53 = vadd.f32 %v922_v46, %v730_v40  ;;  %2762 = vrot.lane.b32.xlu0 %v3670_v56, %s3290_s3 }
  0x6f   :  { %v3684_v59 = vmax.f32 %v221_v16, %v3634_v29  ;;  %v3687_v49 = vmax.f32 %v222_v48, %v3640_v24  ;;  %v955_v54 = vadd.f32 %v923_v47, %v731_v42  ;;  %vm444_vm0 = vcmp.eq.s32.totalorder %v3679_v15, 0 }
  0x70   :  { %v1144_v3 = vadd.f32 %v1143_v12, %v1081_v19  ;;  %v860_v22 = vadd.f32 %v2945_v36, %v636_v51  ;;  %vm668_vm1 = vcmp.eq.s32.totalorder %v3679_v15, 1  ;;  %v476_v13 = vsel %vm444_vm0, %v3545_v2, 0.0  ;;  %v3708_v51 = vld [vmem:[#allocation2 + $0x250] sm:$0xff] }
  0x71   :  { %v318_v52 = vsub.f32 %v3650_v30, %v3684_v59  ;;  %v542_v0 = vsub.f32 %v3652_v58, %v3684_v59  ;;  %v319_v1 = vsub.f32 %v3661_v63, %v3687_v49  ;;  %v543_v55 = vsub.f32 %v3663_v9, %v3687_v49  ;;  %v3716_v2 = vld [vmem:[#allocation2 + $0x50] sm:$0xff] }
  0x72   :  { %v766_v37 = vsub.f32 %v3634_v29, %v3684_v59  ;;  %v767_v21 = vsub.f32 %v3640_v24, %v3687_v49  ;;  %2956 = vlog2.f32 %v860_v22  ;;  %vm892_vm2 = vcmp.eq.s32.totalorder %v3679_v15, 2 }
  0x73   :  { %v358_v20 = vmul.f32 1.442695, %v318_v52  ;;  %v582_v19 = vmul.f32 1.442695, %v542_v0  ;;  %v360_v25 = vmul.f32 1.442695, %v319_v1  ;;  %v123_v1 = vunpack.c.3.s8 %v3549_v39 }
  0x74   :  { %v584_v12 = vmul.f32 1.442695, %v543_v55  ;;  %v806_v42 = vmul.f32 1.442695, %v766_v37  ;;  %v808_v46 = vmul.f32 1.442695, %v767_v21 }
  0x75   :  { %2958 = vpow2.f32 %v358_v20  ;;  %v700_v0 = vsel %vm668_vm1, %v3547_v33, 0.0  ;;  %vm1192_vm3 = vcmp.gt.f32.partialorder %v3708_v51, 0.5  ;;  %v3724_v37 = vld [vmem:[#allocation2 + $0x150] sm:$0xff]  ;;  %v924_v20 = vsel %vm892_vm2, %v3532_v26, 0.0 }
  0x76   :  { %2960 = vpow2.f32 %v360_v25  ;;  %v3720_v33 = vsel %vm1192_vm3, 1.0, %v6428_v5  ;;  %vm445_vm5 = vcmp.eq.s32.totalorder %v123_v1, 0  ;;  %vm669_vm6 = vcmp.eq.s32.totalorder %v123_v1, 1 }
  0x77   :  { %v2947_v18 = vpop.eup %2946  ;;  %2962 = vpow2.f32 %v582_v19  ;;  %v223_v21 = vmax.f32 %v3716_v2, %v3724_v37  ;;  %v477_v25 = vsel %vm445_vm5, %v3591_v17, 0.0  ;;  %vm893_vm7 = vcmp.eq.s32.totalorder %v123_v1, 2  ;;  %v3773_v1 = vld [vmem:[#allocation2 + $0x268] sm:$0xff] }
  0x78   :  { %v2949_v38 = vpop.eup %2948  ;;  %v991_v11 = vmul.f32 0.6931472, %v2947_v18  ;;  %2964 = vpow2.f32 %v584_v12  ;;  %v732_v18 = vadd.f32 %v700_v0, %v476_v13  ;;  %v701_v12 = vsel %vm669_vm6, %v3593_v50, 0.0 }
  0x79   :  { %v2951_v14 = vpop.eup %2950  ;;  %v993_v40 = vmul.f32 0.6931472, %v2949_v38  ;;  %2966 = vpow2.f32 %v806_v42  ;;  %v3744_v56 = vmax.f32 %v223_v21, %v3708_v51  ;;  %vm1195_vm10 = vcmp.gt.f32.partialorder %v3773_v1, 0.5 }
  0x7a   :  { %v2953_v16 = vpop.eup %2952  ;;  %v1050_v44 = vadd.f32 %v991_v11, %v3490_v4  ;;  %v3712_v4 = vld [vmem:[#allocation2 + $0x258] sm:$0xff]  ;;  %2968 = vpow2.f32 %v808_v46  ;;  %v956_v15 = vadd.f32 %v924_v20, %v732_v18  ;;  %vm1196_vm0 = vcmp.gt.f32.partialorder %v3830_v28, 0.5 }
  0x7b   :  { %v2955_v47 = vpop.eup %2954  ;;  %v1051_v48 = vadd.f32 %v993_v40, %v3493_v35  ;;  %v637_v36 = vadd.f32 %v2953_v16, %v2951_v14  ;;  %vm1193_vm4 = vcmp.gt.f32.partialorder %v3712_v4, 0.5  ;;  %v320_v42 = vsub.f32 %v3716_v2, %v3744_v56 }
  0x7c   :  { %v1082_v52 = vsub.f32 %v1050_v44, %v954_v53  ;;  %v3722_v53 = vld [vmem:[#allocation2 + $0x58] sm:$0xff]  ;;  %v544_v44 = vsub.f32 %v3724_v37, %v3744_v56  ;;  %v768_v50 = vsub.f32 %v3708_v51, %v3744_v56 }
  0x7d   :  { %v1083_v22 = vsub.f32 %v1051_v48, %v955_v54  ;;  %v861_v35 = vadd.f32 %v2955_v47, %v637_v36  ;;  %v3726_v54 = vld [vmem:[#allocation2 + $0x158] sm:$0xff]  ;;  %v3758_v47 = vld [vmem:[#allocation5 + $0x10] sm:$0xff]  ;;  %v362_v36 = vmul.f32 1.442695, %v320_v42 }
  0x7e   :  { %v1145_v55 = vadd.f32 %v1144_v3, %v1082_v52  ;;  %v3731_v3 = vsel %vm1193_vm4, 1.0, %v6428_v5  ;;  %v224_v38 = vmax.f32 %v3722_v53, %v3726_v54  ;;  %v586_v0 = vmul.f32 1.442695, %v544_v44 }
  0x7f   :  { %2970 = vlog2.f32 %v861_v35  ;;  %v2776_v19 = vpack.i.bf16 %v3731_v3, %v3720_v33  ;;  %v2957_v26 = vpop.eup %2956  ;;  %v733_v35 = vadd.f32 %v701_v12, %v477_v25  ;;  %v3771_v25 = vld [vmem:[#allocation2 + $0x260] sm:$0xff] }
  0x80   :  { %v1146_v39 = vadd.f32 %v1145_v55, %v1083_v22  ;;  %v3747_v11 = vmax.f32 %v224_v38, %v3712_v4  ;;  %v995_v40 = vmul.f32 0.6931472, %v2957_v26  ;;  %v925_v55 = vsel %vm893_vm7, %v3584_v57, 0.0 }
  0x81   :  { %2777 = vrot.lane.b32.xlu1 %v2776_v19, %s3291_s10  ;;  %2772 = vrot.lane.b32.xlu0 %v2776_v19, %s3290_s3  ;;  %v124_v38 = vunpack.c.0.s8 %v3758_v47  ;;  %2972 = vpow2.f32 %v362_v36  ;;  %vm1194_vm9 = vcmp.gt.f32.partialorder %v3771_v25, 0.5  ;;  %v3788_v36 = vld [vmem:[#allocation2 + $0x160] sm:$0xff] }
  0x82   :  { %v2959_v14 = vpop.eup %2958  ;;  %v321_v16 = vsub.f32 %v3722_v53, %v3747_v11  ;;  %v545_v17 = vsub.f32 %v3726_v54, %v3747_v11  ;;  %v1052_v13 = vadd.f32 %v995_v40, %v3582_v23  ;;  %v769_v20 = vsub.f32 %v3712_v4, %v3747_v11 }
  0x83   :  { %v2961_v46 = vpop.eup %2960  ;;  %v125_v23 = vunpack.c.1.s8 %v3758_v47  ;;  %vm446_vm8 = vcmp.eq.s32.totalorder %v124_v38, 0  ;;  %vm670_vm12 = vcmp.eq.s32.totalorder %v124_v38, 1  ;;  %vm894_vm14 = vcmp.eq.s32.totalorder %v124_v38, 2 }
  0x84   :  { %v2963_v48 = vpop.eup %2962  ;;  %v364_v52 = vmul.f32 1.442695, %v321_v16  ;;  %v1084_v21 = vsub.f32 %v1052_v13, %v956_v15  ;;  %v588_v42 = vmul.f32 1.442695, %v545_v17  ;;  %v810_v16 = vmul.f32 1.442695, %v768_v50 }
  0x85   :  { %v2965_v22 = vpop.eup %2964  ;;  %v638_v18 = vadd.f32 %v2963_v48, %v2959_v14  ;;  %v957_v15 = vadd.f32 %v925_v55, %v733_v35  ;;  %v6606_v48 = vmov 0.0   ;;  %vm447_vm11 = vcmp.eq.s32.totalorder %v125_v23, 0  ;;  %v3786_v50 = vld [vmem:[#allocation2 + $0x68] sm:$0xff] }
  0x86   :  { %v2967_v19 = vpop.eup %2966  ;;  %v639_v26 = vadd.f32 %v2965_v22, %v2961_v46  ;;  %2974 = vpow2.f32 %v364_v52  ;;  %v1147_v12 = vadd.f32 %v1146_v39, %v1084_v21  ;;  %v812_v46 = vmul.f32 1.442695, %v769_v20  ;;  %v3784_v39 = vld [vmem:[#allocation2 + $0x60] sm:$0xff]  ;;  %v3790_v52 = vld [vmem:[#allocation2 + $0x168] sm:$0xff] }
  0x87   :  { %v2969_v5 = vpop.eup %2968  ;;  %v862_v40 = vadd.f32 %v2967_v19, %v638_v18  ;;  %2976 = vpow2.f32 %v586_v0  ;;  %v3779_v13 = vsel %vm1194_vm9, 1.0, %v6606_v48  ;;  %vm671_vm13 = vcmp.eq.s32.totalorder %v125_v23, 1 }
  0x88   :  { %v863_v14 = vadd.f32 %v2969_v5, %v639_v26  ;;  %6607 = vst [vmem:[#allocation21_spill] sm:$0xff] %v3779_v13  ;;  %v3782_v5 = vsel %vm1195_vm10, 1.0, %v6606_v48  ;;  %v478_v22 = vsel %vm446_vm8, %v3650_v30, 0.0  ;;  %v702_v55 = vsel %vm670_vm12, %v3652_v58, 0.0 }
  0x89   :  { %2978 = vlog2.f32 %v862_v40  ;;  %v225_v18 = vmax.f32 %v3784_v39, %v3788_v36  ;;  %v226_v20 = vmax.f32 %v3786_v50, %v3790_v52  ;;  %v479_v19 = vsel %vm447_vm11, %v3661_v63, 0.0 }
  0x8a   :  { %2980 = vlog2.f32 %v863_v14  ;;  %v703_v21 = vsel %vm671_vm13, %v3663_v9, 0.0  ;;  %vm895_vm15 = vcmp.eq.s32.totalorder %v125_v23, 2  ;;  %v734_v26 = vadd.f32 %v702_v55, %v478_v22 }
  0x8b   :  { %2982 = vpow2.f32 %v588_v42  ;;  %v3809_v30 = vmax.f32 %v225_v18, %v3771_v25  ;;  %v3812_v58 = vmax.f32 %v226_v20, %v3773_v1  ;;  %v735_v23 = vadd.f32 %v703_v21, %v479_v19 }
  0x8c   :  { %v2971_v57 = vpop.eup %2970  ;;  %2984 = vpow2.f32 %v810_v16  ;;  %v927_v14 = vsel %vm895_vm15, %v3640_v24, 0.0 }
  0x8d   :  { %v997_v44 = vmul.f32 0.6931472, %v2971_v57  ;;  %2986 = vpow2.f32 %v812_v46  ;;  %v322_v42 = vsub.f32 %v3784_v39, %v3809_v30  ;;  %v323_v57 = vsub.f32 %v3786_v50, %v3812_v58 }
  0x8e   :  { %v2973_v40 = vpop.eup %2972  ;;  %v546_v63 = vsub.f32 %v3788_v36, %v3809_v30  ;;  %v547_v9 = vsub.f32 %v3790_v52, %v3812_v58  ;;  %v770_v16 = vsub.f32 %v3771_v25, %v3809_v30  ;;  %v771_v18 = vsub.f32 %v3773_v1, %v3812_v58 }
  0x8f   :  { %v1053_v17 = vadd.f32 %v997_v44, %v3618_v45  ;;  %v3794_v45 = vpack.i.bf16 %v3782_v5, %v3779_v13  ;;  %v366_v44 = vmul.f32 1.442695, %v322_v42  ;;  %v368_v46 = vmul.f32 1.442695, %v323_v57 }
  0x90   :  { %v592_v55 = vmul.f32 1.442695, %v547_v9  ;;  %v959_v24 = vadd.f32 %v927_v14, %v735_v23  ;;  %v126_v23 = vunpack.c.2.s8 %v3758_v47 }
  0x91   :  { %v1085_v0 = vsub.f32 %v1053_v17, %v957_v15  ;;  %2787 = vrot.lane.b32.xlu1 %v3794_v45, %s3291_s10  ;;  %v590_v17 = vmul.f32 1.442695, %v546_v63  ;;  %2988 = vpow2.f32 %v366_v44  ;;  %2782 = vrot.lane.b32.xlu0 %v3794_v45, %s3290_s3 }
  0x92   :  { %2990 = vpow2.f32 %v368_v46  ;;  %vm448_vm2 = vcmp.eq.s32.totalorder %v126_v23, 0  ;;  %vm672_vm3 = vcmp.eq.s32.totalorder %v126_v23, 1  ;;  %vm896_vm6 = vcmp.eq.s32.totalorder %v126_v23, 2 }
  0x93   :  { %v1148_v35 = vadd.f32 %v1147_v12, %v1085_v0  ;;  %v2975_v38 = vpop.eup %2974  ;;  %v926_v12 = vsel %vm894_vm14, %v3634_v29, 0.0  ;;  %v814_v29 = vmul.f32 1.442695, %v770_v16  ;;  %2992 = vpow2.f32 %v590_v17 }
  0x94   :  { %v2977_v15 = vpop.eup %2976  ;;  %v958_v43 = vadd.f32 %v926_v12, %v734_v26  ;;  %2994 = vpow2.f32 %v592_v55  ;;  %v3832_v26 = vld [vmem:[#allocation2 + $0x278] sm:$0xff]  ;;  %v2496_v17 = vadd.f32 %v3355_v6, %v3405_v32  ;;  %v704_v55 = vsel %vm672_vm3, %v3724_v37, 0.0 }
  0x95   :  { %v640_v22 = vadd.f32 %v2977_v15, %v2973_v40  ;;  %v816_v15 = vmul.f32 1.442695, %v771_v18  ;;  %2996 = vpow2.f32 %v814_v29  ;;  %vm1197_vm1 = vcmp.gt.f32.partialorder %v3832_v26, 0.5 }
  0x96   :  { %v2979_v0 = vpop.eup %2978 }
  0x97   :  { %v2981_v20 = vpop.eup %2980  ;;  %v999_v19 = vmul.f32 0.6931472, %v2979_v0 }
  0x98   :  { %v2983_v21 = vpop.eup %2982  ;;  %v1001_v31 = vmul.f32 0.6931472, %v2981_v20 }
  0x99   :  { %v2985_v41 = vpop.eup %2984  ;;  %v1054_v42 = vadd.f32 %v999_v19, %v3684_v59  ;;  %v641_v57 = vadd.f32 %v2983_v21, %v2975_v38  ;;  %v127_v59 = vunpack.c.3.s8 %v3758_v47  ;;  %v3850_v47 = vld [vmem:[#allocation2 + $0x78] sm:$0xff] }
  0x9a   :  { %v2987_v63 = vpop.eup %2986  ;;  %v1055_v40 = vadd.f32 %v1001_v31, %v3687_v49  ;;  %v864_v9 = vadd.f32 %v2985_v41, %v640_v22  ;;  %v3838_v31 = vld [vmem:[#allocation2 + $0x70] sm:$0xff]  ;;  %v3848_v49 = vsel %vm1197_vm1, 1.0, %v6606_v48  ;;  %v480_v22 = vsel %vm448_vm2, %v3716_v2, 0.0 }
  0x9b   :  { %v1086_v12 = vsub.f32 %v1054_v42, %v958_v43  ;;  %v865_v14 = vadd.f32 %v2987_v63, %v641_v57  ;;  %v3840_v41 = vld [vmem:[#allocation2 + $0x170] sm:$0xff]  ;;  %v3845_v43 = vsel %vm1196_vm0, 1.0, %v6606_v48  ;;  %6609 = vst [vmem:[#allocation23_spill] sm:$0xff] %v3848_v49  ;;  %vm449_vm4 = vcmp.eq.s32.totalorder %v127_v59, 0 }
  0x9c   :  { %v1087_v16 = vsub.f32 %v1055_v40, %v959_v24  ;;  %2998 = vlog2.f32 %v864_v9  ;;  %6608 = vst [vmem:[#allocation22_spill] sm:$0xff] %v3845_v43  ;;  %v3858_v46 = vpack.i.bf16 %v3848_v49, %v3845_v43  ;;  %vm673_vm5 = vcmp.eq.s32.totalorder %v127_v59, 1 }
  0x9d   :  { %v1149_v38 = vadd.f32 %v1148_v35, %v1086_v12  ;;  %3000 = vlog2.f32 %v865_v14  ;;  %v3852_v35 = vld [vmem:[#allocation2 + $0x178] sm:$0xff]  ;;  %v227_v45 = vmax.f32 %v3838_v31, %v3840_v41  ;;  %v481_v20 = vsel %vm449_vm4, %v3722_v53, 0.0 }
  0x9e   :  { %3002 = vpow2.f32 %v816_v15  ;;  %2797 = vrot.lane.b32.xlu1 %v3858_v46, %s3291_s10  ;;  %v228_v0 = vmax.f32 %v3850_v47, %v3852_v35  ;;  %v705_v19 = vsel %vm673_vm5, %v3726_v54, 0.0  ;;  %v2989_v21 = vpop.eup %2988  ;;  %vm897_vm7 = vcmp.eq.s32.totalorder %v127_v59, 2  ;;  %v3888_v15 = vld [vmem:[#allocation5 + $0x18] sm:$0xff]  ;;  %2792 = vrot.lane.b32.xlu0 %v3858_v46, %s3290_s3 }
  0x9f   :  { %v3854_v44 = vadd.f32 %v1149_v38, %v1087_v16  ;;  %v3871_v18 = vmax.f32 %v227_v45, %v3830_v28  ;;  %v2991_v37 = vpop.eup %2990  ;;  %v2497_v42 = vadd.f32 %v3358_v7, %v2496_v17  ;;  %v736_v57 = vadd.f32 %v704_v55, %v480_v22 }
  0xa0   :  { %v3876_v29 = vmax.f32 %v228_v0, %v3832_v26  ;;  %v2993_v63 = vpop.eup %2992  ;;  %v737_v40 = vadd.f32 %v705_v19, %v481_v20  ;;  %v928_v9 = vsel %vm896_vm6, %v3708_v51, 0.0  ;;  %v929_v16 = vsel %vm897_vm7, %v3712_v4, 0.0 }
  0xa1   :  { %v324_v24 = vsub.f32 %v3838_v31, %v3871_v18  ;;  %v548_v2 = vsub.f32 %v3840_v41, %v3871_v18  ;;  %v2995_v14 = vpop.eup %2994  ;;  %v642_v59 = vadd.f32 %v2993_v63, %v2989_v21  ;;  %v772_v22 = vsub.f32 %v3830_v28, %v3871_v18 }
  0xa2   :  { %v325_v53 = vsub.f32 %v3850_v47, %v3876_v29  ;;  %v549_v54 = vsub.f32 %v3852_v35, %v3876_v29  ;;  %v2997_v17 = vpop.eup %2996  ;;  %v643_v0 = vadd.f32 %v2995_v14, %v2991_v37  ;;  %v773_v55 = vsub.f32 %v3832_v26, %v3876_v29 }
  0xa3   :  { %v370_v12 = vmul.f32 1.442695, %v324_v24  ;;  %v594_v23 = vmul.f32 1.442695, %v548_v2  ;;  %v128_v20 = vunpack.c.0.s8 %v3888_v15  ;;  %v866_v19 = vadd.f32 %v2997_v17, %v642_v59  ;;  %v3900_v59 = vld [vmem:[#allocation2 + $0x288] sm:$0xff] }
  0xa4   :  { %v372_v38 = vmul.f32 1.442695, %v325_v53  ;;  %v596_v45 = vmul.f32 1.442695, %v549_v54  ;;  %v960_v2 = vadd.f32 %v928_v9, %v736_v57  ;;  %v818_v21 = vmul.f32 1.442695, %v772_v22 }
  0xa5   :  { %3004 = vpow2.f32 %v370_v12  ;;  %v961_v54 = vadd.f32 %v929_v16, %v737_v40  ;;  %v820_v63 = vmul.f32 1.442695, %v773_v55  ;;  %v3896_v12 = vld [vmem:[#allocation2 + $0x280] sm:$0xff]  ;;  %v2498_v14 = vadd.f32 %v3410_v34, %v2497_v42 }
  0xa6   :  { %3006 = vpow2.f32 %v372_v38  ;;  %v129_v9 = vunpack.c.1.s8 %v3888_v15  ;;  %vm450_vm8 = vcmp.eq.s32.totalorder %v128_v20, 0  ;;  %vm1198_vm9 = vcmp.gt.f32.partialorder %v3896_v12, 0.5  ;;  %v3908_v42 = vld [vmem:[#allocation2 + $0x180] sm:$0xff] }
  0xa7   :  { %3008 = vpow2.f32 %v594_v23  ;;  %vm674_vm10 = vcmp.eq.s32.totalorder %v128_v20, 1  ;;  %vm1199_vm11 = vcmp.gt.f32.partialorder %v3900_v59, 0.5  ;;  %vm898_vm14 = vcmp.eq.s32.totalorder %v128_v20, 2 }
  0xa8   :  { %3010 = vlog2.f32 %v866_v19  ;;  %vm451_vm12 = vcmp.eq.s32.totalorder %v129_v9, 0  ;;  %vm675_vm13 = vcmp.eq.s32.totalorder %v129_v9, 1  ;;  %v706_v17 = vsel %vm674_vm10, %v3788_v36, 0.0 }
  0xa9   :  { %v2999_v51 = vpop.eup %2998  ;;  %3012 = vpow2.f32 %v596_v45  ;;  %v707_v22 = vsel %vm675_vm13, %v3790_v52, 0.0  ;;  %vm899_vm15 = vcmp.eq.s32.totalorder %v129_v9, 2  ;;  %v930_v36 = vsel %vm898_vm14, %v3771_v25, 0.0 }
  0xaa   :  { %v3001_v24 = vpop.eup %3000  ;;  %v1003_v4 = vmul.f32 0.6931472, %v2999_v51  ;;  %3014 = vpow2.f32 %v818_v21 }
  0xab   :  { %v3003_v53 = vpop.eup %3002  ;;  %v1005_v37 = vmul.f32 0.6931472, %v3001_v24 }
  0xac   :  { %v1056_v32 = vadd.f32 %v1003_v4, %v3744_v56  ;;  %v867_v6 = vadd.f32 %v3003_v53, %v643_v0  ;;  %v3906_v56 = vld [vmem:[#allocation2 + $0x80] sm:$0xff]  ;;  %v483_v0 = vsel %vm451_vm12, %v3786_v50, 0.0 }
  0xad   :  { %v1057_v57 = vadd.f32 %v1005_v37, %v3747_v11  ;;  %v3914_v11 = vsel %vm1198_vm9, 1.0, %v6606_v48  ;;  %v229_v46 = vmax.f32 %v3906_v56, %v3908_v42  ;;  %v739_v4 = vadd.f32 %v707_v22, %v483_v0 }
  0xae   :  { %v1088_v40 = vsub.f32 %v1056_v32, %v960_v2  ;;  %3016 = vlog2.f32 %v867_v6  ;;  %6610 = vst [vmem:[#allocation24_spill] sm:$0xff] %v3914_v11  ;;  %v3917_v6 = vsel %vm1199_vm11, 1.0, %v6606_v48  ;;  %v2499_v32 = vadd.f32 %v3453_v60, %v2498_v14 }
  0xaf   :  { %v1089_v23 = vsub.f32 %v1057_v57, %v961_v54  ;;  %3018 = vpow2.f32 %v820_v63  ;;  %6611 = vst [vmem:[#allocation25_spill] sm:$0xff] %v3917_v6  ;;  %v2806_v38 = vpack.i.bf16 %v3917_v6, %v3914_v11  ;;  %v3931_v55 = vmax.f32 %v229_v46, %v3896_v12 }
  0xb0   :  { %v1151_v16 = vadd.f32 %v3854_v44, %v1088_v40  ;;  %v482_v44 = vsel %vm450_vm8, %v3784_v39, 0.0  ;;  %v2500_v19 = vadd.f32 %v3456_v61, %v2499_v32  ;;  %v931_v14 = vsel %vm899_vm15, %v3773_v1, 0.0 }
  0xb1   :  { %2807 = vrot.lane.b32.xlu1 %v2806_v38, %s3291_s10  ;;  %v738_v24 = vadd.f32 %v706_v17, %v482_v44  ;;  %v326_v20 = vsub.f32 %v3906_v56, %v3931_v55  ;;  %v550_v2 = vsub.f32 %v3908_v42, %v3931_v55  ;;  %v774_v37 = vsub.f32 %v3896_v12, %v3931_v55 }
  0xb2   :  { %v1152_v45 = vadd.f32 %v1151_v16, %v1089_v23  ;;  %v3005_v51 = vpop.eup %3004  ;;  %v2501_v40 = vadd.f32 %v3554_v10, %v2500_v19  ;;  %v963_v46 = vadd.f32 %v931_v14, %v739_v4  ;;  %v130_v1 = vunpack.c.2.s8 %v3888_v15  ;;  %2802 = vrot.lane.b32.xlu0 %v2806_v38, %s3290_s3 }
  0xb3   :  { %v3007_v39 = vpop.eup %3006  ;;  %v374_v53 = vmul.f32 1.442695, %v326_v20  ;;  %v598_v54 = vmul.f32 1.442695, %v550_v2  ;;  %v962_v57 = vadd.f32 %v930_v36, %v738_v24  ;;  %v822_v22 = vmul.f32 1.442695, %v774_v37 }
  0xb4   :  { %v3009_v50 = vpop.eup %3008  ;;  %v3947_v36 = vld [vmem:[#allocation2 + $0x298] sm:$0xff]  ;;  %v2502_v19 = vadd.f32 %v3610_v27, %v2501_v40  ;;  %vm452_vm2 = vcmp.eq.s32.totalorder %v130_v1, 0  ;;  %vm676_vm3 = vcmp.eq.s32.totalorder %v130_v1, 1  ;;  %vm900_vm6 = vcmp.eq.s32.totalorder %v130_v1, 2 }
  0xb5   :  { %v3011_v52 = vpop.eup %3010  ;;  %v644_v21 = vadd.f32 %v3009_v50, %v3005_v51  ;;  %3020 = vpow2.f32 %v374_v53  ;;  %v3944_v51 = vld [vmem:[#allocation2 + $0x290] sm:$0xff]  ;;  %vm1201_vm1 = vcmp.gt.f32.partialorder %v3947_v36, 0.5  ;;  %v708_v53 = vsel %vm676_vm3, %v3840_v41, 0.0 }
  0xb6   :  { %v3013_v63 = vpop.eup %3012  ;;  %v1007_v25 = vmul.f32 0.6931472, %v3011_v52  ;;  %3022 = vpow2.f32 %v598_v54  ;;  %vm1200_vm0 = vcmp.gt.f32.partialorder %v3944_v51, 0.5  ;;  %v3959_v52 = vsel %vm1201_vm1, 1.0, %v6606_v48 }
  0xb7   :  { %v3015_v9 = vpop.eup %3014  ;;  %v645_v23 = vadd.f32 %v3013_v63, %v3007_v39  ;;  %v3955_v4 = vsel %vm1200_vm0, 1.0, %v6606_v48  ;;  %6613 = vst [vmem:[#allocation27_spill] sm:$0xff] %v3959_v52  ;;  %v6446_v1 = vrot.slane %v3848_v49, 1 }
  0xb8   :  { %v1058_v32 = vadd.f32 %v1007_v25, %v3809_v30  ;;  %v868_v44 = vadd.f32 %v3015_v9, %v644_v21  ;;  %v131_v30 = vunpack.c.3.s8 %v3888_v15  ;;  %6612 = vst [vmem:[#allocation26_spill] sm:$0xff] %v3955_v4  ;;  %v2816_v15 = vpack.i.bf16 %v3959_v52, %v3955_v4  ;;  %v3972_v25 = vld [vmem:[#allocation2 + $0x88] sm:$0xff]  ;;  %v270_v9 = vld [vmem:[#allocation2 + $0x2c0] sm:$0xff] }
  0xb9   :  { %v484_v21 = vsel %vm452_vm2, %v3838_v31, 0.0  ;;  %v3974_v31 = vld [vmem:[#allocation2 + $0x188] sm:$0xff]  ;;  %vm1206_vm1 = vcmp.gt.f32.partialorder %v270_v9, 0.5 }
  0xba   :  { %v1090_v20 = vsub.f32 %v1058_v32, %v962_v57  ;;  %3024 = vlog2.f32 %v868_v44  ;;  %vm453_vm4 = vcmp.eq.s32.totalorder %v131_v30, 0  ;;  %vm677_vm5 = vcmp.eq.s32.totalorder %v131_v30, 1  ;;  %2817 = vrot.lane.b32.xlu1 %v2816_v15, %s3291_s10  ;;  %2812 = vrot.lane.b32.xlu0 %v2816_v15, %s3290_s3  ;;  %v3980_v44 = vld [vmem:[#allocation2 + $0x2a0] sm:$0xff]  ;;  %v3992_v15 = vld [vmem:[#allocation2 + $0x2a8] sm:$0xff] }
  0xbb   :  { %v3017_v16 = vpop.eup %3016  ;;  %v485_v38 = vsel %vm453_vm4, %v3850_v47, 0.0  ;;  %v709_v54 = vsel %vm677_vm5, %v3852_v35, 0.0  ;;  %v740_v14 = vadd.f32 %v708_v53, %v484_v21  ;;  %vm901_vm7 = vcmp.eq.s32.totalorder %v131_v30, 2 }
  0xbc   :  { %v3019_v17 = vpop.eup %3018  ;;  %v1009_v0 = vmul.f32 0.6931472, %v3017_v16  ;;  %v1153_v2 = vadd.f32 %v1152_v45, %v1090_v20  ;;  %v2503_v45 = vadd.f32 %v3659_v62, %v2502_v19  ;;  %v932_v57 = vsel %vm900_vm6, %v3830_v28, 0.0 }
  0xbd   :  { %v869_v24 = vadd.f32 %v3019_v17, %v645_v23  ;;  %v741_v40 = vadd.f32 %v709_v54, %v485_v38  ;;  %v933_v16 = vsel %vm901_vm7, %v3832_v26, 0.0  ;;  %v964_v17 = vadd.f32 %v932_v57, %v740_v14  ;;  %v3998_v54 = vld [vmem:[#allocation2 + $0x90] sm:$0xff] }
  0xbe   :  { %v1059_v39 = vadd.f32 %v1009_v0, %v3812_v58  ;;  %v2504_v63 = vadd.f32 %v3666_v8, %v2503_v45  ;;  %v230_v0 = vmax.f32 %v3972_v25, %v3974_v31  ;;  %vm1202_vm8 = vcmp.gt.f32.partialorder %v3980_v44, 0.5 }
  0xbf   :  { %3026 = vlog2.f32 %v869_v24  ;;  %vm1203_vm9 = vcmp.gt.f32.partialorder %v3992_v15, 0.5  ;;  %v1626_v45 = vrot.slane %v3779_v13, 7  ;;  %v6442_v53 = vrot.slane %v3845_v43, 7 }
  0xc0   :  { %v1091_v50 = vsub.f32 %v1059_v39, %v963_v46  ;;  %3028 = vpow2.f32 %v822_v22  ;;  %v2505_v28 = vadd.f32 %v3720_v33, %v2504_v63  ;;  %v965_v39 = vadd.f32 %v933_v16, %v741_v40 }
  0xc1   :  { %v4005_v57 = vmax.f32 %v230_v0, %v3900_v59  ;;  %v4010_v40 = vsel %vm1202_vm8, 1.0, %v6606_v48 }
  0xc2   :  { %v1154_v58 = vadd.f32 %v1153_v2, %v1091_v50  ;;  %v3021_v37 = vpop.eup %3020  ;;  %v3990_v50 = vld [vmem:[#allocation5 + $0x20] sm:$0xff]  ;;  %v2506_v63 = vadd.f32 %v3731_v3, %v2505_v28  ;;  %6614 = vst [vmem:[#allocation28_spill] sm:$0xff] %v4010_v40  ;;  %v4015_v28 = vsel %vm1203_vm9, 1.0, %v6606_v48 }
  0xc3   :  { %v3023_v41 = vpop.eup %3022  ;;  %6615 = vst [vmem:[#allocation29_spill] sm:$0xff] %v4015_v28  ;;  %v2826_v0 = vpack.i.bf16 %v4015_v28, %v4010_v40 }
  0xc4   :  { %v646_v32 = vadd.f32 %v3023_v41, %v3021_v37  ;;  %v4000_v37 = vld [vmem:[#allocation2 + $0x190] sm:$0xff]  ;;  %v132_v41 = vunpack.c.0.s8 %v3990_v50 }
  0xc5   :  { %2827 = vrot.lane.b32.xlu1 %v2826_v0, %s3291_s10  ;;  %2822 = vrot.lane.b32.xlu0 %v2826_v0, %s3290_s3 }
  0xc6   :  { %vm454_vm10 = vcmp.eq.s32.totalorder %v132_v41, 0  ;;  %vm678_vm11 = vcmp.eq.s32.totalorder %v132_v41, 1  ;;  %vm902_vm12 = vcmp.eq.s32.totalorder %v132_v41, 2  ;;  %v1743_v41 = vrot.slane %v3845_v43, 1 }
  0xc7   :  { %v3025_v47 = vpop.eup %3024  ;;  %v934_v35 = vsel %vm902_vm12, %v3896_v12, 0.0  ;;  %v6450_v12 = vrot.slane %v3848_v49, 7 }
  0xc8   :  { %v1011_v46 = vmul.f32 0.6931472, %v3025_v47 }
  0xca   :  { %v1060_v2 = vadd.f32 %v1011_v46, %v3871_v18  ;;  %v1735_v46 = vrot.slane %v3782_v5, 1 }
  0xcc   :  { %v3027_v22 = vpop.eup %3026  ;;  %v1092_v14 = vsub.f32 %v1060_v2, %v964_v17  ;;  %v775_v17 = vsub.f32 %v3900_v59, %v4005_v57 }
  0xcd   :  { %v3029_v26 = vpop.eup %3028  ;;  %v1013_v30 = vmul.f32 0.6931472, %v3027_v22  ;;  %v6443_v22 = vlaneseq }
  0xce   :  { %v870_v38 = vadd.f32 %v3029_v26, %v646_v32  ;;  %v1155_v16 = vadd.f32 %v1154_v58, %v1092_v14  ;;  %v231_v32 = vmax.f32 %v3998_v54, %v4000_v37  ;;  %v327_v58 = vsub.f32 %v3972_v25, %v4005_v57 }
  0xcf   :  { %v1061_v18 = vadd.f32 %v1013_v30, %v3876_v29  ;;  %v551_v30 = vsub.f32 %v3974_v31, %v4005_v57  ;;  %v4031_v2 = vshrl.u32 %v6443_v22, 7  ;;  %v824_v21 = vmul.f32 1.442695, %v775_v17 }
  0xd0   :  { %3030 = vlog2.f32 %v870_v38  ;;  %v1634_v38 = vrot.slane %v3782_v5, 7  ;;  %v4036_v14 = vmax.f32 %v231_v32, %v3944_v51  ;;  %v376_v20 = vmul.f32 1.442695, %v327_v58 }
  0xd1   :  { %v1093_v47 = vsub.f32 %v1061_v18, %v965_v39  ;;  %6616 = vst [vmem:[#allocation30_spill] sm:$0xff] %v4031_v2  ;;  %v2507_v18 = vadd.f32 %v3779_v13, %v2506_v63  ;;  %v486_v63 = vsel %vm454_vm10, %v3906_v56, 0.0  ;;  %v710_v32 = vsel %vm678_vm11, %v3908_v42, 0.0 }
  0xd2   :  { %v600_v0 = vmul.f32 1.442695, %v551_v30  ;;  %vm1655_vm15 = vcmp.lt.s32.totalorder %v4031_v2, 1  ;;  %vm1756_vm0 = vcmp.lt.s32.totalorder %v4031_v2, 7  ;;  %v328_v56 = vsub.f32 %v3998_v54, %v4036_v14 }
  0xd3   :  { %v4022_v26 = vadd.f32 %v1155_v16, %v1093_v47  ;;  %v4039_v47 = vld [vmem:[#allocation2 + $0x2b0] sm:$0xff]  ;;  %v4041_v16 = vld [vmem:[#allocation2 + $0x2b8] sm:$0xff]  ;;  %v2508_v58 = vadd.f32 %v3782_v5, %v2507_v18  ;;  %v1667_v42 = vsel %vm1655_vm15, %v1634_v38, %v6442_v53  ;;  %v742_v30 = vadd.f32 %v710_v32, %v486_v63 }
  0xd4   :  { %vm1204_vm13 = vcmp.gt.f32.partialorder %v4039_v47, 0.5  ;;  %vm1205_vm14 = vcmp.gt.f32.partialorder %v4041_v16, 0.5  ;;  %v552_v39 = vsub.f32 %v4000_v37, %v4036_v14  ;;  %3032 = vpow2.f32 %v376_v20 }
  0xd5   :  { %v4068_v24 = vsel %vm1204_vm13, 1.0, %v6606_v48  ;;  %v4071_v18 = vsel %vm1205_vm14, 1.0, %v6606_v48  ;;  %v1760_v53 = vsel %vm1756_vm0, %v1743_v41, %v6446_v1  ;;  %3034 = vpow2.f32 %v600_v0 }
  0xd6   :  { %6617 = vst [vmem:[#allocation31_spill] sm:$0xff] %v4068_v24  ;;  %6618 = vst [vmem:[#allocation32_spill] sm:$0xff] %v4071_v18  ;;  %v2836_v63 = vpack.i.bf16 %v4071_v18, %v4068_v24  ;;  %v6449_v20 = vrot.slane %v3779_v13, 1  ;;  %v378_v29 = vmul.f32 1.442695, %v328_v56  ;;  %v966_v19 = vadd.f32 %v934_v35, %v742_v30  ;;  %v4207_v18 = vld [vmem:[#allocation2 + $0xa8] sm:$0xff] }
  0xd7   :  { %v602_v22 = vmul.f32 1.442695, %v552_v39  ;;  %v776_v40 = vsub.f32 %v3944_v51, %v4036_v14  ;;  %v1835_v1 = vmin.f32 %v1667_v42, %v1760_v53  ;;  %v2509_v24 = vadd.f32 %v3845_v43, %v2508_v58  ;;  %v271_v39 = vld [vmem:[#allocation2 + $0x2c8] sm:$0xff] }
  0xd8   :  { %2837 = vrot.lane.b32.xlu1 %v2836_v63, %s3291_s10  ;;  %2832 = vrot.lane.b32.xlu0 %v2836_v63, %s3290_s3  ;;  %v4089_v56 = vunpack.c.1.s8 %v3990_v50  ;;  %3036 = vpow2.f32 %v824_v21  ;;  %v4094_v30 = vsel %vm1655_vm15, %v1626_v45, %v1634_v38  ;;  %v4100_v53 = vsel %vm1756_vm0, %v6449_v20, %v1735_v46  ;;  %v272_v21 = vld [vmem:[#allocation2 + $0x2d0] sm:$0xff]  ;;  %v273_v38 = vld [vmem:[#allocation2 + $0x2d8] sm:$0xff]  ;;  %v1327_v20 = vld [vmem:[#allocation8 + $0x8] sm:$0xff] }
  0xd9   :  { %v4106_v58 = vsel %vm1655_vm15, %v6450_v12, %v1626_v45  ;;  %3038 = vpow2.f32 %v378_v29  ;;  %v4113_v42 = vmin.f32 %v3845_v43, %v1835_v1  ;;  %v2510_v63 = vadd.f32 %v3848_v49, %v2509_v24  ;;  %v4144_v45 = vld [vmem:[#allocation2 + $0x98] sm:$0xff]  ;;  %v4287_v49 = vpop.permute.xlu0 %2702 }
  0xda   :  { %3040 = vpow2.f32 %v602_v22  ;;  %vm1207_vm2 = vcmp.gt.f32.partialorder %v271_v39, 0.5  ;;  %v6459_v29 = vrot.slane %v3917_v6, 1  ;;  %vm455_vm3 = vcmp.eq.s32.totalorder %v4089_v56, 0  ;;  %v4146_v12 = vld [vmem:[#allocation2 + $0x198] sm:$0xff] }
  0xdb   :  { %6619 = vst [vmem:[#allocation33_spill] sm:$0xff] %v4113_v42  ;;  %vm679_vm4 = vcmp.eq.s32.totalorder %v4089_v56, 1  ;;  %v4127_v1 = vsel %vm1207_vm2, 1.0, %v6606_v48  ;;  %vm1208_vm5 = vcmp.gt.f32.partialorder %v272_v21, 0.5  ;;  %vm1209_vm6 = vcmp.gt.f32.partialorder %v273_v38, 0.5  ;;  %v4283_v43 = vld [vmem:[#allocation2 + $0x1b8] sm:$0xff] }
  0xdc   :  { %6622 = vst [vmem:[#allocation36_spill] sm:$0xff] %v4127_v1  ;;  %v4132_v22 = vsel %vm1208_vm5, 1.0, %v6606_v48  ;;  %v4136_v39 = vsel %vm1209_vm6, 1.0, %v6606_v48  ;;  %v711_v38 = vsel %vm679_vm4, %v3974_v31, 0.0  ;;  %vm903_vm9 = vcmp.eq.s32.totalorder %v4089_v56, 2 }
  0xdd   :  { %v3031_v32 = vpop.eup %3030  ;;  %6623 = vst [vmem:[#allocation37_spill] sm:$0xff] %v4132_v22  ;;  %6624 = vst [vmem:[#allocation38_spill] sm:$0xff] %v4136_v39  ;;  %vm1331_vm13 = vcmp.gt.f32.partialorder %v1327_v20, 0.5  ;;  %v2511_v56 = vadd.f32 %v3914_v11, %v2510_v63  ;;  %v232_v0 = vmax.f32 %v4144_v45, %v4146_v12  ;;  %vm1619_vm6 = vcmp.eq.s32.totalorder %v4031_v2, 0 }
  0xde   :  { %v1015_v23 = vmul.f32 0.6931472, %v3031_v32  ;;  %v4117_v32 = vsel %vm1206_vm1, 1.0, %v6606_v48 }
  0xdf   :  { %6620 = vst [vmem:[#allocation34_spill] sm:$0xff] %v4117_v32  ;;  %v2846_v24 = vpack.i.bf16 %v4127_v1, %v4117_v32  ;;  %v935_v1 = vsel %vm903_vm9, %v3900_v59, 0.0  ;;  %v2682_v59 = vsel %vm1331_vm13, 1.0, %v6606_v48 }
  0xe0   :  { %v1062_v35 = vadd.f32 %v1015_v23, %v3931_v55  ;;  %v4110_v55 = vsel %vm1756_vm0, %v1735_v46, %v1743_v41  ;;  %v826_v23 = vmul.f32 1.442695, %v776_v40  ;;  %v274_v40 = vld [vmem:[#allocation2 + $0x2e0] sm:$0xff]  ;;  %v275_v46 = vld [vmem:[#allocation2 + $0x2e8] sm:$0xff]  ;;  %v276_v41 = vld [vmem:[#allocation2 + $0x2f0] sm:$0xff] }
  0xe1   :  { %vm1210_vm7 = vcmp.gt.f32.partialorder %v274_v40, 0.5  ;;  %vm1211_vm8 = vcmp.gt.f32.partialorder %v275_v46, 0.5  ;;  %v3033_v21 = vpop.eup %3032  ;;  %2847 = vrot.lane.b32.xlu1 %v2846_v24, %s3291_s10  ;;  %2842 = vrot.lane.b32.xlu0 %v2846_v24, %s3290_s3  ;;  %v2856_v40 = vpack.i.bf16 %v4136_v39, %v4132_v22  ;;  %vm1212_vm10 = vcmp.gt.f32.partialorder %v276_v41, 0.5  ;;  %v1329_v39 = vld [vmem:[#allocation8 + $0x18] sm:$0xff]  ;;  %v4194_v41 = vld [vmem:[#allocation2 + $0xa0] sm:$0xff] }
  0xe2   :  { %v1094_v9 = vsub.f32 %v1062_v35, %v966_v19  ;;  %3042 = vpow2.f32 %v826_v23  ;;  %v277_v35 = vld [vmem:[#allocation2 + $0x2f8] sm:$0xff]  ;;  %v487_v23 = vsel %vm455_vm3, %v3972_v25, 0.0  ;;  %v3035_v46 = vpop.eup %3034  ;;  %v4155_v25 = vsel %vm1210_vm7, 1.0, %v6606_v48 }
  0xe3   :  { %6625 = vst [vmem:[#allocation39_spill] sm:$0xff] %v4155_v25  ;;  %v4158_v31 = vsel %vm1211_vm8, 1.0, %v6606_v48  ;;  %vm1213_vm11 = vcmp.gt.f32.partialorder %v277_v35, 0.5  ;;  %v743_v17 = vadd.f32 %v711_v38, %v487_v23  ;;  %v647_v22 = vadd.f32 %v3035_v46, %v3033_v21 }
  0xe4   :  { %v4123_v19 = vadd.f32 %v4022_v26, %v1094_v9  ;;  %v6460_v26 = vrot.slane %v3914_v11, 1  ;;  %v1326_v9 = vld [vmem:[#allocation8] sm:$0xff]  ;;  %6626 = vst [vmem:[#allocation40_spill] sm:$0xff] %v4158_v31  ;;  %v2866_v32 = vpack.i.bf16 %v4158_v31, %v4155_v25  ;;  %v4178_v23 = vsel %vm1212_vm10, 1.0, %v6606_v48 }
  0xe5   :  { %vm1330_vm12 = vcmp.gt.f32.partialorder %v1326_v9, 0.5  ;;  %2857 = vrot.lane.b32.xlu1 %v2856_v40, %s3291_s10  ;;  %2852 = vrot.lane.b32.xlu0 %v2856_v40, %s3290_s3  ;;  %6627 = vst [vmem:[#allocation41_spill] sm:$0xff] %v4178_v23  ;;  %v4182_v63 = vsel %vm1213_vm11, 1.0, %v6606_v48  ;;  %v4189_v40 = vunpack.c.2.s8 %v3990_v50  ;;  %v4192_v46 = vunpack.c.3.s8 %v3990_v50  ;;  %v4209_v50 = vld [vmem:[#allocation2 + $0x1a8] sm:$0xff] }
  0xe6   :  { %6621 = vst [vmem:[#allocation35_spill] sm:$0xff] %v4123_v19  ;;  %v4166_v24 = vsel %vm1756_vm0, %v6460_v26, %v6459_v29  ;;  %v1328_v19 = vld [vmem:[#allocation8 + $0x10] sm:$0xff]  ;;  %v3037_v29 = vpop.eup %3036  ;;  %6628 = vst [vmem:[#allocation42_spill] sm:$0xff] %v4182_v63  ;;  %v2681_v21 = vsel %vm1330_vm12, 1.0, %v6606_v48  ;;  %v4196_v26 = vld [vmem:[#allocation2 + $0x1a0] sm:$0xff]  ;;  %vm1333_vm1 = vcmp.gt.f32.partialorder %v1329_v39, 0.5  ;;  %v4198_v31 = vadd.f32 %v935_v1, %v743_v17 }
  0xe7   :  { %v3039_v38 = vpop.eup %3038  ;;  %vm1332_vm14 = vcmp.gt.f32.partialorder %v1328_v19, 0.5  ;;  %v4201_v9 = vadd.f32 %v3917_v6, %v2511_v56  ;;  %v4205_v25 = vmax.f32 %v232_v0, %v3947_v36  ;;  %v2876_v17 = vpack.i.bf16 %v4182_v63, %v4178_v23  ;;  %v113_v63 = vld [vmem:[#allocation5 + $0x28] sm:$0xff]  ;;  %v4281_v6 = vld [vmem:[#allocation2 + $0xb8] sm:$0xff] }
  0xe8   :  { %v3041_v35 = vpop.eup %3040  ;;  %6629 = vst [vmem:[#allocation43_spill] sm:$0xff] %v4198_v31  ;;  %v4215_v1 = vmax.f32 %v2681_v21, 1.0  ;;  %v4217_v56 = vmax.f32 %v2682_v59, 1.0  ;;  %v233_v0 = vmax.f32 %v4194_v41, %v4196_v26  ;;  %v2683_v20 = vsel %vm1332_vm14, 1.0, %v6606_v48 }
  0xe9   :  { %6630 = vst [vmem:[#allocation44_spill] sm:$0xff] %v4201_v9  ;;  %6631 = vst [vmem:[#allocation45_spill] sm:$0xff] %v4205_v25  ;;  %2867 = vrot.lane.b32.xlu1 %v2866_v32, %s3291_s10  ;;  %2862 = vrot.lane.b32.xlu0 %v2866_v32, %s3290_s3  ;;  %v871_v9 = vadd.f32 %v3037_v29, %v647_v22  ;;  %v2684_v28 = vsel %vm1333_vm1, 1.0, %v6606_v48  ;;  %vm456_vm2 = vcmp.eq.s32.totalorder %v4189_v40, 0  ;;  %vm457_vm3 = vcmp.eq.s32.totalorder %v4192_v46, 0 }
  0xea   :  { %6632 = vst [vmem:[#allocation46_spill] sm:$0xff] %v4215_v1  ;;  %6633 = vst [vmem:[#allocation47_spill] sm:$0xff] %v4217_v56  ;;  %v648_v32 = vadd.f32 %v3041_v35, %v3039_v38  ;;  %v234_v21 = vmax.f32 %v4207_v18, %v4209_v50  ;;  %v329_v29 = vsub.f32 %v4144_v45, %v4205_v25  ;;  %vm680_vm4 = vcmp.eq.s32.totalorder %v4189_v40, 1 }
  0xeb   :  { %v553_v22 = vsub.f32 %v4146_v12, %v4205_v25  ;;  %vm681_vm5 = vcmp.eq.s32.totalorder %v4192_v46, 1  ;;  %v2886_v48 = vpack.i.bf16 %v4217_v56, %v4215_v1  ;;  %v4239_v19 = vmax.f32 %v2683_v20, 1.0 }
  0xec   :  { %v4241_v39 = vmax.f32 %v2684_v28, 1.0  ;;  %3044 = vlog2.f32 %v871_v9  ;;  %v777_v35 = vsub.f32 %v3947_v36, %v4205_v25  ;;  %v4247_v23 = vmax.f32 %v233_v0, %v3980_v44  ;;  %v4256_v9 = vld [vmem:[#allocation2 + $0xb0] sm:$0xff] }
  0xed   :  { %2877 = vrot.lane.b32.xlu1 %v2876_v17, %s3291_s10  ;;  %2872 = vrot.lane.b32.xlu0 %v2876_v17, %s3290_s3  ;;  %6634 = vst [vmem:[#allocation48_spill] sm:$0xff] %v4239_v19  ;;  %v488_v17 = vsel %vm456_vm2, %v3998_v54, 0.0  ;;  %v712_v1 = vsel %vm680_vm4, %v4000_v37, 0.0  ;;  %v4254_v28 = vmax.f32 %v234_v21, %v3992_v15  ;;  %v380_v56 = vmul.f32 1.442695, %v329_v29  ;;  %v4265_v54 = vld [vmem:[#allocation2 + $0x1b0] sm:$0xff] }
  0xee   :  { %6635 = vst [vmem:[#allocation49_spill] sm:$0xff] %v4241_v39  ;;  %6636 = vst [vmem:[#allocation50_spill] sm:$0xff] %v4247_v23  ;;  %v489_v0 = vsel %vm457_vm3, %v4144_v45, 0.0  ;;  %v713_v25 = vsel %vm681_vm5, %v4146_v12, 0.0  ;;  %v604_v37 = vmul.f32 1.442695, %v553_v22  ;;  %v2891_v21 = vpack.i.bf16 %v4241_v39, %v4239_v19 }
  0xef   :  { %v3043_v59 = vpop.eup %3042  ;;  %6637 = vst [vmem:[#allocation51_spill] sm:$0xff] %v4254_v28  ;;  %vm904_vm7 = vcmp.eq.s32.totalorder %v4189_v40, 2  ;;  %v6638_v45 = vrot.slane %v3914_v11, 7  ;;  %v744_v29 = vadd.f32 %v712_v1, %v488_v17  ;;  %v828_v38 = vmul.f32 1.442695, %v777_v35 }
  0xf0   :  { %v872_v20 = vadd.f32 %v3043_v59, %v648_v32  ;;  %v136_v32 = vunpack.c.0.s8 %v113_v63  ;;  %v6639_v59 = vrot.slane %v3959_v52, 7  ;;  %v330_v22 = vsub.f32 %v4194_v41, %v4247_v23 }
  0xf1   :  { %2887 = vrot.lane.b32.xlu1 %v2886_v48, %s3291_s10  ;;  %2882 = vrot.lane.b32.xlu0 %v2886_v48, %s3290_s3  ;;  %v4285_v48 = vpop.permute.xlu1 %2712  ;;  %vm905_vm8 = vcmp.eq.s32.totalorder %v4192_v46, 2  ;;  %v331_v52 = vsub.f32 %v4207_v18, %v4254_v28  ;;  %v235_v1 = vmax.f32 %v4256_v9, %v4265_v54  ;;  %v745_v35 = vadd.f32 %v713_v25, %v489_v0 }
  0xf2   :  { %v1684_v12 = vsel %vm1655_vm15, %v6639_v59, %v6638_v45  ;;  %3046 = vlog2.f32 %v872_v20  ;;  %v936_v17 = vsel %vm904_vm7, %v3944_v51, 0.0  ;;  %v554_v45 = vsub.f32 %v4196_v26, %v4247_v23 }
  0xf3   :  { %3048 = vpow2.f32 %v380_v56  ;;  %vm458_vm9 = vcmp.eq.s32.totalorder %v136_v32, 0  ;;  %v555_v46 = vsub.f32 %v4209_v50, %v4254_v28  ;;  %v236_v18 = vmax.f32 %v4281_v6, %v4283_v43 }
  0xf4   :  { %3050 = vpow2.f32 %v604_v37  ;;  %v937_v25 = vsel %vm905_vm8, %v3947_v36, 0.0  ;;  %v4307_v40 = vunpack.c.1.s8 %v113_v63  ;;  %v382_v51 = vmul.f32 1.442695, %v330_v22  ;;  %v2708_v36 = vpop.permute.xlu0 %2707 }
  0xf5   :  { %2892 = vrot.lane.b32.xlu0 %v2891_v21, %s3290_s3  ;;  %2189 = vrot.lane.b32.xlu1 %v4239_v19, %s3291_s10  ;;  %vm682_vm10 = vcmp.eq.s32.totalorder %v136_v32, 1  ;;  %3052 = vpow2.f32 %v828_v38  ;;  %v384_v56 = vmul.f32 1.442695, %v331_v52  ;;  %v778_v20 = vsub.f32 %v3980_v44, %v4247_v23  ;;  %v2718_v21 = vpop.permute.xlu1 %2717 }
  0xf6   :  { %6640 = vst [vmem:[#allocation52_spill] sm:$0xff] %v4307_v40  ;;  %v4312_v50 = vmax.f32 %v235_v1, %v4039_v47  ;;  %v490_v0 = vsel %vm458_vm9, %v4194_v41, 0.0  ;;  %v606_v37 = vmul.f32 1.442695, %v554_v45  ;;  %vm906_vm11 = vcmp.eq.s32.totalorder %v136_v32, 2 }
  0xf7   :  { %vm907_vm12 = vcmp.eq.s32.totalorder %v4307_v40, 2  ;;  %v608_v63 = vmul.f32 1.442695, %v555_v46  ;;  %v714_v59 = vsel %vm682_vm10, %v4196_v26, 0.0  ;;  %v779_v52 = vsub.f32 %v3992_v15, %v4254_v28 }
  0xf8   :  { %6641 = vst [vmem:[#allocation53_spill] sm:$0xff] %v4312_v50  ;;  %v4320_v38 = vmax.f32 %v236_v18, %v4041_v16  ;;  %v4326_v41 = vsel %vm1619_vm6, 1.0, %v1684_v12  ;;  %v4329_v1 = vadd.f32 %v936_v17, %v744_v29  ;;  %3054 = vpow2.f32 %v382_v51 }
  0xf9   :  { %2191 = vrot.lane.b32.xlu0 %v4241_v39, %s3291_s10  ;;  %v3045_v45 = vpop.eup %3044  ;;  %v4331_v26 = vadd.f32 %v937_v25, %v745_v35  ;;  %3056 = vpow2.f32 %v384_v56  ;;  %v830_v46 = vmul.f32 1.442695, %v778_v20  ;;  %v332_v18 = vsub.f32 %v4256_v9, %v4312_v50  ;;  %v2728_v20 = vpop.permute.xlu1 %2727 }
  0xfa   :  { %6642 = vst [vmem:[#allocation54_spill] sm:$0xff] %v4320_v38  ;;  %6643 = vst [vmem:[#allocation55_spill] sm:$0xff] %v4329_v1  ;;  %3058 = vpow2.f32 %v606_v37  ;;  %v4335_v19 = vadd.f32 %v714_v59, %v490_v0  ;;  %v4339_v12 = vsel %vm906_vm11, %v3980_v44, 0.0  ;;  %v4344_v29 = vsel %vm907_vm12, %v3992_v15, 0.0  ;;  %v2723_v0 = vpop.permute.xlu0 %2722 }
  0xfb   :  { %6644 = vst [vmem:[#allocation56_spill] sm:$0xff] %v4331_v26  ;;  %6645 = vst [vmem:[#allocation57_spill] sm:$0xff] %v4344_v29  ;;  %3060 = vpow2.f32 %v608_v63  ;;  %v832_v35 = vmul.f32 1.442695, %v779_v52  ;;  %v333_v17 = vsub.f32 %v4281_v6, %v4320_v38  ;;  %v6646_v25 = vlaneseq }
  0xfc   :  { %v1017_v9 = vmul.f32 0.6931472, %v3045_v45  ;;  %v556_v56 = vsub.f32 %v4265_v54, %v4312_v50  ;;  %v557_v44 = vsub.f32 %v4283_v43, %v4320_v38  ;;  %v2720_v32 = vunpack.i.h.bf16 %v2718_v21 }
  0xfd   :  { %v4349_v51 = vand.u32 127, %v6646_v25  ;;  %3062 = vpow2.f32 %v830_v46  ;;  %v386_v15 = vmul.f32 1.442695, %v332_v18  ;;  %v2719_v37 = vunpack.i.l.bf16 %v2718_v21 }
  0xfe   :  { %v2715_v6 = vunpack.i.h.bf16 %v4285_v48  ;;  %v2714_v59 = vunpack.i.l.bf16 %v4285_v48  ;;  %v2710_v52 = vunpack.i.h.bf16 %v2708_v36  ;;  %v2709_v45 = vunpack.i.l.bf16 %v2708_v36 }
  0xff   :  { %6647 = vst [vmem:[#allocation58_spill] sm:$0xff] %v4349_v51  ;;  %vm1453_vm13 = vcmp.eq.s32.totalorder %v4349_v51, 127  ;;  %v3047_v63 = vpop.eup %3046  ;;  %vm1356_vm14 = vcmp.eq.s32.totalorder %v4349_v51, 0  ;;  %v2705_v43 = vunpack.i.h.bf16 %v4287_v49  ;;  %v2730_v54 = vunpack.i.h.bf16 %v2728_v20 }
 0x100   :  { %v4358_v25 = vpop.eup %3048  ;;  %v2725_v22 = vunpack.i.h.bf16 %v2723_v0  ;;  %v388_v18 = vmul.f32 1.442695, %v333_v17  ;;  %v610_v39 = vmul.f32 1.442695, %v556_v56  ;;  %v2704_v21 = vunpack.i.l.bf16 %v4287_v49 }
 0x101   :  { %6648 = vst [vmem:[#allocation59_spill] sm:$0xff] %v4358_v25  ;;  %v4362_v46 = vpop.eup %3050  ;;  %v1520_v26 = vsel %vm1453_vm13, 1.0, %v2720_v32  ;;  %v1019_v48 = vmul.f32 0.6931472, %v3047_v63  ;;  %v780_v36 = vsub.f32 %v4039_v47, %v4312_v50  ;;  %v781_v28 = vsub.f32 %v4041_v16, %v4320_v38 }
 0x102   :  { %6649 = vst [vmem:[#allocation60_spill] sm:$0xff] %v4362_v46  ;;  %v1519_v23 = vsel %vm1453_vm13, 1.0, %v2719_v37  ;;  %v4373_v29 = vpop.eup %3052  ;;  %v1423_v17 = vsel %vm1356_vm14, 1.0, %v2715_v6  ;;  %v1422_v49 = vsel %vm1356_vm14, 1.0, %v2714_v59  ;;  %v1521_v56 = vsel %vm1453_vm13, 1.0, %v2710_v52 }
 0x103   :  { %6650 = vst [vmem:[#allocation61_spill] sm:$0xff] %v4373_v29  ;;  %v1518_v47 = vsel %vm1453_vm13, 1.0, %v2709_v45  ;;  %v1424_v16 = vsel %vm1356_vm14, 1.0, %v2705_v43  ;;  %v1552_v32 = vmin.f32 %v1423_v17, %v1520_v26  ;;  %v1523_v37 = vsel %vm1453_vm13, 1.0, %v2730_v54 }
 0x104   :  { %v1426_v63 = vsel %vm1356_vm14, 1.0, %v2725_v22  ;;  %v1421_v6 = vsel %vm1356_vm14, 1.0, %v2704_v21  ;;  %v1551_v59 = vmin.f32 %v1422_v49, %v1519_v23  ;;  %v2729_v38 = vunpack.i.l.bf16 %v2728_v20  ;;  %v6657_v21 = vld [vmem:[#allocation15_spill] sm:$0xff]  ;;  %v6668_v49 = vld [vmem:[#allocation20_spill] sm:$0xff] }
 0x105   :  { %v2724_v50 = vunpack.i.l.bf16 %v2723_v0  ;;  %v4391_v52 = vpop.eup %3054  ;;  %3064 = vpow2.f32 %v832_v35  ;;  %v612_v45 = vmul.f32 1.442695, %v557_v44  ;;  %v1550_v29 = vmin.f32 %v1421_v6, %v1518_v47  ;;  %v2738_v44 = vpop.permute.xlu1 %2737 }
 0x106   :  { %6651 = vst [vmem:[#allocation62_spill] sm:$0xff] %v4391_v52  ;;  %v1553_v46 = vmin.f32 %v1424_v16, %v1521_v56  ;;  %v4393_v43 = vpop.eup %3056  ;;  %v4396_v26 = vadd.f32 %v1017_v9, %v4005_v57  ;;  %3066 = vpow2.f32 %v386_v15  ;;  %v834_v54 = vmul.f32 1.442695, %v780_v36  ;;  %v6672_v16 = vld [vmem:[#allocation18_spill] sm:$0xff] }
 0x107   :  { %6652 = vst [vmem:[#allocation63_spill] sm:$0xff] %v4393_v43  ;;  %v1555_v22 = vmin.f32 %v1426_v63, %v1523_v37  ;;  %v4398_v17 = vpop.eup %3058  ;;  %v4401_v23 = vadd.f32 %v1019_v48, %v4036_v14  ;;  %3068 = vpow2.f32 %v388_v18  ;;  %v836_v20 = vmul.f32 1.442695, %v781_v28  ;;  %v6659_v28 = vld [vmem:[#allocation16_spill] sm:$0xff]  ;;  %v2733_v63 = vpop.permute.xlu0 %2732  ;;  %v6667_v37 = vld [vmem:[#allocation17_spill] sm:$0xff] }
 0x108   :  { %6653 = vst [vmem:[#allocation64_spill] sm:$0xff] %v4396_v26  ;;  %6654 = vst [vmem:[#allocation65_spill] sm:$0xff] %v4398_v17  ;;  %v4404_v35 = vmin.f32 %v3358_v7, %v1552_v32  ;;  %v4406_v0 = vpop.eup %3060  ;;  %3070 = vpow2.f32 %v610_v39  ;;  %v4409_v57 = vmin.f32 %v6657_v21, %v1551_v59  ;;  %v1522_v9 = vsel %vm1453_vm13, 1.0, %v2729_v38 }
 0x109   :  { %6655 = vst [vmem:[#allocation66_spill] sm:$0xff] %v4401_v23  ;;  %6656 = vst [vmem:[#allocation67_spill] sm:$0xff] %v4406_v0  ;;  %v1425_v15 = vsel %vm1356_vm14, 1.0, %v2724_v50  ;;  %v4417_v14 = vadd.f32 %v4339_v12, %v4335_v19  ;;  %3072 = vpow2.f32 %v612_v45  ;;  %v4420_v18 = vmin.f32 %v6659_v28, %v1550_v29 }
 0x10a   :  { %v4423_v48 = vmin.f32 %v3410_v34, %v1553_v46  ;;  %v4425_v39 = vpop.eup %3062  ;;  %3074 = vpow2.f32 %v834_v54  ;;  %v4430_v38 = vmin.f32 %v3456_v61, %v1555_v22  ;;  %v2740_v50 = vunpack.i.h.bf16 %v2738_v44 }
 0x10b   :  { %6658 = vst [vmem:[#allocation15_spill] sm:$0xff] %v4417_v14  ;;  %6660 = vst [vmem:[#allocation16_spill] sm:$0xff] %v4425_v39  ;;  %3076 = vpow2.f32 %v836_v20  ;;  %v1554_v29 = vmin.f32 %v1425_v15, %v1522_v9  ;;  %v2739_v47 = vunpack.i.l.bf16 %v2738_v44  ;;  %v6661_v54 = vrot.slane %v3453_v60, 7  ;;  %v6673_v15 = vld [vmem:[#allocation19_spill] sm:$0xff] }
 0x10c   :  { %v4445_v59 = vsel %vm1453_vm13, 1.0, %v2740_v50  ;;  %v6662_v22 = vrot.slane %v3610_v27, 7  ;;  %v6663_v19 = vrot.slane %v3456_v61, 7  ;;  %v2269_v46 = vrot.slane %v6667_v37, 7 }
 0x10d   :  { %v4456_v9 = vmin.f32 %v3453_v60, %v1554_v29  ;;  %v6664_v50 = vmov %v6661_v54  ;;  %v4467_v12 = vsel %vm1453_vm13, 1.0, %v2739_v47  ;;  %v1700_v32 = vsel %vm1619_vm6, 1.0, %v4106_v58 }
 0x10e   :  { %v1681_v20 = vsel %vm1655_vm15, %v6662_v22, %v6661_v54  ;;  %v1673_v36 = vsel %vm1655_vm15, %v6664_v50, %v6663_v19  ;;  %v6665_v54 = vrot.slane %v3666_v8, 7  ;;  %v6666_v22 = vrot.slane %v3659_v62, 7 }
 0x10f   :  { %v6670_v19 = vrot.slane %v3731_v3, 7  ;;  %v1692_v50 = vsel %vm1619_vm6, 1.0, %v1681_v20  ;;  %v2282_v6 = vrot.slane %v6672_v16, 1  ;;  %v2735_v14 = vunpack.i.h.bf16 %v2733_v63 }
 0x110   :  { %v4475_v29 = vsel %vm1655_vm15, %v6666_v22, %v6665_v54  ;;  %v6669_v44 = vmov %v6666_v22  ;;  %v1732_v54 = vrot.slane %v6657_v21, 1  ;;  %v2734_v58 = vunpack.i.l.bf16 %v2733_v63 }
 0x111   :  { %v1682_v47 = vsel %vm1655_vm15, %v6670_v19, %v6669_v44  ;;  %v6676_v26 = vrot.slane %v6668_v49, 7  ;;  %v6678_v20 = vrot.slane %v3554_v10, 1  ;;  %v6679_v63 = vrot.slane %v3456_v61, 1 }
 0x112   :  { %v4491_v22 = vpop.eup %3064  ;;  %v1696_v31 = vsel %vm1619_vm6, 1.0, %v1682_v47  ;;  %v6680_v47 = vrot.slane %v3720_v33, 1  ;;  %v6681_v45 = vrot.slane %v3666_v8, 1  ;;  %v6692_v17 = vrot.slane %v3410_v34, 7 }
 0x113   :  { %6671 = vst [vmem:[#allocation17_spill] sm:$0xff] %v4491_v22  ;;  %v4496_v1 = vpop.eup %3066  ;;  %v2276_v56 = vsel %vm1655_vm15, %v6676_v26, %v2269_v46  ;;  %v1623_v22 = vrot.slane %v6659_v28, 7  ;;  %v1766_v19 = vsel %vm1756_vm0, %v6679_v63, %v6678_v20  ;;  %v6682_v26 = vmov %v6679_v63 }
 0x114   :  { %6674 = vst [vmem:[#allocation20_spill] sm:$0xff] %v4496_v1  ;;  %v4501_v23 = vpop.eup %3068  ;;  %v1767_v39 = vsel %vm1756_vm0, %v6681_v45, %v6680_v47  ;;  %v1833_v1 = vmin.f32 %v1700_v32, %v4100_v53  ;;  %v1834_v20 = vmin.f32 %v4094_v30, %v4110_v55  ;;  %v6685_v63 = vrot.slane %v6672_v16, 7 }
 0x115   :  { %6675 = vst [vmem:[#allocation18_spill] sm:$0xff] %v4501_v23  ;;  %v4511_v44 = vpop.eup %3070  ;;  %v6683_v23 = vrot.slane %v3453_v60, 1  ;;  %v6686_v45 = vrot.slane %v6673_v15, 1  ;;  %v2277_v53 = vsel %vm1619_vm6, 1.0, %v2276_v56  ;;  %v6688_v30 = vrot.slane %v6667_v37, 1 }
 0x116   :  { %6677 = vst [vmem:[#allocation19_spill] sm:$0xff] %v4511_v44  ;;  %v4532_v0 = vpop.eup %3072  ;;  %v2275_v43 = vsel %vm1655_vm15, %v2269_v46, %v6685_v63  ;;  %v2149_v32 = vsel %vm1356_vm14, 1.0, %v2734_v58  ;;  %v6694_v58 = vrot.slane %v4456_v9, 7 }
 0x117   :  { %v1774_v44 = vsel %vm1756_vm0, %v6683_v23, %v6682_v26  ;;  %6684 = vst [vmem:[#allocation68_spill] sm:$0xff] %v4532_v0  ;;  %v2286_v47 = vsel %vm1756_vm0, %v2282_v6, %v6686_v45  ;;  %v2150_v23 = vsel %vm1356_vm14, 1.0, %v2735_v14  ;;  %v4546_v26 = vpop.eup %3074  ;;  %v2287_v55 = vsel %vm1756_vm0, %v6688_v30, %v2282_v6 }
 0x118   :  { %6687 = vst [vmem:[#allocation69_spill] sm:$0xff] %v4546_v26  ;;  %v4557_v63 = vpop.eup %3076  ;;  %v6690_v45 = vrot.slane %v3666_v8, 1  ;;  %v6691_v14 = vrot.slane %v3659_v62, 1  ;;  %v1825_v56 = vmin.f32 %v1692_v50, %v1774_v44  ;;  %v1826_v0 = vmin.f32 %v1673_v36, %v1766_v19 }
 0x119   :  { %6689 = vst [vmem:[#allocation70_spill] sm:$0xff] %v4557_v63  ;;  %v1680_v6 = vsel %vm1655_vm15, %v6692_v17, %v1623_v22  ;;  %v6693_v30 = vrot.slane %v4430_v38, 7  ;;  %v1837_v63 = vmin.f32 %v4326_v41, %v4166_v24  ;;  %v2294_v52 = vmin.f32 %v2275_v43, %v2286_v47 }
 0x11a   :  { %v1775_v26 = vsel %vm1756_vm0, %v6691_v14, %v6690_v45  ;;  %v2166_v50 = vmin.f32 %v2150_v23, %v4445_v59  ;;  %v6695_v36 = vrot.slane %v3358_v7, 1  ;;  %v2293_v17 = vmin.f32 %v2277_v53, %v2287_v55 }
 0x11b   :  { %v4575_v46 = vsel %vm1655_vm15, %v6694_v58, %v6693_v30  ;;  %v6696_v19 = vrot.slane %v6657_v21, 7  ;;  %v2165_v14 = vmin.f32 %v2149_v32, %v4467_v12  ;;  %v4590_v30 = vmin.f32 %v3779_v13, %v1833_v1  ;;  %v6846_v51 = vld [vmem:[#allocation20_spill] sm:$0xff] }
 0x11c   :  { %v1765_v44 = vsel %vm1756_vm0, %v1732_v54, %v6695_v36  ;;  %v4593_v24 = vmin.f32 %v3782_v5, %v1834_v20  ;;  %v1688_v41 = vsel %vm1619_vm6, 1.0, %v1680_v6  ;;  %v6699_v43 = vrot.slane %v6659_v28, 1 }
 0x11d   :  { %v1672_v45 = vsel %vm1655_vm15, %v1623_v22, %v6696_v19  ;;  %6697 = vst [vmem:[#allocation71_spill] sm:$0xff] %v4590_v30  ;;  %v1829_v47 = vmin.f32 %v1696_v31, %v1775_v26  ;;  %v1830_v23 = vmin.f32 %v4475_v29, %v1767_v39  ;;  %v1857_v22 = vmin.f32 %v3453_v60, %v1825_v56 }
 0x11e   :  { %6698 = vst [vmem:[#allocation72_spill] sm:$0xff] %v4593_v24  ;;  %v1773_v59 = vsel %vm1756_vm0, %v6699_v43, %v1732_v54  ;;  %v1858_v12 = vmin.f32 %v3456_v61, %v1826_v0  ;;  %v4605_v1 = vmin.f32 %v3914_v11, %v1837_v63  ;;  %v2298_v20 = vmin.f32 %v6672_v16, %v2294_v52 }
 0x11f   :  { %v2170_v53 = vmin.f32 %v6672_v16, %v2166_v50  ;;  %v1822_v55 = vmin.f32 %v1672_v45, %v1765_v44  ;;  %v2297_v32 = vmin.f32 %v6667_v37, %v2293_v17  ;;  %v1821_v6 = vmin.f32 %v1688_v41, %v1773_v59 }
 0x120   :  { %6700 = vst [vmem:[#allocation73_spill] sm:$0xff] %v4605_v1  ;;  %v6701_v54 = vrot.slane %v4420_v18, 7  ;;  %v6702_v31 = vrot.slane %v4423_v48, 7  ;;  %v2169_v0 = vmin.f32 %v6667_v37, %v2165_v14  ;;  %v6703_v29 = vrot.slane %v4430_v38, 1 }
 0x121   :  { %v6704_v26 = vrot.slane %v4456_v9, 1  ;;  %v6705_v63 = vrot.slane %v4404_v35, 1  ;;  %v6706_v56 = vrot.slane %v4409_v57, 1  ;;  %v2341_v50 = vmin.f32 %v1857_v22, %v4590_v30 }
 0x122   :  { %v1941_v39 = vsel %vm1655_vm15, %v6702_v31, %v6701_v54  ;;  %v2342_v36 = vmin.f32 %v1858_v12, %v4593_v24  ;;  %v4634_v44 = vmin.f32 %v3659_v62, %v1829_v47  ;;  %v4637_v17 = vmin.f32 %v3666_v8, %v1830_v23 }
 0x123   :  { %v4623_v52 = vsel %vm1756_vm0, %v6704_v26, %v6703_v29  ;;  %v2021_v58 = vsel %vm1756_vm0, %v6706_v56, %v6705_v63  ;;  %v6708_v19 = vrot.slane %v4409_v57, 7  ;;  %v6709_v45 = vmov %v6701_v54  ;;  %v2748_v29 = vpop.permute.xlu1 %2747 }
 0x124   :  { %6707 = vst [vmem:[#allocation74_spill] sm:$0xff] %v4637_v17  ;;  %v6710_v41 = vmov %v6706_v56  ;;  %v6711_v43 = vrot.slane %v4420_v18, 1  ;;  %v2334_v54 = vmin.f32 %v2298_v20, %v1858_v12  ;;  %v1854_v47 = vmin.f32 %v6657_v21, %v1822_v55 }
 0x125   :  { %v1933_v14 = vsel %vm1655_vm15, %v6709_v45, %v6708_v19  ;;  %v1949_v23 = vsel %vm1619_vm6, 1.0, %v1941_v39  ;;  %v2206_v31 = vmin.f32 %v2170_v53, %v4430_v38  ;;  %v2333_v26 = vmin.f32 %v2297_v32, %v1857_v22 }
 0x126   :  { %v2029_v59 = vsel %vm1756_vm0, %v6711_v43, %v6710_v41  ;;  %v1853_v56 = vmin.f32 %v6659_v28, %v1821_v6  ;;  %v2205_v19 = vmin.f32 %v2169_v0, %v4456_v9  ;;  %v4660_v45 = vmin.f32 %v4634_v44, %v2341_v50  ;;  %v2743_v50 = vpop.permute.xlu0 %2742 }
 0x127   :  { %v4663_v20 = vmin.f32 %v4637_v17, %v2342_v36  ;;  %v2078_v55 = vmin.f32 %v1933_v14, %v2021_v58  ;;  %v6500_v39 = vrot.slane %v3358_v7, 7  ;;  %v2077_v41 = vmin.f32 %v1949_v23, %v2029_v59 }
 0x128   :  { %6712 = vst [vmem:[#allocation75_spill] sm:$0xff] %v4660_v45  ;;  %v2750_v53 = vunpack.i.h.bf16 %v2748_v29  ;;  %v2749_v43 = vunpack.i.l.bf16 %v2748_v29  ;;  %v1748_v32 = vrot.slane %v3410_v34, 1  ;;  %v2238_v63 = vmin.f32 %v4409_v57, %v2206_v31  ;;  %v2758_v45 = vpop.permute.xlu1 %2757 }
 0x129   :  { %6713 = vst [vmem:[#allocation76_spill] sm:$0xff] %v4663_v20  ;;  %v2337_v6 = vmin.f32 %v1853_v56, %v4634_v44  ;;  %v2338_v0 = vmin.f32 %v1854_v47, %v4637_v17  ;;  %v2366_v24 = vmin.f32 %v1854_v47, %v2334_v54  ;;  %v2237_v25 = vmin.f32 %v4420_v18, %v2205_v19 }
 0x12a   :  { %v2365_v36 = vmin.f32 %v1853_v56, %v2333_v26  ;;  %v6714_v58 = vrot.slane %v3554_v10, 7  ;;  %v6715_v14 = vrot.slane %v3456_v61, 7  ;;  %v6716_v23 = vrot.slane %v3610_v27, 1 }
 0x12b   :  { %v6717_v31 = vrot.slane %v3554_v10, 1  ;;  %v6718_v54 = vrot.slane %v6657_v21, 7  ;;  %v6719_v26 = vrot.slane %v3720_v33, 7  ;;  %v6720_v61 = vrot.slane %v3666_v8, 7 }
 0x12c   :  { %v1665_v59 = vsel %vm1655_vm15, %v6715_v14, %v6714_v58  ;;  %v6721_v19 = vrot.slane %v3731_v3, 1  ;;  %v6722_v58 = vrot.slane %v3720_v33, 1  ;;  %v6723_v21 = vrot.slane %v3358_v7, 1 }
 0x12d   :  { %v1758_v29 = vsel %vm1756_vm0, %v6717_v31, %v6716_v23  ;;  %v1664_v47 = vsel %vm1655_vm15, %v6718_v54, %v6500_v39  ;;  %v1666_v56 = vsel %vm1655_vm15, %v6720_v61, %v6719_v26  ;;  %v2271_v23 = vrot.slane %v6673_v15, 7 }
 0x12e   :  { %v1759_v14 = vsel %vm1756_vm0, %v6722_v58, %v6721_v19  ;;  %v1757_v31 = vsel %vm1756_vm0, %v6723_v21, %v1748_v32  ;;  %v2284_v54 = vrot.slane %v6668_v49, 1  ;;  %v2745_v39 = vunpack.i.h.bf16 %v2743_v50 }
 0x12f   :  { %v2744_v17 = vunpack.i.l.bf16 %v2743_v50  ;;  %v2109_v26 = vmin.f32 %v4420_v18, %v2077_v41  ;;  %v2110_v61 = vmin.f32 %v4409_v57, %v2078_v55  ;;  %v2398_v40 = vmin.f32 %v2238_v63, %v2366_v24  ;;  %v2753_v63 = vpop.permute.xlu0 %2752 }
 0x130   :  { %v1827_v4 = vmin.f32 %v1665_v59, %v1758_v29  ;;  %v4709_v11 = vmin.f32 %v1858_v12, %v2338_v0  ;;  %v2397_v19 = vmin.f32 %v2237_v25, %v2365_v36  ;;  %v2163_v58 = vsel %vm1453_vm13, 1.0, %v2750_v53 }
 0x131   :  { %v1831_v20 = vmin.f32 %v1666_v56, %v1759_v14  ;;  %v4713_v30 = vmin.f32 %v1857_v22, %v2337_v6  ;;  %v1524_v21 = vsel %vm1453_vm13, 1.0, %v2749_v43  ;;  %v1823_v50 = vmin.f32 %v1664_v47, %v1757_v31 }
 0x132   :  { %v6724_v41 = vrot.slane %v6672_v16, 7  ;;  %v6725_v12 = vrot.slane %v6673_v15, 1  ;;  %v2151_v55 = vsel %vm1356_vm14, 1.0, %v2745_v39  ;;  %v1427_v22 = vsel %vm1356_vm14, 1.0, %v2744_v17 }
 0x133   :  { %v4730_v53 = vadd.s32 24, %v4031_v2  ;;  %v2430_v43 = vmin.f32 %v2110_v61, %v2398_v40  ;;  %v4733_v16 = vmin.f32 %v3554_v10, %v1827_v4  ;;  %v6727_v6 = vrot.slane %v4404_v35, 7 }
 0x134   :  { %v2274_v24 = vsel %vm1655_vm15, %v6724_v41, %v2271_v23  ;;  %v2285_v25 = vsel %vm1756_vm0, %v6725_v12, %v2284_v54  ;;  %v6728_v0 = vrot.slane %v4409_v57, 7  ;;  %v2759_v59 = vunpack.i.l.bf16 %v2758_v45 }
 0x135   :  { %6726 = vst [vmem:[#allocation77_spill] sm:$0xff] %v4730_v53  ;;  %v2429_v39 = vmin.f32 %v2109_v26, %v2397_v19  ;;  %v4744_v29 = vmin.f32 %v3720_v33, %v1831_v20  ;;  %v6730_v17 = vrot.slane %v3453_v60, 1  ;;  %v6731_v40 = vrot.slane %v3610_v27, 1 }
 0x136   :  { %v4741_v36 = vsel %vm1655_vm15, %v6728_v0, %v6727_v6  ;;  %v2754_v47 = vunpack.i.l.bf16 %v2753_v63  ;;  %v2295_v56 = vmin.f32 %v2274_v24, %v2285_v25  ;;  %v2167_v14 = vmin.f32 %v2151_v55, %v2163_v58 }
 0x137   :  { %6729 = vst [vmem:[#allocation78_spill] sm:$0xff] %v4744_v29  ;;  %v1782_v4 = vsel %vm1756_vm0, %v6731_v40, %v6730_v17  ;;  %v1556_v31 = vmin.f32 %v1427_v22, %v1524_v21  ;;  %v6732_v61 = vrot.slane %v6667_v37, 1  ;;  %v1855_v26 = vmin.f32 %v3358_v7, %v1823_v50  ;;  %v2768_v40 = vpop.permute.xlu1 %2767 }
 0x138   :  { %v2760_v20 = vunpack.i.h.bf16 %v2758_v45  ;;  %vm6565_vm1 = vcmp.eq.s32.totalorder %v4730_v53, 31  ;;  %v2755_v60 = vunpack.i.h.bf16 %v2753_v63  ;;  %v2343_v19 = vmin.f32 %v4733_v16, %v4113_v42  ;;  %v6812_v53 = vld [vmem:[#allocation38_spill] sm:$0xff] }
 0x139   :  { %v2288_v41 = vsel %vm1756_vm0, %v2284_v54, %v6732_v61  ;;  %v1525_v12 = vsel %vm1453_vm13, 1.0, %v2759_v59  ;;  %v6733_v58 = vrot.slane %v3610_v27, 7  ;;  %v6734_v21 = vrot.slane %v3554_v10, 7 }
 0x13a   :  { %v1796_v54 = vsel %vm6565_vm1, 1.0, %v1782_v4  ;;  %v6735_v45 = vrot.slane %v6668_v49, 7  ;;  %v2292_v24 = vsel %vm6565_vm1, 1.0, %v2288_v41  ;;  %v1428_v63 = vsel %vm1356_vm14, 1.0, %v2754_v47  ;;  %v2763_v4 = vpop.permute.xlu0 %2762 }
 0x13b   :  { %v1657_v37 = vsel %vm1655_vm15, %v6734_v21, %v6733_v58  ;;  %v6736_v25 = vrot.slane %v6659_v28, 1  ;;  %v2299_v22 = vmin.f32 %v6673_v15, %v2295_v56  ;;  %v2171_v6 = vmin.f32 %v6673_v15, %v2167_v14 }
 0x13c   :  { %v2273_v50 = vsel %vm1655_vm15, %v2271_v23, %v6735_v45  ;;  %v4785_v0 = vmin.f32 %v3554_v10, %v1556_v31  ;;  %v6737_v23 = vrot.slane %v4423_v48, 1  ;;  %v6738_v59 = vrot.slane %v4404_v35, 1 }
 0x13d   :  { %v1781_v55 = vsel %vm1756_vm0, %v1748_v32, %v6736_v25  ;;  %v2164_v28 = vsel %vm1453_vm13, 1.0, %v2760_v20  ;;  %v6739_v32 = vrot.slane %v3410_v34, 7  ;;  %v6740_v47 = vrot.slane %v3358_v7, 7 }
 0x13e   :  { %v2013_v17 = vsel %vm1756_vm0, %v6738_v59, %v6737_v23  ;;  %v6741_v15 = vrot.slane %v3659_v62, 1  ;;  %v6742_v56 = vrot.slane %v3731_v3, 1  ;;  %v2152_v31 = vsel %vm1356_vm14, 1.0, %v2755_v60 }
 0x13f   :  { %v1656_v10 = vsel %vm1655_vm15, %v6740_v47, %v6739_v32  ;;  %v1828_v61 = vmin.f32 %v1657_v37, %v1796_v54  ;;  %v2296_v41 = vmin.f32 %v2273_v50, %v2292_v24  ;;  %v1557_v20 = vmin.f32 %v1428_v63, %v1525_v12  ;;  %v2778_v63 = vpop.permute.xlu1 %2777 }
 0x140   :  { %v1783_v14 = vsel %vm1756_vm0, %v6742_v56, %v6741_v15  ;;  %v1792_v58 = vsel %vm6565_vm1, 1.0, %v1781_v55  ;;  %v2770_v7 = vunpack.i.h.bf16 %v2768_v40  ;;  %v2769_v21 = vunpack.i.l.bf16 %v2768_v40  ;;  %v2773_v55 = vpop.permute.xlu0 %2772 }
 0x141   :  { %v2765_v45 = vunpack.i.h.bf16 %v2763_v4  ;;  %v2764_v25 = vunpack.i.l.bf16 %v2763_v4  ;;  %v4811_v23 = vadd.f32 %v2430_v43, %v2429_v39  ;;  %v2335_v59 = vmin.f32 %v2299_v22, %v4733_v16 }
 0x142   :  { %v2339_v32 = vmin.f32 %v1855_v26, %v4744_v29  ;;  %v2168_v47 = vmin.f32 %v2152_v31, %v2164_v28  ;;  %v2079_v15 = vmin.f32 %v4741_v36, %v2013_v17  ;;  %v2207_v60 = vmin.f32 %v2171_v6, %v4785_v0 }
 0x143   :  { %v6743_v12 = vrot.slane %v3731_v3, 7  ;;  %v6744_v37 = vrot.slane %v3720_v33, 7  ;;  %v1800_v43 = vsel %vm6565_vm1, 1.0, %v1783_v14  ;;  %v4826_v39 = vmin.f32 %v3610_v27, %v1828_v61 }
 0x144   :  { %v2300_v50 = vmin.f32 %v6668_v49, %v2296_v41  ;;  %v4830_v24 = vmin.f32 %v3610_v27, %v1557_v20  ;;  %v1824_v36 = vmin.f32 %v1656_v10, %v1792_v58  ;;  %v1527_v22 = vsel %vm1453_vm13, 1.0, %v2770_v7 }
 0x145   :  { %v1658_v54 = vsel %vm1655_vm15, %v6744_v37, %v6743_v12  ;;  %6745 = vst [vmem:[#allocation79_spill] sm:$0xff] %v4826_v39  ;;  %v1526_v6 = vsel %vm1453_vm13, 1.0, %v2769_v21  ;;  %v1430_v17 = vsel %vm1356_vm14, 1.0, %v2765_v45  ;;  %v1429_v40 = vsel %vm1356_vm14, 1.0, %v2764_v25 }
 0x146   :  { %v2367_v4 = vmin.f32 %v1855_v26, %v2335_v59  ;;  %v4841_v28 = vmin.f32 %v4733_v16, %v2339_v32  ;;  %v1998_v27 = vrot.slane %v4785_v0, 1  ;;  %v2172_v10 = vmin.f32 %v6668_v49, %v2168_v47 }
 0x147   :  { %v2239_v56 = vmin.f32 %v4404_v35, %v2207_v60  ;;  %v1832_v14 = vmin.f32 %v1658_v54, %v1800_v43  ;;  %v2780_v31 = vunpack.i.h.bf16 %v2778_v63  ;;  %v2775_v61 = vunpack.i.h.bf16 %v2773_v55 }
 0x148   :  { %v1902_v41 = vrot.slane %v4785_v0, 7  ;;  %v6746_v20 = vrot.slane %v4420_v18, 1  ;;  %v6747_v58 = vrot.slane %v4423_v48, 1  ;;  %v1559_v7 = vmin.f32 %v1430_v17, %v1527_v22 }
 0x149   :  { %v1558_v21 = vmin.f32 %v1429_v40, %v1526_v6  ;;  %v2336_v45 = vmin.f32 %v2300_v50, %v4826_v39  ;;  %v1856_v49 = vmin.f32 %v3410_v34, %v1824_v36  ;;  %v1910_v25 = vrot.slane %v4830_v24, 7 }
 0x14a   :  { %v2037_v26 = vsel %vm1756_vm0, %v6747_v58, %v6746_v20  ;;  %v2006_v59 = vrot.slane %v4830_v24, 1  ;;  %v6748_v32 = vrot.slane %v4430_v38, 1  ;;  %v2208_v60 = vmin.f32 %v2172_v10, %v4830_v24 }
 0x14b   :  { %v2779_v12 = vunpack.i.l.bf16 %v2778_v63  ;;  %v2774_v37 = vunpack.i.l.bf16 %v2773_v55  ;;  %v2399_v54 = vmin.f32 %v2239_v56, %v2367_v4  ;;  %v4863_v43 = vmin.f32 %v3731_v3, %v1832_v14 }
 0x14c   :  { %v2022_v47 = vsel %vm1756_vm0, %v6748_v32, %v1998_v27  ;;  %v1529_v34 = vsel %vm1453_vm13, 1.0, %v2780_v31  ;;  %v1432_v50 = vsel %vm1356_vm14, 1.0, %v2775_v61  ;;  %v6750_v36 = vrot.slane %v4423_v48, 7  ;;  %v2783_v32 = vpop.permute.xlu0 %2782 }
 0x14d   :  { %6749 = vst [vmem:[#allocation80_spill] sm:$0xff] %v4863_v43  ;;  %v6751_v22 = vrot.slane %v4404_v35, 7  ;;  %v2048_v63 = vsel %vm6565_vm1, 1.0, %v2037_v26  ;;  %v4878_v55 = vmin.f32 %v3666_v8, %v1559_v7  ;;  %v4881_v17 = vmin.f32 %v3659_v62, %v1558_v21 }
 0x14e   :  { %v2111_v40 = vmin.f32 %v4404_v35, %v2079_v15  ;;  %v6752_v4 = vrot.slane %v4456_v9, 7  ;;  %v6753_v56 = vrot.slane %v4456_v9, 1  ;;  %v2368_v31 = vmin.f32 %v1856_v49, %v2336_v45  ;;  %v2788_v45 = vpop.permute.xlu1 %2787 }
 0x14f   :  { %v1917_v6 = vsel %vm1655_vm15, %v6751_v22, %v6750_v36  ;;  %v2240_v61 = vmin.f32 %v4423_v48, %v2208_v60  ;;  %v1528_v8 = vsel %vm1453_vm13, 1.0, %v2779_v12  ;;  %v1561_v62 = vmin.f32 %v1432_v50, %v1529_v34 }
 0x150   :  { %v1942_v10 = vsel %vm1655_vm15, %v1910_v25, %v6752_v4  ;;  %v2038_v14 = vsel %vm1756_vm0, %v2006_v59, %v6753_v56  ;;  %v1431_v15 = vsel %vm1356_vm14, 1.0, %v2774_v37  ;;  %v6754_v20 = vrot.slane %v4430_v38, 7 }
 0x151   :  { %v2082_v26 = vmin.f32 %v4575_v46, %v2022_v47  ;;  %v2431_v7 = vmin.f32 %v2111_v40, %v2399_v54  ;;  %v2080_v21 = vmin.f32 %v1917_v6, %v2048_v63  ;;  %v4906_v60 = vsel %vm1655_vm15, %v1902_v41, %v1910_v25 }
 0x152   :  { %v4901_v58 = vsel %vm1655_vm15, %v6754_v20, %v1902_v41  ;;  %v2340_v12 = vmin.f32 %v1856_v49, %v4863_v43  ;;  %v2210_v37 = vmin.f32 %v4409_v57, %v4878_v55  ;;  %v2209_v34 = vmin.f32 %v4420_v18, %v4881_v17 }
 0x153   :  { %v1953_v50 = vsel %vm1619_vm6, 1.0, %v1942_v10  ;;  %v4917_v46 = vsel %vm1756_vm0, %v1998_v27, %v2006_v59  ;;  %v4921_v47 = vsel %vm6565_vm1, 1.0, %v2038_v14  ;;  %v1560_v41 = vmin.f32 %v1431_v15, %v1528_v8 }
 0x154   :  { %v2400_v25 = vmin.f32 %v2240_v61, %v2368_v31  ;;  %v4924_v49 = vmin.f32 %v3731_v3, %v1561_v62  ;;  %v2789_v57 = vunpack.i.l.bf16 %v2788_v45  ;;  %v2784_v54 = vunpack.i.l.bf16 %v2783_v32 }
 0x155   :  { %v2114_v18 = vmin.f32 %v4430_v38, %v2082_v26  ;;  %v2570_v36 = vadd.f32 %v4811_v23, %v2431_v7  ;;  %v2790_v22 = vunpack.i.h.bf16 %v2788_v45  ;;  %v2785_v6 = vunpack.i.h.bf16 %v2783_v32  ;;  %v2793_v45 = vpop.permute.xlu0 %2792 }
 0x156   :  { %v2083_v27 = vmin.f32 %v4901_v58, %v4917_v46  ;;  %v2112_v59 = vmin.f32 %v4423_v48, %v2080_v21  ;;  %v2241_v63 = vmin.f32 %v4456_v9, %v2209_v34  ;;  %v2242_v40 = vmin.f32 %v4430_v38, %v2210_v37  ;;  %v2798_v21 = vpop.permute.xlu1 %2797 }
 0x157   :  { %v2081_v3 = vmin.f32 %v1953_v50, %v4623_v52  ;;  %v2084_v4 = vmin.f32 %v4906_v60, %v4921_v47  ;;  %v4937_v10 = vmin.f32 %v4826_v39, %v2340_v12  ;;  %v4940_v23 = vmin.f32 %v3720_v33, %v1560_v41  ;;  %v6757_v47 = vld [vmem:[#allocation23_spill] sm:$0xff] }
 0x158   :  { %v2432_v56 = vmin.f32 %v2112_v59, %v2400_v25  ;;  %v1911_v14 = vrot.slane %v4924_v49, 7  ;;  %v1530_v31 = vsel %vm1453_vm13, 1.0, %v2789_v57  ;;  %v1433_v61 = vsel %vm1356_vm14, 1.0, %v2784_v54 }
 0x159   :  { %v1895_v52 = vrot.slane %v4878_v55, 7  ;;  %v1991_v8 = vrot.slane %v4878_v55, 1  ;;  %v1531_v62 = vsel %vm1453_vm13, 1.0, %v2790_v22  ;;  %v1434_v33 = vsel %vm1356_vm14, 1.0, %v2785_v6 }
 0x15a   :  { %v1887_v15 = vrot.slane %v4881_v17, 7  ;;  %v1983_v20 = vrot.slane %v4881_v17, 1  ;;  %v2401_v26 = vmin.f32 %v2241_v63, %v4713_v30  ;;  %v2402_v7 = vmin.f32 %v2242_v40, %v4709_v11 }
 0x15b   :  { %v2113_v32 = vmin.f32 %v4456_v9, %v2081_v3  ;;  %v2007_v12 = vrot.slane %v4924_v49, 1  ;;  %v2211_v37 = vmin.f32 %v4404_v35, %v4940_v23  ;;  %v1562_v34 = vmin.f32 %v1433_v61, %v1530_v31 }
 0x15c   :  { %v2571_v50 = vadd.f32 %v2570_v36, %v2432_v56  ;;  %v1943_v41 = vsel %vm1655_vm15, %v1911_v14, %v1887_v15  ;;  %v1999_v25 = vrot.slane %v4940_v23, 1  ;;  %v1563_v57 = vmin.f32 %v1434_v33, %v1531_v62 }
 0x15d   :  { %v1903_v30 = vrot.slane %v4940_v23, 7  ;;  %v2212_v11 = vmin.f32 %v4423_v48, %v4924_v49  ;;  %v2800_v54 = vunpack.i.h.bf16 %v2798_v21  ;;  %v2795_v22 = vunpack.i.h.bf16 %v2793_v45 }
 0x15e   :  { %v1935_v6 = vsel %vm1655_vm15, %v1887_v15, %v1895_v52  ;;  %v2031_v35 = vsel %vm1756_vm0, %v1983_v20, %v1991_v8  ;;  %v2433_v36 = vmin.f32 %v2113_v32, %v2401_v26  ;;  %v2434_v59 = vmin.f32 %v2114_v18, %v2402_v7  ;;  %v2808_v26 = vpop.permute.xlu1 %2807  ;;  %v2803_v7 = vpop.permute.xlu0 %2802 }
 0x15f   :  { %v1957_v63 = vsel %vm1619_vm6, 1.0, %v1943_v41  ;;  %v2039_v40 = vsel %vm1756_vm0, %v2007_v12, %v1983_v20  ;;  %v2243_v3 = vmin.f32 %v4785_v0, %v2211_v37  ;;  %v4977_v48 = vmin.f32 %v3779_v13, %v1562_v34 }
 0x160   :  { %v2023_v56 = vsel %vm1756_vm0, %v1991_v8, %v1999_v25  ;;  %v4982_v31 = vmin.f32 %v3782_v5, %v1563_v57  ;;  %v2799_v61 = vunpack.i.l.bf16 %v2798_v21  ;;  %v2794_v62 = vunpack.i.l.bf16 %v2793_v45  ;;  %v6756_v57 = vld [vmem:[#allocation71_spill] sm:$0xff] }
 0x161   :  { %v4986_v18 = vsel %vm1655_vm15, %v1903_v30, %v1911_v14  ;;  %v2244_v33 = vmin.f32 %v4830_v24, %v2212_v11  ;;  %v1533_v15 = vsel %vm1453_vm13, 1.0, %v2800_v54  ;;  %v1436_v20 = vsel %vm1356_vm14, 1.0, %v2795_v22 }
 0x162   :  { %v2572_v8 = vadd.f32 %v2571_v50, %v2433_v36  ;;  %v4995_v5 = vsel %vm1655_vm15, %v1895_v52, %v1903_v30  ;;  %v4999_v21 = vsel %vm1756_vm0, %v1999_v25, %v2007_v12  ;;  %v5003_v14 = vsel %vm6565_vm1, 1.0, %v2039_v40 }
 0x163   :  { %v2085_v45 = vmin.f32 %v1957_v63, %v2031_v35  ;;  %v2086_v32 = vmin.f32 %v1935_v6, %v2023_v56  ;;  %v2403_v37 = vmin.f32 %v2243_v3, %v4841_v28  ;;  %v2213_v34 = vmin.f32 %v4456_v9, %v4977_v48 }
 0x164   :  { %v2214_v50 = vmin.f32 %v4430_v38, %v4982_v31  ;;  %v1532_v52 = vsel %vm1453_vm13, 1.0, %v2799_v61  ;;  %v1565_v41 = vmin.f32 %v1436_v20, %v1533_v15  ;;  %v1435_v12 = vsel %vm1356_vm14, 1.0, %v2794_v62  ;;  %v6759_v20 = vld [vmem:[#allocation75_spill] sm:$0xff] }
 0x165   :  { %v6755_v25 = vmin.f32 %v4634_v44, %v4605_v1  ;;  %v5024_v9 = vmin.f32 %v4744_v29, %v2343_v19  ;;  %v2115_v38 = vmin.f32 %v4785_v0, %v2083_v27  ;;  %v2404_v28 = vmin.f32 %v2244_v33, %v4937_v10  ;;  %v2818_v27 = vpop.permute.xlu1 %2817  ;;  %v2813_v10 = vpop.permute.xlu0 %2812 }
 0x166   :  { %v2116_v44 = vmin.f32 %v4830_v24, %v2084_v4  ;;  %v2573_v11 = vadd.f32 %v2572_v8, %v2434_v59  ;;  %v2087_v54 = vmin.f32 %v4995_v5, %v4999_v21  ;;  %v2088_v16 = vmin.f32 %v4986_v18, %v5003_v14 }
 0x167   :  { %v5018_v30 = vmin.f32 %v6756_v57, %v6755_v25  ;;  %v2118_v19 = vmin.f32 %v4878_v55, %v2086_v32  ;;  %v2435_v22 = vmin.f32 %v2115_v38, %v2403_v37  ;;  %v2245_v58 = vmin.f32 %v4881_v17, %v2213_v34  ;;  %v6761_v34 = vld [vmem:[#allocation76_spill] sm:$0xff]  ;;  %v6809_v57 = vld [vmem:[#allocation37_spill] sm:$0xff] }
 0x168   :  { %v1564_v46 = vmin.f32 %v1435_v12, %v1532_v52  ;;  %v2117_v6 = vmin.f32 %v4881_v17, %v2085_v45  ;;  %v2246_v60 = vmin.f32 %v4878_v55, %v2214_v50  ;;  %v5044_v4 = vmin.f32 %v6757_v47, %v1565_v41  ;;  %v6760_v45 = vld [vmem:[#allocation22_spill] sm:$0xff]  ;;  %v5397_v47 = vld [vmem:[#allocation2 + $0x2e8] sm:$0xff] }
 0x169   :  { %v2810_v35 = vunpack.i.h.bf16 %v2808_v26  ;;  %v2436_v36 = vmin.f32 %v2116_v44, %v2404_v28  ;;  %v1896_v59 = vrot.slane %v4982_v31, 7  ;;  %v2809_v63 = vunpack.i.l.bf16 %v2808_v26  ;;  %6818 = vst [vmem:[#allocation119_spill] sm:$0xff] %v5397_v47 }
 0x16a   :  { %6758 = vst [vmem:[#allocation81_spill] sm:$0xff] %v5044_v4  ;;  %v2805_v40 = vunpack.i.h.bf16 %v2803_v7  ;;  %v1992_v3 = vrot.slane %v4982_v31, 1  ;;  %v2804_v56 = vunpack.i.l.bf16 %v2803_v7  ;;  %v2820_v61 = vunpack.i.h.bf16 %v2818_v27 }
 0x16b   :  { %v2815_v62 = vunpack.i.h.bf16 %v2813_v10  ;;  %v2574_v33 = vadd.f32 %v2573_v11, %v2435_v22  ;;  %v1888_v15 = vrot.slane %v4977_v48, 7  ;;  %v2405_v8 = vmin.f32 %v2245_v58, %v6759_v20 }
 0x16c   :  { %v5051_v32 = vmin.f32 %v6760_v45, %v1564_v46  ;;  %v1984_v37 = vrot.slane %v4977_v48, 1  ;;  %v2406_v50 = vmin.f32 %v2246_v60, %v6761_v34  ;;  %v1912_v26 = vrot.slane %v5044_v4, 7  ;;  %v6817_v45 = vld [vmem:[#allocation39_spill] sm:$0xff] }
 0x16d   :  { %v1535_v52 = vsel %vm1453_vm13, 1.0, %v2810_v35  ;;  %v1534_v7 = vsel %vm1453_vm13, 1.0, %v2809_v63  ;;  %v1438_v41 = vsel %vm1356_vm14, 1.0, %v2805_v40  ;;  %v2819_v12 = vunpack.i.l.bf16 %v2818_v27 }
 0x16e   :  { %v2814_v25 = vunpack.i.l.bf16 %v2813_v10  ;;  %v2008_v38 = vrot.slane %v5044_v4, 1  ;;  %v1437_v28 = vsel %vm1356_vm14, 1.0, %v2804_v56  ;;  %v1537_v44 = vsel %vm1453_vm13, 1.0, %v2820_v61 }
 0x16f   :  { %v1440_v11 = vsel %vm1356_vm14, 1.0, %v2815_v62  ;;  %v2575_v22 = vadd.f32 %v2574_v33, %v2436_v36  ;;  %v2437_v58 = vmin.f32 %v2117_v6, %v2405_v8  ;;  %v2000_v46 = vrot.slane %v5051_v32, 1 }
 0x170   :  { %v2215_v60 = vmin.f32 %v4785_v0, %v5051_v32  ;;  %v1936_v27 = vsel %vm1655_vm15, %v1888_v15, %v1896_v59  ;;  %v1904_v10 = vrot.slane %v5051_v32, 7  ;;  %v1944_v35 = vsel %vm1655_vm15, %v1912_v26, %v1888_v15 }
 0x171   :  { %v1567_v63 = vmin.f32 %v1438_v41, %v1535_v52  ;;  %v1566_v40 = vmin.f32 %v1437_v28, %v1534_v7  ;;  %v1536_v56 = vsel %vm1453_vm13, 1.0, %v2819_v12  ;;  %v1569_v36 = vmin.f32 %v1440_v11, %v1537_v44  ;;  %v6764_v12 = vld [vmem:[#allocation24_spill] sm:$0xff]  ;;  %v2823_v44 = vpop.permute.xlu0 %2822 }
 0x172   :  { %v1439_v6 = vsel %vm1356_vm14, 1.0, %v2814_v25  ;;  %v2032_v0 = vsel %vm1756_vm0, %v1984_v37, %v1992_v3  ;;  %v2438_v61 = vmin.f32 %v2118_v19, %v2406_v50  ;;  %v2040_v62 = vsel %vm1756_vm0, %v2008_v38, %v1984_v37  ;;  %v6762_v50 = vld [vmem:[#allocation25_spill] sm:$0xff]  ;;  %v6766_v25 = vld [vmem:[#allocation27_spill] sm:$0xff] }
 0x173   :  { %v2216_v33 = vmin.f32 %v4830_v24, %v5044_v4  ;;  %v2576_v15 = vadd.f32 %v2575_v22, %v2437_v58  ;;  %v1961_v20 = vsel %vm1619_vm6, 1.0, %v1944_v35  ;;  %v2024_v8 = vsel %vm1756_vm0, %v1992_v3, %v2000_v46 }
 0x174   :  { %v2247_v34 = vmin.f32 %v4940_v23, %v2215_v60  ;;  %v1928_v52 = vsel %vm1655_vm15, %v1896_v59, %v1904_v10  ;;  %v2016_v19 = vsel %vm1756_vm0, %v2000_v46, %v2008_v38  ;;  %v5097_v37 = vmin.f32 %v6762_v50, %v1567_v63  ;;  %v2828_v59 = vpop.permute.xlu1 %2827 }
 0x175   :  { %v1568_v7 = vmin.f32 %v1439_v6, %v1536_v56  ;;  %v1920_v24 = vsel %vm1655_vm15, %v1904_v10, %v1912_v26  ;;  %v2060_v41 = vsel %vm6565_vm1, 1.0, %v2040_v62  ;;  %v5104_v3 = vmin.f32 %v6764_v12, %v1566_v40 }
 0x176   :  { %6763 = vst [vmem:[#allocation75_spill] sm:$0xff] %v5097_v37  ;;  %v5107_v28 = vmin.f32 %v6766_v25, %v1569_v36  ;;  %v2119_v38 = vmin.f32 %v4940_v23, %v2087_v54  ;;  %v5117_v26 = vmin.f32 %v4924_v49, %v2088_v16  ;;  %v2089_v11 = vmin.f32 %v1961_v20, %v2032_v0  ;;  %v6770_v54 = vld [vmem:[#allocation26_spill] sm:$0xff] }
 0x177   :  { %6765 = vst [vmem:[#allocation76_spill] sm:$0xff] %v5104_v3  ;;  %v2090_v22 = vmin.f32 %v1936_v27, %v2024_v8  ;;  %v2577_v58 = vadd.f32 %v2576_v15, %v2438_v61  ;;  %v2091_v46 = vmin.f32 %v1928_v52, %v2016_v19  ;;  %v5120_v60 = vmin.f32 %v4924_v49, %v2216_v33  ;;  %v2833_v33 = vpop.permute.xlu0 %2832 }
 0x178   :  { %6767 = vst [vmem:[#allocation82_spill] sm:$0xff] %v5107_v28  ;;  %6768 = vst [vmem:[#allocation83_spill] sm:$0xff] %v5117_v26  ;;  %v2407_v10 = vmin.f32 %v2247_v34, %v5024_v9  ;;  %v2092_v35 = vmin.f32 %v1920_v24, %v2060_v41  ;;  %v1897_v5 = vrot.slane %v5097_v37, 7  ;;  %v1993_v21 = vrot.slane %v5097_v37, 1  ;;  %v5333_v26 = vld [vmem:[#allocation2 + $0xf0] sm:$0xff] }
 0x179   :  { %6769 = vst [vmem:[#allocation84_spill] sm:$0xff] %v5120_v60  ;;  %v5126_v63 = vmin.f32 %v6770_v54, %v1568_v7  ;;  %v2217_v18 = vmin.f32 %v4881_v17, %v5104_v3  ;;  %v1913_v14 = vrot.slane %v5107_v28, 7  ;;  %v2830_v16 = vunpack.i.h.bf16 %v2828_v59  ;;  %v2838_v17 = vpop.permute.xlu1 %2837 }
 0x17a   :  { %v2825_v27 = vunpack.i.h.bf16 %v2823_v44  ;;  %v5132_v40 = vmin.f32 %v4982_v31, %v2090_v22  ;;  %v2121_v9 = vmin.f32 %v4977_v48, %v2089_v11  ;;  %v2829_v56 = vunpack.i.l.bf16 %v2828_v59 }
 0x17b   :  { %6771 = vst [vmem:[#allocation85_spill] sm:$0xff] %v5126_v63  ;;  %v2824_v36 = vunpack.i.l.bf16 %v2823_v44  ;;  %v2439_v6 = vmin.f32 %v2119_v38, %v2407_v10  ;;  %v1889_v0 = vrot.slane %v5104_v3, 7  ;;  %v1985_v61 = vrot.slane %v5104_v3, 1 }
 0x17c   :  { %6772 = vst [vmem:[#allocation86_spill] sm:$0xff] %v5132_v40  ;;  %v2218_v62 = vmin.f32 %v4878_v55, %v5097_v37  ;;  %v5140_v15 = vmin.f32 %v5051_v32, %v2091_v46  ;;  %v2009_v20 = vrot.slane %v5107_v28, 1  ;;  %v1905_v8 = vrot.slane %v5126_v63, 7  ;;  %v6799_v40 = vld [vmem:[#allocation34_spill] sm:$0xff] }
 0x17d   :  { %v2001_v34 = vrot.slane %v5126_v63, 1  ;;  %v2249_v52 = vmin.f32 %v4977_v48, %v2217_v18  ;;  %v1945_v19 = vsel %vm1655_vm15, %v1913_v14, %v1889_v0  ;;  %v1539_v7 = vsel %vm1453_vm13, 1.0, %v2830_v16 }
 0x17e   :  { %6773 = vst [vmem:[#allocation87_spill] sm:$0xff] %v5140_v15  ;;  %v1442_v55 = vsel %vm1356_vm14, 1.0, %v2825_v27  ;;  %v1538_v24 = vsel %vm1453_vm13, 1.0, %v2829_v56  ;;  %v1441_v41 = vsel %vm1356_vm14, 1.0, %v2824_v36  ;;  %v2840_v59 = vunpack.i.h.bf16 %v2838_v17  ;;  %v2848_v15 = vpop.permute.xlu1 %2847 }
 0x17f   :  { %v2835_v44 = vunpack.i.h.bf16 %v2833_v33  ;;  %v5157_v38 = vmin.f32 %v5044_v4, %v2092_v35  ;;  %v5159_v11 = vadd.f32 %v2577_v58, %v2439_v6  ;;  %v2033_v22 = vsel %vm1756_vm0, %v1985_v61, %v1993_v21 }
 0x180   :  { %v5164_v46 = vmin.f32 %v4982_v31, %v2218_v62  ;;  %v1929_v10 = vsel %vm1655_vm15, %v1897_v5, %v1905_v8  ;;  %v1965_v18 = vsel %vm1619_vm6, 1.0, %v1945_v19  ;;  %v2017_v16 = vsel %vm1756_vm0, %v2001_v34, %v2009_v20 }
 0x181   :  { %6774 = vst [vmem:[#allocation88_spill] sm:$0xff] %v5157_v38  ;;  %6775 = vst [vmem:[#allocation89_spill] sm:$0xff] %v5159_v11  ;;  %v1571_v27 = vmin.f32 %v1442_v55, %v1539_v7  ;;  %v2041_v58 = vsel %vm1756_vm0, %v2009_v20, %v1985_v61  ;;  %v1570_v35 = vmin.f32 %v1441_v41, %v1538_v24  ;;  %v2839_v56 = vunpack.i.l.bf16 %v2838_v17  ;;  %v6777_v20 = vld [vmem:[#allocation29_spill] sm:$0xff]  ;;  %v6779_v24 = vld [vmem:[#allocation28_spill] sm:$0xff] }
 0x182   :  { %6776 = vst [vmem:[#allocation90_spill] sm:$0xff] %v5164_v46  ;;  %v2834_v36 = vunpack.i.l.bf16 %v2833_v33  ;;  %v2409_v6 = vmin.f32 %v2249_v52, %v5018_v30  ;;  %v2220_v62 = vmin.f32 %v4924_v49, %v5107_v28  ;;  %v1541_v38 = vsel %vm1453_vm13, 1.0, %v2840_v59  ;;  %v6783_v59 = vld [vmem:[#allocation44_spill] sm:$0xff]  ;;  %v5303_v11 = vld [vmem:[#allocation2 + $0x1e0] sm:$0xff] }
 0x183   :  { %v1444_v19 = vsel %vm1356_vm14, 1.0, %v2835_v44  ;;  %v2025_v7 = vsel %vm1756_vm0, %v1993_v21, %v2001_v34  ;;  %v2093_v55 = vmin.f32 %v1965_v18, %v2033_v22  ;;  %v2095_v61 = vmin.f32 %v1929_v10, %v2017_v16 }
 0x184   :  { %v2219_v17 = vmin.f32 %v4940_v23, %v5126_v63  ;;  %v1937_v30 = vsel %vm1655_vm15, %v1889_v0, %v1897_v5  ;;  %v1921_v49 = vsel %vm1655_vm15, %v1905_v8, %v1913_v14  ;;  %v2064_v33 = vsel %vm6565_vm1, 1.0, %v2041_v58  ;;  %v2843_v8 = vpop.permute.xlu0 %2842  ;;  %v2858_v58 = vpop.permute.xlu1 %2857 }
 0x185   :  { %v5192_v52 = vmin.f32 %v6777_v20, %v1571_v27  ;;  %v5195_v41 = vmin.f32 %v6779_v24, %v1570_v35  ;;  %v1540_v21 = vsel %vm1453_vm13, 1.0, %v2839_v56  ;;  %v1573_v34 = vmin.f32 %v1444_v19, %v1541_v38 }
 0x186   :  { %v1443_v23 = vsel %vm1356_vm14, 1.0, %v2834_v36  ;;  %v5201_v5 = vmin.f32 %v2121_v9, %v2409_v6  ;;  %v2094_v0 = vmin.f32 %v1937_v30, %v2025_v7  ;;  %v5204_v14 = vmin.f32 %v5044_v4, %v2220_v62  ;;  %v6787_v6 = vld [vmem:[#allocation32_spill] sm:$0xff] }
 0x187   :  { %6778 = vst [vmem:[#allocation91_spill] sm:$0xff] %v5192_v52  ;;  %6780 = vst [vmem:[#allocation92_spill] sm:$0xff] %v5195_v41  ;;  %v2513_v44 = vadd.f32 %v6770_v54, %v6783_v59  ;;  %v2096_v22 = vmin.f32 %v1921_v49, %v2064_v33  ;;  %v5209_v10 = vmin.f32 %v5104_v3, %v2093_v55  ;;  %v6510_v9 = vrot.slane %v5192_v52, 1 }
 0x188   :  { %6781 = vst [vmem:[#allocation93_spill] sm:$0xff] %v5201_v5  ;;  %6782 = vst [vmem:[#allocation94_spill] sm:$0xff] %v5204_v14  ;;  %v5212_v18 = vmin.f32 %v5126_v63, %v2095_v61  ;;  %v5215_v38 = vmin.f32 %v5051_v32, %v2219_v17  ;;  %v2222_v16 = vmin.f32 %v4982_v31, %v5192_v52  ;;  %v6511_v56 = vrot.slane %v5195_v41, 1  ;;  %v5301_v14 = vld [vmem:[#allocation2 + $0xe0] sm:$0xff] }
 0x189   :  { %6784 = vst [vmem:[#allocation44_spill] sm:$0xff] %v5209_v10  ;;  %v1572_v27 = vmin.f32 %v1443_v23, %v1540_v21  ;;  %v2514_v35 = vadd.f32 %v6766_v25, %v2513_v44  ;;  %v2221_v36 = vmin.f32 %v4977_v48, %v5195_v41  ;;  %v5225_v62 = vmin.f32 %v6787_v6, %v1573_v34  ;;  %v6792_v34 = vld [vmem:[#allocation31_spill] sm:$0xff]  ;;  %v2853_v23 = vpop.permute.xlu0 %2852  ;;  %v5387_v25 = vld [vmem:[#allocation2 + $0x2e0] sm:$0xff] }
 0x18a   :  { %6785 = vst [vmem:[#allocation95_spill] sm:$0xff] %v5212_v18  ;;  %6786 = vst [vmem:[#allocation96_spill] sm:$0xff] %v5215_v38  ;;  %v2850_v19 = vunpack.i.h.bf16 %v2848_v15  ;;  %v2849_v7 = vunpack.i.l.bf16 %v2848_v15  ;;  %v2845_v55 = vunpack.i.h.bf16 %v2843_v8  ;;  %v2844_v61 = vunpack.i.l.bf16 %v2843_v8  ;;  %v5274_v48 = vld [vmem:[#allocation2 + $0x1c8] sm:$0xff]  ;;  %v5281_v18 = vld [vmem:[#allocation2 + $0xd0] sm:$0xff] }
 0x18b   :  { %6788 = vst [vmem:[#allocation97_spill] sm:$0xff] %v5225_v62  ;;  %v2515_v17 = vadd.f32 %v6779_v24, %v2514_v35  ;;  %v5229_v31 = vmin.f32 %v5097_v37, %v2094_v0  ;;  %v5232_v30 = vmin.f32 %v5107_v28, %v2096_v22  ;;  %v2860_v33 = vunpack.i.h.bf16 %v2858_v58  ;;  %6815 = vst [vmem:[#allocation117_spill] sm:$0xff] %v5387_v25 }
 0x18c   :  { %v5237_v21 = vmin.f32 %v5097_v37, %v2222_v16  ;;  %v5240_v15 = vmin.f32 %v6792_v34, %v1572_v27  ;;  %v5249_v0 = vsel %vm1756_vm0, %v6511_v56, %v6510_v9  ;;  %v5252_v59 = vmin.f32 %v5104_v3, %v2221_v36  ;;  %v5264_v9 = vld [vmem:[#allocation2 + $0xc0] sm:$0xff] }
 0x18d   :  { %6789 = vst [vmem:[#allocation98_spill] sm:$0xff] %v5229_v31  ;;  %6790 = vst [vmem:[#allocation99_spill] sm:$0xff] %v5232_v30  ;;  %v2516_v8 = vadd.f32 %v6777_v20, %v2515_v17  ;;  %v1543_v22 = vsel %vm1453_vm13, 1.0, %v2850_v19  ;;  %v1542_v16 = vsel %vm1453_vm13, 1.0, %v2849_v7  ;;  %v1446_v27 = vsel %vm1356_vm14, 1.0, %v2845_v55  ;;  %v5266_v36 = vld [vmem:[#allocation2 + $0x1c0] sm:$0xff] }
 0x18e   :  { %6791 = vst [vmem:[#allocation100_spill] sm:$0xff] %v5237_v21  ;;  %6793 = vst [vmem:[#allocation101_spill] sm:$0xff] %v5240_v15  ;;  %v1445_v35 = vsel %vm1356_vm14, 1.0, %v2844_v61  ;;  %v5270_v56 = vsel %vm1453_vm13, 1.0, %v2860_v33  ;;  %v2859_v19 = vunpack.i.l.bf16 %v2858_v58  ;;  %v2855_v49 = vunpack.i.h.bf16 %v2853_v23  ;;  %v5272_v7 = vld [vmem:[#allocation2 + $0xc8] sm:$0xff]  ;;  %v5283_v33 = vld [vmem:[#allocation2 + $0x1d0] sm:$0xff] }
 0x18f   :  { %6794 = vst [vmem:[#allocation102_spill] sm:$0xff] %v5249_v0  ;;  %6795 = vst [vmem:[#allocation103_spill] sm:$0xff] %v5252_v59  ;;  %v2517_v17 = vadd.f32 %v6792_v34, %v2516_v8  ;;  %v2854_v44 = vunpack.i.l.bf16 %v2853_v23  ;;  %v2223_v8 = vmin.f32 %v5051_v32, %v5240_v15  ;;  %v6797_v58 = vrot.slane %v5195_v41, 7  ;;  %v5291_v21 = vld [vmem:[#allocation2 + $0xd8] sm:$0xff]  ;;  %v5361_v0 = vld [vmem:[#allocation2 + $0x2c8] sm:$0xff] }
 0x190   :  { %6796 = vst [vmem:[#allocation104_spill] sm:$0xff] %v5270_v56  ;;  %v6798_v23 = vrot.slane %v5225_v62, 7  ;;  %v1575_v10 = vmin.f32 %v1446_v27, %v1543_v22  ;;  %v1574_v55 = vmin.f32 %v1445_v35, %v1542_v16  ;;  %v5293_v61 = vld [vmem:[#allocation2 + $0x1d8] sm:$0xff]  ;;  %v237_v32 = vmax.f32 %v5264_v9, %v5266_v36  ;;  %v5370_v62 = vld [vmem:[#allocation2 + $0x2d0] sm:$0xff] }
 0x191   :  { %v2518_v30 = vadd.f32 %v6787_v6, %v2517_v17  ;;  %v238_v22 = vmax.f32 %v5272_v7, %v5274_v48  ;;  %v5309_v16 = vsel %vm1453_vm13, 1.0, %v2859_v19  ;;  %v5313_v27 = vsel %vm1356_vm14, 1.0, %v2855_v49  ;;  %v2868_v49 = vpop.permute.xlu1 %2867  ;;  %v6805_v17 = vld [vmem:[#allocation36_spill] sm:$0xff]  ;;  %v5422_v15 = vld [vmem:[#allocation2 + $0x2f8] sm:$0xff] }
 0x192   :  { %v1946_v31 = vsel %vm1655_vm15, %v6798_v23, %v6797_v58  ;;  %6800 = vst [vmem:[#allocation105_spill] sm:$0xff] %v5309_v16  ;;  %6801 = vst [vmem:[#allocation106_spill] sm:$0xff] %v5313_v27  ;;  %v5317_v35 = vsel %vm1356_vm14, 1.0, %v2854_v44  ;;  %v5321_v58 = vld [vmem:[#allocation2 + $0x1e8] sm:$0xff]  ;;  %v239_v23 = vmax.f32 %v5281_v18, %v5283_v33  ;;  %v5330_v19 = vmin.f32 %v5126_v63, %v2223_v8  ;;  %v5335_v44 = vld [vmem:[#allocation2 + $0x1f0] sm:$0xff] }
 0x193   :  { %v2519_v59 = vadd.f32 %v6799_v40, %v2518_v30  ;;  %6802 = vst [vmem:[#allocation107_spill] sm:$0xff] %v5317_v35  ;;  %v5319_v30 = vld [vmem:[#allocation2 + $0xe8] sm:$0xff]  ;;  %v5327_v5 = vsel %vm1619_vm6, 1.0, %v1946_v31  ;;  %v240_v38 = vmax.f32 %v5291_v21, %v5293_v61  ;;  %v5340_v46 = vmin.f32 %v6805_v17, %v1575_v10  ;;  %v5345_v31 = vld [vmem:[#allocation2 + $0xf8] sm:$0xff]  ;;  %v2863_v10 = vpop.permute.xlu0 %2862  ;;  %v5408_v20 = vld [vmem:[#allocation2 + $0x2f0] sm:$0xff] }
 0x194   :  { %6803 = vst [vmem:[#allocation108_spill] sm:$0xff] %v5327_v5  ;;  %6804 = vst [vmem:[#allocation109_spill] sm:$0xff] %v5330_v19  ;;  %v5343_v1 = vmin.f32 %v6799_v40, %v1574_v55  ;;  %v5347_v8 = vld [vmem:[#allocation2 + $0x1f8] sm:$0xff]  ;;  %v5351_v19 = vld [vmem:[#allocation2 + $0x2c0] sm:$0xff]  ;;  %v242_v55 = vmax.f32 %v5319_v30, %v5321_v58  ;;  %v5364_v43 = vmax.f32 %v238_v22, %v5361_v0  ;;  %v2870_v39 = vunpack.i.h.bf16 %v2868_v49 }
 0x195   :  { %v2520_v4 = vadd.f32 %v6805_v17, %v2519_v59  ;;  %6806 = vst [vmem:[#allocation110_spill] sm:$0xff] %v5340_v46  ;;  %6808 = vst [vmem:[#allocation112_spill] sm:$0xff] %v5347_v8  ;;  %v241_v59 = vmax.f32 %v5301_v14, %v5303_v11  ;;  %v5354_v60 = vmax.f32 %v237_v32, %v5351_v19  ;;  %v5378_v22 = vld [vmem:[#allocation2 + $0x2d8] sm:$0xff]  ;;  %v5394_v2 = vpop.permute.xlu1 %2877  ;;  %v2864_v17 = vunpack.i.l.bf16 %v2863_v10  ;;  %v6825_v40 = vld [vmem:[#allocation40_spill] sm:$0xff] }
 0x196   :  { %6807 = vst [vmem:[#allocation111_spill] sm:$0xff] %v5343_v1  ;;  %6810 = vst [vmem:[#allocation113_spill] sm:$0xff] %v5364_v43  ;;  %v243_v32 = vmax.f32 %v5333_v26, %v5335_v44  ;;  %v5373_v42 = vmax.f32 %v239_v23, %v5370_v62  ;;  %v244_v12 = vmax.f32 %v5345_v31, %v5347_v8  ;;  %v2879_v28 = vunpack.i.l.bf16 %v5394_v2 }
 0x197   :  { %v2521_v5 = vadd.f32 %v6809_v57, %v2520_v4  ;;  %v2869_v4 = vunpack.i.l.bf16 %v2868_v49  ;;  %6813 = vst [vmem:[#allocation115_spill] sm:$0xff] %v5378_v22  ;;  %v5381_v50 = vmax.f32 %v240_v38, %v5378_v22  ;;  %v5390_v23 = vmax.f32 %v241_v59, %v5387_v25  ;;  %6821 = vst [vmem:[#allocation122_spill] sm:$0xff] %v5408_v20  ;;  %v5419_v34 = vpop.permute.xlu0 %2872 }
 0x198   :  { %6811 = vst [vmem:[#allocation114_spill] sm:$0xff] %v5373_v42  ;;  %v2865_v49 = vunpack.i.h.bf16 %v2863_v10  ;;  %v5400_v29 = vmax.f32 %v242_v55, %v5397_v47  ;;  %v335_v54 = vsub.f32 %v5272_v7, %v5364_v43  ;;  %v5406_v59 = vsel %vm1453_vm13, 1.0, %v2870_v39  ;;  %6824 = vst [vmem:[#allocation125_spill] sm:$0xff] %v5419_v34 }
 0x199   :  { %v2522_v13 = vadd.f32 %v6812_v53, %v2521_v5  ;;  %6814 = vst [vmem:[#allocation116_spill] sm:$0xff] %v5381_v50  ;;  %6816 = vst [vmem:[#allocation118_spill] sm:$0xff] %v5390_v23  ;;  %v334_v5 = vsub.f32 %v5264_v9, %v5354_v60  ;;  %v5411_v6 = vmax.f32 %v243_v32, %v5408_v20  ;;  %v5417_v55 = vsel %vm1453_vm13, 1.0, %v2869_v4 }
 0x19a   :  { %6819 = vst [vmem:[#allocation120_spill] sm:$0xff] %v5400_v29  ;;  %6820 = vst [vmem:[#allocation121_spill] sm:$0xff] %v5406_v59  ;;  %v5425_v39 = vmax.f32 %v244_v12, %v5422_v15  ;;  %v337_v10 = vsub.f32 %v5291_v21, %v5381_v50  ;;  %v2880_v32 = vunpack.i.h.bf16 %v5394_v2  ;;  %v338_v4 = vsub.f32 %v5301_v14, %v5390_v23 }
 0x19b   :  { %v2523_v38 = vadd.f32 %v6817_v45, %v2522_v13  ;;  %6822 = vst [vmem:[#allocation123_spill] sm:$0xff] %v5411_v6  ;;  %v336_v13 = vsub.f32 %v5281_v18, %v5373_v42  ;;  %6823 = vst [vmem:[#allocation124_spill] sm:$0xff] %v5417_v55  ;;  %v390_v63 = vmul.f32 1.442695, %v334_v5  ;;  %v5435_v52 = vsel %vm1356_vm14, 1.0, %v2865_v49  ;;  %v2888_v49 = vpop.permute.xlu1 %2887  ;;  %v2883_v16 = vpop.permute.xlu0 %2882 }
 0x19c   :  { %6826 = vst [vmem:[#allocation126_spill] sm:$0xff] %v5422_v15  ;;  %6827 = vst [vmem:[#allocation127_spill] sm:$0xff] %v5425_v39  ;;  %v339_v12 = vsub.f32 %v5319_v30, %v5400_v29  ;;  %v392_v3 = vmul.f32 1.442695, %v335_v54  ;;  %v5442_v1 = vsel %vm1356_vm14, 1.0, %v2864_v17  ;;  %v340_v46 = vsub.f32 %v5333_v26, %v5411_v6 }
 0x19d   :  { %v2524_v24 = vadd.f32 %v6825_v40, %v2523_v38  ;;  %6828 = vst [vmem:[#allocation128_spill] sm:$0xff] %v5435_v52  ;;  %v6829_v38 = vld [vmem:[#allocation41_spill] sm:$0xff]  ;;  %6830 = vst [vmem:[#allocation129_spill] sm:$0xff] %v5442_v1  ;;  %v394_v5 = vmul.f32 1.442695, %v336_v13  ;;  %v6831_v40 = vld [vmem:[#allocation42_spill] sm:$0xff]  ;;  %3078 = vpow2.f32 %v390_v63  ;;  %v558_v2 = vsub.f32 %v5266_v36, %v5354_v60 }
 0x19e   :  { %v398_v17 = vmul.f32 1.442695, %v338_v4  ;;  %3080 = vpow2.f32 %v392_v3  ;;  %v400_v41 = vmul.f32 1.442695, %v339_v12  ;;  %v560_v63 = vsub.f32 %v5283_v33, %v5373_v42 }
 0x19f   :  { %v2525_v37 = vadd.f32 %v6829_v38, %v2524_v24  ;;  %v341_v24 = vsub.f32 %v5345_v31, %v5425_v39  ;;  %v396_v38 = vmul.f32 1.442695, %v337_v10  ;;  %3082 = vpow2.f32 %v394_v5 }
 0x1a0   :  { %v402_v10 = vmul.f32 1.442695, %v340_v46  ;;  %v2889_v4 = vunpack.i.l.bf16 %v2888_v49  ;;  %v561_v59 = vsub.f32 %v5293_v61, %v5381_v50  ;;  %v2885_v13 = vunpack.i.h.bf16 %v2883_v16 }
 0x1a1   :  { %v2526_v57 = vadd.f32 %v6831_v40, %v2525_v37  ;;  %v559_v37 = vsub.f32 %v5274_v48, %v5364_v43  ;;  %v2890_v40 = vunpack.i.h.bf16 %v2888_v49  ;;  %3084 = vpow2.f32 %v396_v38 }
 0x1a2   :  { %v404_v54 = vmul.f32 1.442695, %v341_v24  ;;  %3086 = vpow2.f32 %v398_v17  ;;  %v614_v3 = vmul.f32 1.442695, %v558_v2  ;;  %v2884_v12 = vunpack.i.l.bf16 %v2883_v16  ;;  %v5477_v2 = vpop.permute.xlu0 %2892 }
 0x1a3   :  { %2527 = vadd.xlane.f32.xlu0 %v2526_v57  ;;  %v562_v57 = vsub.f32 %v5303_v11, %v5390_v23  ;;  %3088 = vpow2.f32 %v400_v41  ;;  %v563_v46 = vsub.f32 %v5321_v58, %v5400_v29  ;;  %v616_v5 = vmul.f32 1.442695, %v559_v37  ;;  %6834 = vst [vmem:[#allocation132_spill] sm:$0xff] %v5477_v2  ;;  %v6847_v2 = vld [vmem:[#allocation19_spill] sm:$0xff] }
 0x1a4   :  { %v5469_v49 = vsel %vm1453_vm13, 1.0, %v2880_v32  ;;  %3090 = vpow2.f32 %v402_v10  ;;  %v564_v38 = vsub.f32 %v5335_v44, %v5411_v6  ;;  %v618_v24 = vmul.f32 1.442695, %v560_v63  ;;  %v114_v10 = vld [vmem:[#allocation5 + $0x30] sm:$0xff] }
 0x1a5   :  { %6832 = vst [vmem:[#allocation130_spill] sm:$0xff] %v5469_v49  ;;  %v5475_v17 = vsel %vm1453_vm13, 1.0, %v2879_v28  ;;  %3092 = vpow2.f32 %v404_v54  ;;  %v565_v41 = vsub.f32 %v5347_v8, %v5425_v39  ;;  %v620_v16 = vmul.f32 1.442695, %v561_v59  ;;  %v3160_v49 = vld [vmem:[#allocation5 + $0x28] sm:$0xff] }
 0x1a6   :  { %6833 = vst [vmem:[#allocation131_spill] sm:$0xff] %v5475_v17  ;;  %v5483_v32 = vsel %vm1453_vm13, 1.0, %v2890_v40  ;;  %v5487_v37 = vsel %vm1453_vm13, 1.0, %v2889_v4  ;;  %3094 = vpow2.f32 %v614_v3  ;;  %v622_v63 = vmul.f32 1.442695, %v562_v57 }
 0x1a7   :  { %6835 = vst [vmem:[#allocation133_spill] sm:$0xff] %v5483_v32  ;;  %6836 = vst [vmem:[#allocation134_spill] sm:$0xff] %v5487_v37  ;;  %v5491_v28 = vsel %vm1356_vm14, 1.0, %v2885_v13  ;;  %v5495_v54 = vsel %vm1356_vm14, 1.0, %v2884_v12  ;;  %3096 = vpow2.f32 %v616_v5  ;;  %v624_v59 = vmul.f32 1.442695, %v563_v46 }
 0x1a8   :  { %6837 = vst [vmem:[#allocation135_spill] sm:$0xff] %v5491_v28  ;;  %6838 = vst [vmem:[#allocation136_spill] sm:$0xff] %v5495_v54  ;;  %v5498_v52 = vunpack.c.2.s8 %v3160_v49  ;;  %3098 = vpow2.f32 %v618_v24  ;;  %v626_v4 = vmul.f32 1.442695, %v564_v38  ;;  %v5500_v17 = vunpack.c.3.s8 %v3160_v49 }
 0x1a9   :  { %v5502_v57 = vunpack.c.0.s8 %v114_v10  ;;  %3100 = vpow2.f32 %v620_v16  ;;  %v628_v13 = vmul.f32 1.442695, %v565_v41  ;;  %v782_v3 = vsub.f32 %v5351_v19, %v5354_v60  ;;  %v115_v16 = vld [vmem:[#allocation5 + $0x38] sm:$0xff] }
 0x1aa   :  { %3102 = vpow2.f32 %v622_v63  ;;  %v783_v12 = vsub.f32 %v5361_v0, %v5364_v43  ;;  %v784_v46 = vsub.f32 %v5370_v62, %v5373_v42  ;;  %v5510_v5 = vpop.eup %3078  ;;  %v785_v49 = vsub.f32 %v5378_v22, %v5381_v50  ;;  %v6849_v50 = vld [vmem:[#allocation68_spill] sm:$0xff] }
 0x1ab   :  { %3104 = vpow2.f32 %v624_v59  ;;  %v786_v38 = vsub.f32 %v5387_v25, %v5390_v23  ;;  %v787_v24 = vsub.f32 %v5397_v47, %v5400_v29  ;;  %v5518_v41 = vpop.eup %3080  ;;  %v5520_v63 = vunpack.c.1.s8 %v114_v10  ;;  %v6845_v29 = vld [vmem:[#allocation67_spill] sm:$0xff] }
 0x1ac   :  { %3106 = vpow2.f32 %v626_v4  ;;  %v838_v40 = vmul.f32 1.442695, %v782_v3  ;;  %v840_v35 = vmul.f32 1.442695, %v783_v12  ;;  %v5522_v53 = vpop.eup %3082  ;;  %v788_v59 = vsub.f32 %v5408_v20, %v5411_v6  ;;  %v3162_v20 = vld [vmem:[#allocation2 + $0xb0] sm:$0xff] }
 0x1ad   :  { %3108 = vpow2.f32 %v628_v13  ;;  %v842_v56 = vmul.f32 1.442695, %v784_v46  ;;  %v844_v27 = vmul.f32 1.442695, %v785_v49  ;;  %v5528_v37 = vunpack.c.2.s8 %v114_v10 }
 0x1ae   :  { %v5526_v54 = vpop.eup %3084  ;;  %v5530_v28 = vunpack.c.3.s8 %v114_v10  ;;  %3110 = vpow2.f32 %v838_v40  ;;  %v846_v32 = vmul.f32 1.442695, %v786_v38  ;;  %v5534_v4 = vunpack.c.0.s8 %v115_v16  ;;  %v6839_v40 = vld [vmem:[#allocation52_spill] sm:$0xff] }
 0x1af   :  { %v5532_v34 = vpop.eup %3086  ;;  %v789_v13 = vsub.f32 %v5422_v15, %v5425_v39  ;;  %3112 = vpow2.f32 %v840_v35  ;;  %v848_v3 = vmul.f32 1.442695, %v787_v24  ;;  %v5540_v46 = vunpack.c.1.s8 %v115_v16  ;;  %v6841_v24 = vld [vmem:[#allocation60_spill] sm:$0xff] }
 0x1b0   :  { %v5538_v12 = vpop.eup %3088  ;;  %v5542_v49 = vunpack.c.2.s8 %v115_v16  ;;  %v5544_v6 = vunpack.c.3.s8 %v115_v16  ;;  %3114 = vpow2.f32 %v842_v56  ;;  %vm459_vm2 = vcmp.eq.s32.totalorder %v6839_v40, 0  ;;  %v6840_v56 = vld [vmem:[#allocation59_spill] sm:$0xff] }
 0x1b1   :  { %v5546_v10 = vpop.eup %3090  ;;  %vm460_vm3 = vcmp.eq.s32.totalorder %v5498_v52, 0  ;;  %3116 = vpow2.f32 %v844_v27  ;;  %v850_v38 = vmul.f32 1.442695, %v788_v59  ;;  %vm461_vm4 = vcmp.eq.s32.totalorder %v5500_v17, 0  ;;  %v6842_v27 = vld [vmem:[#allocation62_spill] sm:$0xff]  ;;  %v6843_v59 = vld [vmem:[#allocation65_spill] sm:$0xff] }
 0x1b2   :  { %v5550_v39 = vpop.eup %3092  ;;  %vm462_vm5 = vcmp.eq.s32.totalorder %v5502_v57, 0  ;;  %vm463_vm7 = vcmp.eq.s32.totalorder %v5520_v63, 0  ;;  %3118 = vpow2.f32 %v846_v32  ;;  %vm464_vm8 = vcmp.eq.s32.totalorder %v5528_v37, 0  ;;  %v6844_v32 = vld [vmem:[#allocation63_spill] sm:$0xff] }
 0x1b3   :  { %v3095_v35 = vpop.eup %3094  ;;  %v649_v16 = vadd.f32 %v6841_v24, %v6840_v56  ;;  %3120 = vpow2.f32 %v848_v3  ;;  %v852_v15 = vmul.f32 1.442695, %v789_v13  ;;  %vm465_vm9 = vcmp.eq.s32.totalorder %v5530_v28, 0  ;;  %v3161_v3 = vld [vmem:[#allocation2 + $0xa8] sm:$0xff] }
 0x1b4   :  { %v3097_v45 = vpop.eup %3096  ;;  %vm466_vm10 = vcmp.eq.s32.totalorder %v5534_v4, 0  ;;  %vm467_vm11 = vcmp.eq.s32.totalorder %v5540_v46, 0  ;;  %v650_v55 = vadd.f32 %v6843_v59, %v6842_v27  ;;  %vm468_vm12 = vcmp.eq.s32.totalorder %v5542_v49, 0  ;;  %v3163_v27 = vld [vmem:[#allocation2 + $0xb8] sm:$0xff] }
 0x1b5   :  { %v3099_v1 = vpop.eup %3098  ;;  %vm469_vm1 = vcmp.eq.s32.totalorder %v5544_v6, 0  ;;  %v651_v56 = vadd.f32 %v6845_v29, %v6844_v32  ;;  %3122 = vpow2.f32 %v850_v38  ;;  %v5569_v24 = vsel %vm459_vm2, %v3161_v3, 0.0  ;;  %v6848_v3 = vld [vmem:[#allocation18_spill] sm:$0xff] }
 0x1b6   :  { %v3101_v13 = vpop.eup %3100  ;;  %v5573_v23 = vsel %vm460_vm3, %v3162_v20, 0.0  ;;  %v5577_v59 = vsel %vm461_vm4, %v3163_v27, 0.0  ;;  %v652_v29 = vadd.f32 %v6847_v2, %v6846_v51  ;;  %v5584_v32 = vsel %vm462_vm5, %v5264_v9, 0.0  ;;  %v6850_v20 = vld [vmem:[#allocation61_spill] sm:$0xff]  ;;  %v6851_v2 = vld [vmem:[#allocation16_spill] sm:$0xff] }
 0x1b7   :  { %v3103_v38 = vpop.eup %3102  ;;  %v653_v47 = vadd.f32 %v6849_v50, %v6848_v3  ;;  %3124 = vpow2.f32 %v852_v15  ;;  %v873_v42 = vadd.f32 %v6850_v20, %v649_v16  ;;  %v5592_v27 = vsel %vm463_vm7, %v5272_v7, 0.0  ;;  %v6853_v16 = vld [vmem:[#allocation17_spill] sm:$0xff] }
 0x1b8   :  { %v3105_v25 = vpop.eup %3104  ;;  %v5597_v51 = vsel %vm464_vm8, %v5281_v18, 0.0  ;;  %v654_v9 = vadd.f32 %v3095_v35, %v5510_v5  ;;  %v874_v8 = vadd.f32 %v6851_v2, %v650_v55  ;;  %v5604_v50 = vsel %vm465_vm9, %v5291_v21, 0.0  ;;  %v6855_v35 = vld [vmem:[#allocation69_spill] sm:$0xff]  ;;  %v6857_v2 = vld [vmem:[#allocation64_spill] sm:$0xff] }
 0x1b9   :  { %v3107_v43 = vpop.eup %3106  ;;  %v5609_v15 = vsel %vm466_vm10, %v5301_v14, 0.0  ;;  %v655_v7 = vadd.f32 %v3097_v45, %v5518_v41  ;;  %v875_v18 = vadd.f32 %v6853_v16, %v651_v56  ;;  %v5616_v55 = vsel %vm467_vm11, %v5319_v30, 0.0  ;;  %v6856_v41 = vld [vmem:[#allocation70_spill] sm:$0xff]  ;;  %v6858_v16 = vld [vmem:[#allocation43_spill] sm:$0xff] }
 0x1ba   :  { %6852 = vst [vmem:[#allocation52_spill] sm:$0xff] %v5609_v15  ;;  %v3109_v3 = vpop.eup %3108  ;;  %6854 = vst [vmem:[#allocation59_spill] sm:$0xff] %v5616_v55  ;;  %v5621_v21 = vsel %vm468_vm12, %v5333_v26, 0.0  ;;  %v656_v5 = vadd.f32 %v3099_v1, %v5522_v53  ;;  %v876_v14 = vadd.f32 %v6855_v35, %v652_v29  ;;  %v657_v45 = vadd.f32 %v3101_v13, %v5526_v54  ;;  %v6860_v30 = vld [vmem:[#allocation35_spill] sm:$0xff] }
 0x1bb   :  { %v3111_v20 = vpop.eup %3110  ;;  %v877_v56 = vadd.f32 %v6856_v41, %v653_v47  ;;  %3126 = vlog2.f32 %v873_v42  ;;  %v6859_v15 = vsub.f32 %v6857_v2, %v6858_v16  ;;  %v5634_v26 = vsel %vm469_vm1, %v5345_v31, 0.0  ;;  %v6861_v42 = vld [vmem:[#allocation66_spill] sm:$0xff]  ;;  %v6862_v13 = vld [vmem:[#allocation55_spill] sm:$0xff] }
 0x1bc   :  { %v3113_v22 = vpop.eup %3112  ;;  %vm683_vm2 = vcmp.eq.s32.totalorder %v6839_v40, 1  ;;  %v878_v1 = vadd.f32 %v3111_v20, %v654_v9  ;;  %3128 = vlog2.f32 %v874_v8  ;;  %v658_v54 = vadd.f32 %v3103_v38, %v5532_v34 }
 0x1bd   :  { %v1158_v55 = vadd.f32 %v6860_v30, %v6859_v15  ;;  %v3115_v53 = vpop.eup %3114  ;;  %v879_v47 = vadd.f32 %v3113_v22, %v655_v7  ;;  %3130 = vlog2.f32 %v875_v18  ;;  %v6863_v29 = vsub.f32 %v6861_v42, %v6862_v13  ;;  %v6864_v42 = vld [vmem:[#allocation57_spill] sm:$0xff] }
 0x1be   :  { %v3117_v15 = vpop.eup %3116  ;;  %vm684_vm3 = vcmp.eq.s32.totalorder %v5498_v52, 1  ;;  %vm685_vm1 = vcmp.eq.s32.totalorder %v5500_v17, 1  ;;  %v880_v31 = vadd.f32 %v3115_v53, %v656_v5  ;;  %3132 = vlog2.f32 %v876_v14  ;;  %v3166_v14 = vld [vmem:[#allocation2 + $0x1b8] sm:$0xff]  ;;  %v3167_v53 = vld [vmem:[#allocation2 + $0x2b0] sm:$0xff] }
 0x1bf   :  { %v5641_v35 = vadd.f32 %v1158_v55, %v6863_v29  ;;  %v3119_v41 = vpop.eup %3118  ;;  %v659_v8 = vadd.f32 %v3105_v25, %v5538_v12  ;;  %vm686_vm4 = vcmp.eq.s32.totalorder %v5502_v57, 1  ;;  %v881_v34 = vadd.f32 %v3117_v15, %v657_v45  ;;  %v3164_v25 = vld [vmem:[#allocation2 + $0x1a8] sm:$0xff]  ;;  %v3165_v55 = vld [vmem:[#allocation2 + $0x1b0] sm:$0xff]  ;;  %v6865_v15 = vld [vmem:[#allocation45_spill] sm:$0xff] }
 0x1c0   :  { %3134 = vlog2.f32 %v877_v56  ;;  %v3121_v22 = vpop.eup %3120  ;;  %vm687_vm5 = vcmp.eq.s32.totalorder %v5520_v63, 1  ;;  %vm688_vm7 = vcmp.eq.s32.totalorder %v5528_v37, 1  ;;  %vm689_vm8 = vcmp.eq.s32.totalorder %v5530_v28, 1 }
 0x1c1   :  { %3136 = vlog2.f32 %v878_v1  ;;  %v660_v38 = vadd.f32 %v3107_v43, %v5546_v10  ;;  %vm690_vm9 = vcmp.eq.s32.totalorder %v5534_v4, 1  ;;  %v882_v9 = vadd.f32 %v3119_v41, %v658_v54 }
 0x1c2   :  { %3138 = vlog2.f32 %v879_v47  ;;  %v3123_v7 = vpop.eup %3122  ;;  %vm691_vm10 = vcmp.eq.s32.totalorder %v5540_v46, 1  ;;  %vm692_vm11 = vcmp.eq.s32.totalorder %v5542_v49, 1  ;;  %v715_v12 = vsel %vm683_vm2, %v3164_v25, 0.0  ;;  %v6867_v25 = vld [vmem:[#allocation51_spill] sm:$0xff] }
 0x1c3   :  { %3140 = vlog2.f32 %v880_v31  ;;  %v661_v18 = vadd.f32 %v3109_v3, %v5550_v39  ;;  %v716_v43 = vsel %vm684_vm3, %v3165_v55, 0.0  ;;  %v883_v10 = vadd.f32 %v3121_v22, %v659_v8 }
 0x1c4   :  { %3142 = vlog2.f32 %v881_v34  ;;  %v3125_v5 = vpop.eup %3124  ;;  %v717_v20 = vsel %vm685_vm1, %v3166_v14, 0.0  ;;  %v718_v45 = vsel %vm686_vm4, %v5266_v36, 0.0  ;;  %v719_v40 = vsel %vm687_vm5, %v5274_v48, 0.0  ;;  %v6869_v14 = vld [vmem:[#allocation53_spill] sm:$0xff] }
 0x1c5   :  { %v720_v39 = vsel %vm688_vm7, %v5283_v33, 0.0  ;;  %v5673_v3 = vsel %vm689_vm8, %v5293_v61, 0.0  ;;  %v5678_v56 = vsel %vm690_vm9, %v5303_v11, 0.0  ;;  %v884_v2 = vadd.f32 %v3123_v7, %v660_v38 }
 0x1c6   :  { %3144 = vlog2.f32 %v882_v9  ;;  %v5683_v48 = vsel %vm691_vm10, %v5321_v58, 0.0  ;;  %v5688_v36 = vsel %vm692_vm11, %v5335_v44, 0.0  ;;  %v747_v61 = vadd.f32 %v715_v12, %v5569_v24 }
 0x1c7   :  { %v748_v33 = vadd.f32 %v716_v43, %v5573_v23  ;;  %v885_v16 = vadd.f32 %v3125_v5, %v661_v18  ;;  %vm908_vm12 = vcmp.eq.s32.totalorder %v5498_v52, 2  ;;  %vm909_vm2 = vcmp.eq.s32.totalorder %v5500_v17, 2  ;;  %v6866_v17 = vld [vmem:[#allocation50_spill] sm:$0xff]  ;;  %v6868_v18 = vld [vmem:[#allocation56_spill] sm:$0xff] }
 0x1c8   :  { %3146 = vlog2.f32 %v883_v10  ;;  %v3127_v11 = vpop.eup %3126  ;;  %v749_v30 = vadd.f32 %v717_v20, %v5577_v59  ;;  %v750_v58 = vadd.f32 %v718_v45, %v5584_v32  ;;  %v751_v1 = vadd.f32 %v719_v40, %v5592_v27  ;;  %v3168_v32 = vld [vmem:[#allocation2 + $0x2b8] sm:$0xff] }
 0x1c9   :  { %vm910_vm3 = vcmp.eq.s32.totalorder %v5502_v57, 2  ;;  %v3129_v44 = vpop.eup %3128  ;;  %vm693_vm1 = vcmp.eq.s32.totalorder %v5544_v6, 1  ;;  %vm911_vm4 = vcmp.eq.s32.totalorder %v5520_v63, 2  ;;  %vm912_vm5 = vcmp.eq.s32.totalorder %v5528_v37, 2  ;;  %v6873_v37 = vld [vmem:[#allocation113_spill] sm:$0xff] }
 0x1ca   :  { %v1021_v23 = vmul.f32 0.6931472, %v3127_v11  ;;  %3148 = vlog2.f32 %v884_v2  ;;  %v3131_v24 = vpop.eup %3130  ;;  %vm913_vm7 = vcmp.eq.s32.totalorder %v5530_v28, 2  ;;  %v940_v59 = vsel %vm908_vm12, %v3167_v53, 0.0 }
 0x1cb   :  { %v941_v27 = vsel %vm909_vm2, %v3168_v32, 0.0  ;;  %v1023_v54 = vmul.f32 0.6931472, %v3129_v44  ;;  %v3133_v47 = vpop.eup %3132  ;;  %v971_v13 = vadd.f32 %v6864_v42, %v747_v61  ;;  %v1025_v29 = vmul.f32 0.6931472, %v3131_v24 }
 0x1cc   :  { %3150 = vlog2.f32 %v885_v16  ;;  %v1065_v31 = vadd.f32 %v1021_v23, %v6865_v15  ;;  %v942_v8 = vsel %vm910_vm3, %v5351_v19, 0.0  ;;  %v943_v52 = vsel %vm911_vm4, %v5361_v0, 0.0  ;;  %v6870_v19 = vld [vmem:[#allocation15_spill] sm:$0xff]  ;;  %v6871_v0 = vld [vmem:[#allocation54_spill] sm:$0xff] }
 0x1cd   :  { %v3135_v41 = vpop.eup %3134  ;;  %v1027_v34 = vmul.f32 0.6931472, %v3133_v47  ;;  %v1066_v22 = vadd.f32 %v1023_v54, %v6866_v17  ;;  %v972_v9 = vadd.f32 %v940_v59, %v748_v33  ;;  %v1067_v12 = vadd.f32 %v1025_v29, %v6867_v25 }
 0x1ce   :  { %v3137_v38 = vpop.eup %3136  ;;  %v1029_v7 = vmul.f32 0.6931472, %v3135_v41  ;;  %v1097_v55 = vsub.f32 %v1065_v31, %v6868_v18  ;;  %v973_v10 = vadd.f32 %v941_v27, %v749_v30  ;;  %v752_v16 = vadd.f32 %v720_v39, %v5597_v51 }
 0x1cf   :  { %v3139_v43 = vpop.eup %3138  ;;  %v1031_v5 = vmul.f32 0.6931472, %v3137_v38  ;;  %v1068_v57 = vadd.f32 %v1027_v34, %v6869_v14  ;;  %v1098_v20 = vsub.f32 %v1066_v22, %v6870_v19  ;;  %v1099_v2 = vsub.f32 %v1067_v12, %v971_v13  ;;  %v6875_v13 = vld [vmem:[#allocation52_spill] sm:$0xff]  ;;  %v6878_v34 = vld [vmem:[#allocation59_spill] sm:$0xff]  ;;  %v6884_v19 = vld [vmem:[#allocation118_spill] sm:$0xff] }
 0x1d0   :  { %v3141_v45 = vpop.eup %3140  ;;  %v1033_v63 = vmul.f32 0.6931472, %v3139_v43  ;;  %v1069_v40 = vadd.f32 %v1029_v7, %v6871_v0  ;;  %v1160_v61 = vadd.f32 %v5641_v35, %v1097_v55  ;;  %vm914_vm8 = vcmp.eq.s32.totalorder %v5534_v4, 2  ;;  %v6872_v35 = vld [vmem:[#allocation115_spill] sm:$0xff]  ;;  %v6880_v7 = vld [vmem:[#allocation116_spill] sm:$0xff] }
 0x1d1   :  { %v3143_v33 = vpop.eup %3142  ;;  %v944_v11 = vsel %vm912_vm5, %v5370_v62, 0.0  ;;  %v974_v30 = vadd.f32 %v942_v8, %v750_v58  ;;  %v1035_v44 = vmul.f32 0.6931472, %v3141_v45  ;;  %v1070_v23 = vadd.f32 %v1031_v5, %v5354_v60  ;;  %v6874_v60 = vld [vmem:[#allocation112_spill] sm:$0xff]  ;;  %v6879_v22 = vld [vmem:[#allocation119_spill] sm:$0xff] }
 0x1d2   :  { %v1100_v24 = vsub.f32 %v1068_v57, %v972_v9  ;;  %v1161_v53 = vadd.f32 %v1160_v61, %v1098_v20  ;;  %v753_v32 = vadd.f32 %v5673_v3, %v5604_v50  ;;  %vm915_vm9 = vcmp.eq.s32.totalorder %v5540_v46, 2  ;;  %v6876_v3 = vld [vmem:[#allocation117_spill] sm:$0xff]  ;;  %v2190_v9 = vpop.permute.xlu1 %2189  ;;  %v6881_v43 = vld [vmem:[#allocation132_spill] sm:$0xff]  ;;  %v6926_v5 = vld [vmem:[#allocation75_spill] sm:$0xff] }
 0x1d3   :  { %v3145_v59 = vpop.eup %3144  ;;  %v945_v51 = vsel %vm913_vm7, %v6872_v35, 0.0  ;;  %v975_v39 = vadd.f32 %v943_v52, %v751_v1  ;;  %v1037_v27 = vmul.f32 0.6931472, %v3143_v33  ;;  %v1071_v62 = vadd.f32 %v1033_v63, %v6873_v37  ;;  %v6877_v1 = vld [vmem:[#allocation114_spill] sm:$0xff]  ;;  %v2192_v37 = vpop.permute.xlu0 %2191 }
 0x1d4   :  { %v1101_v58 = vsub.f32 %v1069_v40, %v973_v10  ;;  %v1162_v54 = vadd.f32 %v1161_v53, %v1099_v2  ;;  %v725_v42 = vsel %vm693_vm1, %v6874_v60, 0.0  ;;  %v754_v50 = vadd.f32 %v5678_v56, %v6875_v13  ;;  %v6885_v2 = vld [vmem:[#allocation122_spill] sm:$0xff]  ;;  %v6890_v53 = vld [vmem:[#allocation39_spill] sm:$0xff] }
 0x1d5   :  { %v3147_v47 = vpop.eup %3146  ;;  %v946_v29 = vsel %vm914_vm8, %v6876_v3, 0.0  ;;  %v976_v28 = vadd.f32 %v944_v11, %v752_v16  ;;  %v1039_v15 = vmul.f32 0.6931472, %v3145_v59  ;;  %v1072_v31 = vadd.f32 %v1035_v44, %v6877_v1  ;;  %v6887_v44 = vld [vmem:[#allocation129_spill] sm:$0xff]  ;;  %v6898_v13 = vld [vmem:[#allocation135_spill] sm:$0xff]  ;;  %v6899_v3 = vld [vmem:[#allocation134_spill] sm:$0xff] }
 0x1d6   :  { %v1102_v41 = vsub.f32 %v1070_v23, %v974_v30  ;;  %v1163_v8 = vadd.f32 %v1162_v54, %v1100_v24  ;;  %v755_v17 = vadd.f32 %v5683_v48, %v6878_v34  ;;  %vm916_vm10 = vcmp.eq.s32.totalorder %v5542_v49, 2  ;;  %v6888_v23 = vld [vmem:[#allocation124_spill] sm:$0xff]  ;;  %v6902_v34 = vld [vmem:[#allocation106_spill] sm:$0xff] }
 0x1d7   :  { %v3149_v52 = vpop.eup %3148  ;;  %v947_v56 = vsel %vm915_vm9, %v6879_v22, 0.0  ;;  %v977_v38 = vadd.f32 %v945_v51, %v753_v32  ;;  %v1041_v4 = vmul.f32 0.6931472, %v3147_v47  ;;  %v1073_v25 = vadd.f32 %v1037_v27, %v6880_v7  ;;  %v6892_v32 = vld [vmem:[#allocation125_spill] sm:$0xff] }
 0x1d8   :  { %v1103_v12 = vsub.f32 %v1071_v62, %v975_v39  ;;  %v1164_v18 = vadd.f32 %v1163_v8, %v1101_v58  ;;  %v6882_v10 = vunpack.i.l.bf16 %v6881_v43  ;;  %v756_v48 = vadd.f32 %v5688_v36, %v5621_v21  ;;  %v6886_v21 = vld [vmem:[#allocation120_spill] sm:$0xff]  ;;  %v6895_v39 = vld [vmem:[#allocation126_spill] sm:$0xff]  ;;  %v6896_v58 = vld [vmem:[#allocation123_spill] sm:$0xff] }
 0x1d9   :  { %v3151_v55 = vpop.eup %3150  ;;  %vm917_vm11 = vcmp.eq.s32.totalorder %v5544_v6, 2  ;;  %v978_v46 = vadd.f32 %v946_v29, %v754_v50  ;;  %v1043_v57 = vmul.f32 0.6931472, %v3149_v52  ;;  %v1074_v20 = vadd.f32 %v1039_v15, %v6884_v19  ;;  %v6900_v29 = vld [vmem:[#allocation136_spill] sm:$0xff]  ;;  %v6915_v19 = vld [vmem:[#allocation130_spill] sm:$0xff] }
 0x1da   :  { %v2183_v14 = vsel %vm1356_vm14, 1.0, %v6882_v10  ;;  %v1104_v45 = vsub.f32 %v1072_v31, %v976_v28  ;;  %v1165_v63 = vadd.f32 %v1164_v18, %v1102_v41  ;;  %v2195_v0 = vsel %vm1453_vm13, 1.0, %v2190_v9  ;;  %v6901_v41 = vld [vmem:[#allocation127_spill] sm:$0xff]  ;;  %v6911_v10 = vld [vmem:[#allocation128_spill] sm:$0xff] }
 0x1db   :  { %v757_v40 = vadd.f32 %v725_v42, %v5634_v26  ;;  %v948_v61 = vsel %vm916_vm10, %v6885_v2, 0.0  ;;  %v979_v33 = vadd.f32 %v947_v56, %v755_v17  ;;  %v1045_v16 = vmul.f32 0.6931472, %v3151_v55  ;;  %v6897_v42 = vld [vmem:[#allocation133_spill] sm:$0xff]  ;;  %v6903_v17 = vld [vmem:[#allocation104_spill] sm:$0xff]  ;;  %v6905_v56 = vld [vmem:[#allocation38_spill] sm:$0xff] }
 0x1dc   :  { %v1075_v36 = vadd.f32 %v1041_v4, %v6886_v21  ;;  %v1105_v11 = vsub.f32 %v1073_v25, %v977_v38  ;;  %v1166_v30 = vadd.f32 %v1165_v63, %v1103_v12  ;;  %v6889_v24 = vmin.f32 %v6887_v44, %v6888_v23  ;;  %v6906_v9 = vld [vmem:[#allocation107_spill] sm:$0xff]  ;;  %v6907_v4 = vld [vmem:[#allocation105_spill] sm:$0xff] }
 0x1dd   :  { %v6893_v35 = vunpack.i.h.bf16 %v6892_v32  ;;  %v6894_v49 = vunpack.i.l.bf16 %v6892_v32  ;;  %v949_v27 = vsel %vm917_vm11, %v6895_v39, 0.0  ;;  %v980_v62 = vadd.f32 %v948_v61, %v756_v48  ;;  %v6909_v25 = vld [vmem:[#allocation37_spill] sm:$0xff]  ;;  %v6910_v18 = vld [vmem:[#allocation131_spill] sm:$0xff] }
 0x1de   :  { %v5769_v59 = vmin.f32 %v6890_v53, %v6889_v24  ;;  %v1076_v54 = vadd.f32 %v1043_v57, %v6896_v58  ;;  %v1106_v47 = vsub.f32 %v1074_v20, %v978_v46  ;;  %v1167_v60 = vadd.f32 %v1166_v30, %v1104_v45  ;;  %v6914_v46 = vld [vmem:[#allocation40_spill] sm:$0xff]  ;;  %v6917_v2 = vld [vmem:[#allocation47_spill] sm:$0xff]  ;;  %v6920_v24 = vld [vmem:[#allocation110_spill] sm:$0xff] }
 0x1df   :  { %v1452_v26 = vsel %vm1356_vm14, 1.0, %v6893_v35  ;;  %v1451_v51 = vsel %vm1356_vm14, 1.0, %v6894_v49  ;;  %v2198_v50 = vmin.f32 %v6898_v13, %v6897_v42  ;;  %v2197_v28 = vmin.f32 %v6900_v29, %v6899_v3  ;;  %v6921_v35 = vld [vmem:[#allocation111_spill] sm:$0xff]  ;;  %v6922_v49 = vld [vmem:[#allocation76_spill] sm:$0xff]  ;;  %v6932_v29 = vld [vmem:[#allocation42_spill] sm:$0xff] }
 0x1e0   :  { %6891 = vst [vmem:[#allocation60_spill] sm:$0xff] %v5769_v59  ;;  %v2895_v15 = vunpack.i.h.bf16 %v6881_v43  ;;  %v2199_v1 = vmin.f32 %v2183_v14, %v2195_v0  ;;  %v981_v31 = vadd.f32 %v949_v27, %v757_v40  ;;  %v1077_v8 = vadd.f32 %v1045_v16, %v6901_v41  ;;  %v6912_v14 = vld [vmem:[#allocation121_spill] sm:$0xff]  ;;  %v6916_v0 = vld [vmem:[#allocation92_spill] sm:$0xff]  ;;  %v6928_v58 = vld [vmem:[#allocation91_spill] sm:$0xff] }
 0x1e1   :  { %v1107_v6 = vsub.f32 %v1075_v36, %v979_v33  ;;  %v1168_v52 = vadd.f32 %v1167_v60, %v1105_v11  ;;  %v6904_v22 = vmin.f32 %v6902_v34, %v6903_v17  ;;  %v6908_v7 = vmin.f32 %v6906_v9, %v6907_v4  ;;  %v6918_v33 = vld [vmem:[#allocation46_spill] sm:$0xff]  ;;  %v6919_v36 = vld [vmem:[#allocation48_spill] sm:$0xff]  ;;  %v6925_v27 = vld [vmem:[#allocation41_spill] sm:$0xff] }
 0x1e2   :  { %v1580_v55 = vmin.f32 %v1451_v51, %v6910_v18  ;;  %v2196_v43 = vsel %vm1453_vm13, 1.0, %v2192_v37  ;;  %v6913_v48 = vmin.f32 %v6911_v10, %v6912_v14  ;;  %v1581_v20 = vmin.f32 %v1452_v26, %v6915_v19  ;;  %v6938_v4 = vld [vmem:[#allocation34_spill] sm:$0xff]  ;;  %v6939_v18 = vld [vmem:[#allocation31_spill] sm:$0xff]  ;;  %v6940_v14 = vld [vmem:[#allocation32_spill] sm:$0xff] }
 0x1e3   :  { %v5793_v38 = vmin.f32 %v6905_v56, %v6904_v22  ;;  %v5799_v12 = vmin.f32 %v6909_v25, %v6908_v7  ;;  %v1108_v45 = vsub.f32 %v1076_v54, %v980_v62  ;;  %v1169_v63 = vadd.f32 %v1168_v52, %v1106_v47  ;;  %v6937_v22 = vld [vmem:[#allocation28_spill] sm:$0xff] }
 0x1e4   :  { %v5808_v57 = vmin.f32 %v6914_v46, %v6913_v48  ;;  %v2229_v40 = vmin.f32 %v6916_v0, %v5769_v59  ;;  %v2202_v61 = vmin.f32 %v6917_v2, %v2198_v50  ;;  %v2201_v16 = vmin.f32 %v6918_v33, %v2197_v28 }
 0x1e5   :  { %v2184_v21 = vsel %vm1356_vm14, 1.0, %v2895_v15  ;;  %v2203_v11 = vmin.f32 %v6919_v36, %v2199_v1  ;;  %v1109_v44 = vsub.f32 %v1077_v8, %v981_v31  ;;  %v1170_v23 = vadd.f32 %v1169_v63, %v1107_v6  ;;  %v6934_v8 = vld [vmem:[#allocation49_spill] sm:$0xff] }
 0x1e6   :  { %v2200_v30 = vmin.f32 %v2184_v21, %v2196_v43  ;;  %v6923_v51 = vmin.f32 %v6922_v49, %v6921_v35  ;;  %v5827_v37 = vmin.f32 %v6925_v27, %v1580_v55  ;;  %v6927_v62 = vmin.f32 %v6926_v5, %v6920_v24  ;;  %v6944_v21 = vld [vmem:[#allocation29_spill] sm:$0xff]  ;;  %v6946_v49 = vld [vmem:[#allocation23_spill] sm:$0xff]  ;;  %v6948_v5 = vld [vmem:[#allocation22_spill] sm:$0xff] }
 0x1e7   :  { %v1171_v50 = vadd.f32 %v1170_v23, %v1108_v45  ;;  %v5842_v28 = vmin.f32 %v6932_v29, %v1581_v20  ;;  %v2233_v15 = vmin.f32 %v6921_v35, %v2201_v16  ;;  %v2234_v1 = vmin.f32 %v6920_v24, %v2202_v61 }
 0x1e8   :  { %v5824_v39 = vmin.f32 %v6916_v0, %v6923_v51  ;;  %v5833_v54 = vmin.f32 %v6928_v58, %v6927_v62  ;;  %v5847_v31 = vmin.f32 %v6921_v35, %v2229_v40  ;;  %v2235_v41 = vmin.f32 %v5799_v12, %v2203_v11 }
 0x1e9   :  { %v5851_v6 = vmin.f32 %v6934_v8, %v2200_v30  ;;  %v1172_v52 = vadd.f32 %v1171_v50, %v1109_v44  ;;  %v1628_v9 = vrot.slane %v6937_v22, 7  ;;  %v1629_v7 = vrot.slane %v6938_v4, 7  ;;  %v6945_v30 = vld [vmem:[#allocation36_spill] sm:$0xff] }
 0x1ea   :  { %6924 = vst [vmem:[#allocation62_spill] sm:$0xff] %v5824_v39  ;;  %6929 = vst [vmem:[#allocation65_spill] sm:$0xff] %v5833_v54  ;;  %v1644_v55 = vrot.slane %v6939_v18, 7  ;;  %v1645_v43 = vrot.slane %v6909_v25, 7  ;;  %v1646_v10 = vrot.slane %v6925_v27, 7  ;;  %v1652_v48 = vrot.slane %v6940_v14, 7 }
 0x1eb   :  { %6933 = vst [vmem:[#allocation63_spill] sm:$0xff] %v5847_v31  ;;  %6935 = vst [vmem:[#allocation67_spill] sm:$0xff] %v5851_v6  ;;  %1173 = vadd.xlane.f32.xlu1 %v1172_v52  ;;  %v1653_v19 = vrot.slane %v6905_v56, 7  ;;  %v5863_v20 = vmin.f32 %v5769_v59, %v2233_v15  ;;  %v5866_v45 = vmin.f32 %v5808_v57, %v2234_v1  ;;  %v1630_v63 = vrot.slane %v6890_v53, 7  ;;  %v6951_v1 = vld [vmem:[#allocation27_spill] sm:$0xff]  ;;  %v6953_v52 = vld [vmem:[#allocation26_spill] sm:$0xff] }
 0x1ec   :  { %v1654_v40 = vrot.slane %v6932_v29, 7  ;;  %v5871_v61 = vmin.f32 %v5827_v37, %v2235_v41  ;;  %v1636_v11 = vrot.slane %v6944_v21, 7  ;;  %v1637_v44 = vrot.slane %v6945_v30, 7  ;;  %v6958_v6 = vld [vmem:[#allocation24_spill] sm:$0xff]  ;;  %v6960_v54 = vld [vmem:[#allocation21_spill] sm:$0xff] }
 0x1ed   :  { %6941 = vst [vmem:[#allocation20_spill] sm:$0xff] %v5863_v20  ;;  %6942 = vst [vmem:[#allocation19_spill] sm:$0xff] %v5866_v45  ;;  %v1638_v23 = vrot.slane %v6914_v46, 7  ;;  %v6947_v51 = vrot.slane %v6946_v49, 7  ;;  %v6949_v62 = vrot.slane %v6948_v5, 7  ;;  %v6952_v41 = vrot.slane %v6951_v1, 7 }
 0x1ee   :  { %6943 = vst [vmem:[#allocation18_spill] sm:$0xff] %v5871_v61  ;;  %v6954_v17 = vrot.slane %v6953_v52, 7  ;;  %v5896_v3 = vsel %vm1655_vm15, %v1644_v55, %v1652_v48  ;;  %v5900_v13 = vsel %vm1655_vm15, %v1645_v43, %v1653_v19  ;;  %v1685_v5 = vsel %vm1655_vm15, %v1652_v48, %v1628_v9 }
 0x1ef   :  { %v5884_v15 = vsel %vm1655_vm15, %v6949_v62, %v6947_v51  ;;  %v5904_v51 = vsel %vm1655_vm15, %v1646_v10, %v1654_v40  ;;  %v1686_v62 = vsel %vm1655_vm15, %v1653_v19, %v1629_v7  ;;  %v5920_v26 = vsel %vm1655_vm15, %v1636_v11, %v1644_v55 }
 0x1f0   :  { %v5892_v16 = vsel %vm1655_vm15, %v6954_v17, %v6952_v41  ;;  %v6955_v41 = vld [vmem:[#allocation25_spill] sm:$0xff]  ;;  %v5924_v61 = vsel %vm1655_vm15, %v1637_v44, %v1645_v43  ;;  %v1687_v48 = vsel %vm1655_vm15, %v1654_v40, %v1630_v63  ;;  %v5930_v19 = vsel %vm1655_vm15, %v1638_v23, %v1646_v10 }
 0x1f1   :  { %v6956_v60 = vrot.slane %v6955_v41, 7  ;;  %v1677_v55 = vsel %vm1655_vm15, %v1628_v9, %v1636_v11  ;;  %v5942_v43 = vsel %vm1655_vm15, %v1629_v7, %v1637_v44  ;;  %v5946_v40 = vsel %vm1655_vm15, %v1630_v63, %v1638_v23 }
 0x1f2   :  { %v1708_v10 = vsel %vm1619_vm6, 1.0, %v1685_v5  ;;  %v1712_v20 = vsel %vm1619_vm6, 1.0, %v1686_v62  ;;  %v1753_v31 = vrot.slane %v6940_v14, 1  ;;  %v1729_v9 = vrot.slane %v6937_v22, 1 }
 0x1f3   :  { %v5916_v32 = vsel %vm1655_vm15, %v6956_v60, %v6954_v17  ;;  %v6957_v45 = vmov %v6956_v60  ;;  %v6959_v60 = vrot.slane %v6958_v6, 7  ;;  %v1754_v7 = vrot.slane %v6905_v56, 1 }
 0x1f4   :  { %v1755_v11 = vrot.slane %v6932_v29, 1  ;;  %v1730_v63 = vrot.slane %v6938_v4, 1  ;;  %v1737_v44 = vrot.slane %v6944_v21, 1  ;;  %v1738_v23 = vrot.slane %v6945_v30, 1  ;;  %v6968_v29 = vld [vmem:[#allocation77_spill] sm:$0xff] }
 0x1f5   :  { %v1676_v17 = vsel %vm1655_vm15, %v6959_v60, %v6957_v45  ;;  %v5955_v45 = vsel %vm1619_vm6, 1.0, %v1687_v48  ;;  %v1745_v5 = vrot.slane %v6939_v18, 1  ;;  %v1739_v62 = vrot.slane %v6914_v46, 1 }
 0x1f6   :  { %v1746_v60 = vrot.slane %v6909_v25, 1  ;;  %v1747_v48 = vrot.slane %v6925_v27, 1  ;;  %v6961_v39 = vrot.slane %v6960_v54, 1  ;;  %v6962_v36 = vrot.slane %v6946_v49, 1 }
 0x1f7   :  { %v1731_v47 = vrot.slane %v6890_v53, 1  ;;  %v6963_v42 = vrot.slane %v6951_v1, 1  ;;  %v6964_v8 = vrot.slane %v6953_v52, 1  ;;  %v1762_v35 = vsel %vm1756_vm0, %v1745_v5, %v1753_v31 }
 0x1f8   :  { %v1784_v2 = vsel %vm1756_vm0, %v6962_v36, %v6961_v39  ;;  %v6965_v0 = vrot.slane %v6958_v6, 1  ;;  %v1763_v36 = vsel %vm1756_vm0, %v1746_v60, %v1754_v7  ;;  %v1764_v39 = vsel %vm1756_vm0, %v1747_v48, %v1755_v11 }
 0x1f9   :  { %v1761_v33 = vsel %vm1756_vm0, %v6964_v8, %v6963_v42  ;;  %v6966_v54 = vmov %v6963_v42  ;;  %v1786_v34 = vsel %vm1756_vm0, %v1753_v31, %v1729_v9  ;;  %v1787_v42 = vsel %vm1756_vm0, %v1754_v7, %v1730_v63 }
 0x1fa   :  { %v1785_v58 = vsel %vm1756_vm0, %v6966_v54, %v6965_v0  ;;  %v6967_v6 = vrot.slane %v6955_v41, 1  ;;  %v1770_v0 = vsel %vm1756_vm0, %v1737_v44, %v1745_v5  ;;  %v1788_v54 = vsel %vm1756_vm0, %v1755_v11, %v1731_v47 }
 0x1fb   :  { %vm6969_vm13 = vcmp.eq.s32.totalorder %v6968_v29, 31  ;;  %v1771_v31 = vsel %vm1756_vm0, %v1738_v23, %v1746_v60  ;;  %v1772_v7 = vsel %vm1756_vm0, %v1739_v62, %v1747_v48  ;;  %v1778_v46 = vsel %vm1756_vm0, %v1729_v9, %v1737_v44  ;;  %v7095_v29 = vld [vmem:[#allocation67_spill] sm:$0xff] }
 0x1fc   :  { %v1769_v59 = vsel %vm1756_vm0, %v6967_v6, %v6964_v8  ;;  %v1804_v27 = vsel %vm6969_vm13, 1.0, %v1784_v2  ;;  %vm6970_vm14 = vmmov %vm6969_vm13  ;;  %v1779_v5 = vsel %vm1756_vm0, %v1730_v63, %v1738_v23  ;;  %v1780_v11 = vsel %vm1756_vm0, %v1731_v47, %v1739_v62 }
 0x1fd   :  { %v1808_v8 = vsel %vm6970_vm14, 1.0, %v1785_v58  ;;  %vm6971_vm12 = vmmov %vm6969_vm13  ;;  %v1836_v9 = vmin.f32 %v5884_v15, %v1804_v27  ;;  %v1838_v44 = vmin.f32 %v1676_v17, %v1769_v59  ;;  %v1839_v58 = vmin.f32 %v5916_v32, %v1761_v33  ;;  %v6976_v17 = vld [vmem:[#allocation42_spill] sm:$0xff] }
 0x1fe   :  { %v1812_v2 = vsel %vm6971_vm12, 1.0, %v1786_v34  ;;  %vm6972_vm2 = vmmov %vm6971_vm12  ;;  %v1840_v6 = vmin.f32 %v5892_v16, %v1808_v8  ;;  %v1841_v63 = vmin.f32 %v1708_v10, %v1778_v46  ;;  %v1842_v23 = vmin.f32 %v1677_v55, %v1770_v0 }
 0x1ff   :  { %v1816_v60 = vsel %vm6972_vm2, 1.0, %v1787_v42  ;;  %vm6973_vm3 = vmmov %vm6972_vm2  ;;  %v1843_v47 = vmin.f32 %v5920_v26, %v1762_v35  ;;  %v1844_v62 = vmin.f32 %v5896_v3, %v1812_v2  ;;  %v1845_v34 = vmin.f32 %v1712_v20, %v1779_v5 }
 0x200   :  { %v1820_v48 = vsel %vm6973_vm3, 1.0, %v1788_v54  ;;  %v1846_v50 = vmin.f32 %v5942_v43, %v1771_v31  ;;  %v1847_v42 = vmin.f32 %v5924_v61, %v1763_v36  ;;  %v1848_v54 = vmin.f32 %v5900_v13, %v1816_v60  ;;  %v6978_v43 = vld [vmem:[#allocation60_spill] sm:$0xff]  ;;  %v6983_v36 = vld [vmem:[#allocation30_spill] sm:$0xff]  ;;  %v6986_v31 = vld [vmem:[#allocation91_spill] sm:$0xff] }
 0x201   :  { %v1849_v27 = vmin.f32 %v5955_v45, %v1780_v11  ;;  %v1850_v59 = vmin.f32 %v5946_v40, %v1772_v7  ;;  %v1851_v33 = vmin.f32 %v5930_v19, %v1764_v39  ;;  %v1852_v46 = vmin.f32 %v5904_v51, %v1820_v48  ;;  %v6974_v19 = vld [vmem:[#allocation40_spill] sm:$0xff]  ;;  %v6981_v45 = vld [vmem:[#allocation101_spill] sm:$0xff]  ;;  %vm7016_vm1 = vmmov %vm6972_vm2 }
 0x202   :  { %v6039_v32 = vmin.f32 %v6946_v49, %v1836_v9  ;;  %v6042_v35 = vmin.f32 %v6955_v41, %v1838_v44  ;;  %v6045_v26 = vmin.f32 %v6953_v52, %v1839_v58  ;;  %v6048_v3 = vmin.f32 %v6951_v1, %v1840_v6  ;;  %v6991_v60 = vld [vmem:[#allocation92_spill] sm:$0xff]  ;;  %v6993_v44 = vld [vmem:[#allocation111_spill] sm:$0xff]  ;;  %vm7028_vm4 = vmmov %vm7016_vm1 }
 0x203   :  { %v6051_v13 = vmin.f32 %v6937_v22, %v1841_v63  ;;  %v6054_v20 = vmin.f32 %v6944_v21, %v1842_v23  ;;  %v6057_v61 = vmin.f32 %v6939_v18, %v1843_v47  ;;  %v6060_v16 = vmin.f32 %v6940_v14, %v1844_v62  ;;  %v6995_v23 = vld [vmem:[#allocation79_spill] sm:$0xff]  ;;  %vm7059_vm5 = vmmov %vm7016_vm1 }
 0x204   :  { %v6063_v49 = vmin.f32 %v6938_v4, %v1845_v34  ;;  %v1907_v15 = vrot.slane %v5799_v12, 7  ;;  %v1908_v1 = vrot.slane %v5827_v37, 7  ;;  %v6068_v52 = vmin.f32 %v6945_v30, %v1846_v50  ;;  %v6975_v50 = vld [vmem:[#allocation41_spill] sm:$0xff] }
 0x205   :  { %v6071_v22 = vmin.f32 %v6909_v25, %v1847_v42  ;;  %v1915_v21 = vrot.slane %v5793_v38, 7  ;;  %v1916_v18 = vrot.slane %v5842_v28, 7  ;;  %v6076_v14 = vmin.f32 %v6905_v56, %v1848_v54  ;;  %v6979_v56 = vld [vmem:[#allocation97_spill] sm:$0xff] }
 0x206   :  { %v6079_v4 = vmin.f32 %v6890_v53, %v1849_v27  ;;  %v1899_v51 = vrot.slane %v6920_v24, 7  ;;  %v1900_v41 = vrot.slane %v5808_v57, 7  ;;  %v6084_v30 = vmin.f32 %v6974_v19, %v1850_v59 }
 0x207   :  { %v6087_v25 = vmin.f32 %v6975_v50, %v1851_v33  ;;  %v6090_v55 = vmin.f32 %v6976_v17, %v1852_v46  ;;  %v1892_v40 = vrot.slane %v6978_v43, 7  ;;  %v6980_v10 = vrot.slane %v6979_v56, 7 }
 0x208   :  { %v6982_v53 = vrot.slane %v6981_v45, 7  ;;  %v6987_v7 = vrot.slane %v6986_v31, 7  ;;  %v6109_v5 = vsel %vm1655_vm15, %v1899_v51, %v1907_v15  ;;  %v6113_v11 = vsel %vm1655_vm15, %v1900_v41, %v1908_v1 }
 0x209   :  { %6977 = vst [vmem:[#allocation68_spill] sm:$0xff] %v6090_v55  ;;  %6988 = vst [vmem:[#allocation16_spill] sm:$0xff] %v6109_v5  ;;  %v6992_v48 = vrot.slane %v6991_v60, 7  ;;  %v6994_v58 = vrot.slane %v6993_v44, 7  ;;  %v1948_v63 = vsel %vm1655_vm15, %v1916_v18, %v1892_v40  ;;  %v2344_v47 = vmin.f32 %v6995_v23, %v6039_v32 }
 0x20a   :  { %v6099_v39 = vsel %vm1655_vm15, %v6982_v53, %v6980_v10  ;;  %v6985_v0 = vmov %v6982_v53  ;;  %6989 = vst [vmem:[#allocation17_spill] sm:$0xff] %v6113_v11  ;;  %v6990_v2 = vmov %v6987_v7  ;;  %v6131_v62 = vsel %vm1655_vm15, %v1907_v15, %v1915_v21  ;;  %v7007_v10 = vld [vmem:[#allocation74_spill] sm:$0xff]  ;;  %v7025_v11 = vld [vmem:[#allocation84_spill] sm:$0xff] }
 0x20b   :  { %6984 = vst [vmem:[#allocation61_spill] sm:$0xff] %v6099_v39  ;;  %v1930_v8 = vsel %vm1655_vm15, %v6987_v7, %v6985_v0  ;;  %v1938_v9 = vsel %vm1655_vm15, %v6992_v48, %v6990_v2  ;;  %v1947_v6 = vsel %vm1655_vm15, %v1915_v21, %v6994_v58  ;;  %6996 = vst [vmem:[#allocation69_spill] sm:$0xff] %v6131_v62  ;;  %v6998_v42 = vmov %v6994_v58  ;;  %v7008_v0 = vld [vmem:[#allocation78_spill] sm:$0xff]  ;;  %v7009_v2 = vld [vmem:[#allocation80_spill] sm:$0xff] }
 0x20c   :  { %v6135_v34 = vsel %vm1655_vm15, %v1908_v1, %v1916_v18  ;;  %v6141_v54 = vsel %vm1655_vm15, %v6998_v42, %v1899_v51  ;;  %v2003_v27 = vrot.slane %v5799_v12, 1  ;;  %v6146_v59 = vsel %vm1655_vm15, %v1892_v40, %v1900_v41  ;;  %v7047_v39 = vld [vmem:[#allocation86_spill] sm:$0xff] }
 0x20d   :  { %6997 = vst [vmem:[#allocation70_spill] sm:$0xff] %v6135_v34  ;;  %6999 = vst [vmem:[#allocation64_spill] sm:$0xff] %v6141_v54  ;;  %v1987_v33 = vrot.slane %v6993_v44, 1  ;;  %v1988_v46 = vrot.slane %v6978_v43, 1  ;;  %v2011_v15 = vrot.slane %v5793_v38, 1  ;;  %v6153_v1 = vsel %vm1619_vm6, 1.0, %v1947_v6 }
 0x20e   :  { %7000 = vst [vmem:[#allocation43_spill] sm:$0xff] %v6146_v59  ;;  %7001 = vst [vmem:[#allocation35_spill] sm:$0xff] %v6153_v1  ;;  %v6157_v21 = vsel %vm1619_vm6, 1.0, %v1948_v63  ;;  %v6591_v18 = vrot.slane %v5808_v57, 1  ;;  %v7003_v51 = vrot.slane %v6991_v60, 1  ;;  %v7004_v41 = vrot.slane %v6979_v56, 1 }
 0x20f   :  { %7002 = vst [vmem:[#allocation66_spill] sm:$0xff] %v6157_v21  ;;  %v7005_v50 = vrot.slane %v6981_v45, 1  ;;  %v7006_v17 = vrot.slane %v6986_v31, 1  ;;  %v2346_v53 = vmin.f32 %v7007_v10, %v6042_v35  ;;  %v2347_v7 = vmin.f32 %v7008_v0, %v6045_v26  ;;  %v7018_v0 = vld [vmem:[#allocation102_spill] sm:$0xff]  ;;  %v7023_v34 = vld [vmem:[#allocation72_spill] sm:$0xff]  ;;  %v7036_v21 = vld [vmem:[#allocation83_spill] sm:$0xff] }
 0x210   :  { %v2042_v19 = vsel %vm1756_vm0, %v7004_v41, %v7003_v51  ;;  %v2376_v48 = vmin.f32 %v7009_v2, %v2344_v47  ;;  %v7010_v63 = vmov %v7004_v41  ;;  %v7012_v51 = vrot.slane %v6920_v24, 1  ;;  %v7046_v1 = vld [vmem:[#allocation103_spill] sm:$0xff] }
 0x211   :  { %v2026_v40 = vsel %vm1756_vm0, %v7006_v17, %v7005_v50  ;;  %v7011_v23 = vmov %v7005_v50  ;;  %v2043_v17 = vsel %vm1756_vm0, %v2011_v15, %v1987_v33  ;;  %v6201_v10 = vsel %vm7016_vm1, 1.0, %v2042_v19  ;;  %v7022_v19 = vld [vmem:[#allocation71_spill] sm:$0xff] }
 0x212   :  { %v2018_v42 = vsel %vm1756_vm0, %v7011_v23, %v7010_v63  ;;  %v6189_v41 = vsel %vm1756_vm0, %v7012_v51, %v2003_v27  ;;  %v7014_v50 = vmov %v7012_v51  ;;  %7017 = vst [vmem:[#allocation45_spill] sm:$0xff] %v6201_v10  ;;  %v7019_v63 = vld [vmem:[#allocation108_spill] sm:$0xff]  ;;  %v6207_v51 = vsel %vm1756_vm0, %v2003_v27, %v2011_v15 }
 0x213   :  { %7013 = vst [vmem:[#allocation55_spill] sm:$0xff] %v6189_v41  ;;  %v6195_v47 = vsel %vm1756_vm0, %v1987_v33, %v7014_v50  ;;  %v2097_v23 = vmin.f32 %v7019_v63, %v7018_v0  ;;  %7020 = vst [vmem:[#allocation50_spill] sm:$0xff] %v6207_v51  ;;  %v6213_v50 = vsel %vm1756_vm0, %v1988_v46, %v6591_v18  ;;  %v7024_v0 = vld [vmem:[#allocation33_spill] sm:$0xff]  ;;  %v7026_v15 = vrot.slane %v5842_v28, 1  ;;  %v7048_v51 = vld [vmem:[#allocation87_spill] sm:$0xff] }
 0x214   :  { %7015 = vst [vmem:[#allocation57_spill] sm:$0xff] %v6195_v47  ;;  %7021 = vst [vmem:[#allocation51_spill] sm:$0xff] %v6213_v50  ;;  %v2098_v58 = vmin.f32 %v1938_v9, %v2026_v40  ;;  %v2348_v33 = vmin.f32 %v7009_v2, %v6048_v3  ;;  %v2349_v6 = vmin.f32 %v7022_v19, %v6051_v13  ;;  %v6230_v9 = vsel %vm7028_vm4, 1.0, %v2043_v17  ;;  %v7031_v19 = vld [vmem:[#allocation49_spill] sm:$0xff]  ;;  %v7034_v2 = vld [vmem:[#allocation90_spill] sm:$0xff] }
 0x215   :  { %v2378_v43 = vmin.f32 %v7023_v34, %v2346_v53  ;;  %v2379_v63 = vmin.f32 %v7024_v0, %v2347_v7  ;;  %v2408_v27 = vmin.f32 %v7025_v11, %v2376_v48  ;;  %v6226_v59 = vsel %vm1756_vm0, %v7026_v15, %v1988_v46  ;;  %7029 = vst [vmem:[#allocation53_spill] sm:$0xff] %v6230_v9  ;;  %v7030_v11 = vld [vmem:[#allocation46_spill] sm:$0xff]  ;;  %v7033_v15 = vld [vmem:[#allocation73_spill] sm:$0xff] }
 0x216   :  { %7027 = vst [vmem:[#allocation56_spill] sm:$0xff] %v6226_v59  ;;  %v2099_v40 = vmin.f32 %v1930_v8, %v2018_v42  ;;  %v6237_v7 = vmin.f32 %v6991_v60, %v2097_v23  ;;  %v2301_v48 = vrot.slane %v7030_v11, 7  ;;  %v2304_v18 = vrot.slane %v7031_v19, 7  ;;  %v7035_v23 = vld [vmem:[#allocation96_spill] sm:$0xff]  ;;  %v7041_v47 = vld [vmem:[#allocation85_spill] sm:$0xff] }
 0x217   :  { %v6242_v46 = vmin.f32 %v6986_v31, %v2098_v58  ;;  %v2350_v17 = vmin.f32 %v7023_v34, %v6054_v20  ;;  %v2351_v8 = vmin.f32 %v7024_v0, %v6057_v61  ;;  %v2380_v42 = vmin.f32 %v6039_v32, %v2348_v33  ;;  %v7038_v58 = vld [vmem:[#allocation81_spill] sm:$0xff]  ;;  %v7040_v34 = vld [vmem:[#allocation82_spill] sm:$0xff] }
 0x218   :  { %v2381_v53 = vmin.f32 %v7033_v15, %v2349_v6  ;;  %v2410_v60 = vmin.f32 %v7034_v2, %v2378_v43  ;;  %v2411_v59 = vmin.f32 %v7035_v23, %v2379_v63  ;;  %v2440_v50 = vmin.f32 %v7036_v21, %v2408_v27  ;;  %v7043_v21 = vld [vmem:[#allocation47_spill] sm:$0xff]  ;;  %v7049_v41 = vld [vmem:[#allocation93_spill] sm:$0xff] }
 0x219   :  { %7032 = vst [vmem:[#allocation15_spill] sm:$0xff] %v6242_v46  ;;  %v6254_v62 = vmin.f32 %v6981_v45, %v2099_v40  ;;  %v7039_v9 = vmin.f32 %v7038_v58, %v6979_v56  ;;  %v7042_v0 = vmin.f32 %v7041_v47, %v5799_v12  ;;  %v2313_v43 = vrot.slane %v7030_v11, 1  ;;  %v7044_v40 = vld [vmem:[#allocation89_spill] sm:$0xff]  ;;  %v7045_v58 = vld [vmem:[#allocation94_spill] sm:$0xff]  ;;  %v7054_v46 = vld [vmem:[#allocation44_spill] sm:$0xff] }
 0x21a   :  { %v2308_v6 = vsel %vm1655_vm15, %v2304_v18, %v2301_v48  ;;  %v2314_v63 = vrot.slane %v7043_v21, 1  ;;  %v2352_v27 = vmin.f32 %v6039_v32, %v6060_v16  ;;  %v2579_v2 = vadd.f32 %v7044_v40, %v2440_v50  ;;  %v7050_v50 = vld [vmem:[#allocation48_spill] sm:$0xff] }
 0x21b   :  { %7037 = vst [vmem:[#allocation54_spill] sm:$0xff] %v6254_v62  ;;  %v2256_v44 = vmin.f32 %v7040_v34, %v7039_v9  ;;  %v6264_v33 = vmin.f32 %v6981_v45, %v7042_v0  ;;  %v2353_v9 = vmin.f32 %v7033_v15, %v6063_v49  ;;  %v2382_v47 = vmin.f32 %v6042_v35, %v2350_v17 }
 0x21c   :  { %v2383_v23 = vmin.f32 %v6045_v26, %v2351_v8  ;;  %v2412_v0 = vmin.f32 %v7045_v58, %v2380_v42  ;;  %v2413_v10 = vmin.f32 %v7046_v1, %v2381_v53  ;;  %v2442_v5 = vmin.f32 %v7047_v39, %v2410_v60  ;;  %v7051_v42 = vld [vmem:[#allocation100_spill] sm:$0xff] }
 0x21d   :  { %v2443_v54 = vmin.f32 %v7048_v51, %v2411_v59  ;;  %v2580_v62 = vadd.f32 %v2579_v2, %v7049_v41  ;;  %v2302_v32 = vrot.slane %v7043_v21, 7  ;;  %v2303_v40 = vrot.slane %v7050_v50, 7  ;;  %v7052_v2 = vld [vmem:[#allocation109_spill] sm:$0xff] }
 0x21e   :  { %v2315_v15 = vrot.slane %v7050_v50, 1  ;;  %v2316_v17 = vrot.slane %v7031_v19, 1  ;;  %v2309_v8 = vsel %vm1619_vm6, 1.0, %v2308_v6  ;;  %v2319_v1 = vsel %vm1756_vm0, %v2313_v43, %v2314_v63  ;;  %v7053_v19 = vld [vmem:[#allocation88_spill] sm:$0xff] }
 0x21f   :  { %v2354_v39 = vmin.f32 %v6042_v35, %v6068_v52  ;;  %v2581_v59 = vadd.f32 %v2580_v62, %v2442_v5  ;;  %v2355_v41 = vmin.f32 %v6045_v26, %v6071_v22  ;;  %v2384_v51 = vmin.f32 %v6048_v3, %v2352_v27 }
 0x220   :  { %v2385_v53 = vmin.f32 %v6051_v13, %v2353_v9  ;;  %v2414_v60 = vmin.f32 %v7051_v42, %v2382_v47  ;;  %v2415_v58 = vmin.f32 %v7052_v2, %v2383_v23  ;;  %v2444_v6 = vmin.f32 %v7053_v19, %v2412_v0  ;;  %v7055_v23 = vld [vmem:[#allocation62_spill] sm:$0xff]  ;;  %v7061_v42 = vld [vmem:[#allocation99_spill] sm:$0xff] }
 0x221   :  { %v2445_v55 = vmin.f32 %v7054_v46, %v2413_v10  ;;  %v2582_v50 = vadd.f32 %v2581_v59, %v2443_v54  ;;  %v2306_v35 = vsel %vm1655_vm15, %v2302_v32, %v2303_v40  ;;  %v2307_v5 = vsel %vm1655_vm15, %v2301_v48, %v2302_v32  ;;  %v7056_v32 = vld [vmem:[#allocation98_spill] sm:$0xff] }
 0x222   :  { %v2317_v26 = vsel %vm1756_vm0, %v2315_v15, %v2316_v17  ;;  %v2318_v62 = vsel %vm1756_vm0, %v2314_v63, %v2315_v15  ;;  %v2320_v27 = vsel %vm1756_vm0, %v2316_v17, %v2313_v43  ;;  %v2325_v9 = vmin.f32 %v2309_v8, %v2319_v1  ;;  %v7057_v15 = vld [vmem:[#allocation95_spill] sm:$0xff] }
 0x223   :  { %v2356_v10 = vmin.f32 %v6048_v3, %v6076_v14  ;;  %v2583_v54 = vadd.f32 %v2582_v50, %v2444_v6  ;;  %v2357_v19 = vmin.f32 %v6051_v13, %v6079_v4  ;;  %v2386_v46 = vmin.f32 %v6054_v20, %v2354_v39 }
 0x224   :  { %v2387_v48 = vmin.f32 %v6057_v61, %v2355_v41  ;;  %v2416_v47 = vmin.f32 %v2256_v44, %v2384_v51  ;;  %v2417_v0 = vmin.f32 %v7055_v23, %v2385_v53  ;;  %v2446_v63 = vmin.f32 %v7056_v32, %v2414_v60  ;;  %v7060_v53 = vld [vmem:[#allocation65_spill] sm:$0xff]  ;;  %v7068_v23 = vld [vmem:[#allocation54_spill] sm:$0xff]  ;;  %v7069_v32 = vld [vmem:[#allocation55_spill] sm:$0xff] }
 0x225   :  { %v2447_v59 = vmin.f32 %v7057_v15, %v2415_v58  ;;  %v2584_v43 = vadd.f32 %v2583_v54, %v2445_v55  ;;  %v7058_v17 = vmin.f32 %v7040_v34, %v5793_v38  ;;  %v2305_v13 = vsel %vm1655_vm15, %v2303_v40, %v2304_v18  ;;  %vm7090_vm15 = vmmov %vm7016_vm1 }
 0x226   :  { %v2324_v50 = vsel %vm7059_vm5, 1.0, %v2320_v27  ;;  %v2326_v8 = vmin.f32 %v2307_v5, %v2318_v62  ;;  %v2327_v44 = vmin.f32 %v2306_v35, %v2317_v26  ;;  %v2329_v1 = vmin.f32 %v7030_v11, %v2325_v9  ;;  %v7064_v26 = vld [vmem:[#allocation48_spill] sm:$0xff] }
 0x227   :  { %v2260_v3 = vmin.f32 %v6979_v56, %v7058_v17  ;;  %v2358_v39 = vmin.f32 %v6054_v20, %v6084_v30  ;;  %v2585_v41 = vadd.f32 %v2584_v43, %v2446_v63  ;;  %v2359_v55 = vmin.f32 %v6057_v61, %v6087_v25  ;;  %v7070_v63 = vld [vmem:[#allocation64_spill] sm:$0xff]  ;;  %v7073_v17 = vld [vmem:[#allocation61_spill] sm:$0xff] }
 0x228   :  { %v2388_v34 = vmin.f32 %v6060_v16, %v2356_v10  ;;  %v2389_v51 = vmin.f32 %v6063_v49, %v2357_v19  ;;  %v2418_v18 = vmin.f32 %v7060_v53, %v2386_v46  ;;  %v2419_v40 = vmin.f32 %v6264_v33, %v2387_v48  ;;  %v7066_v46 = vld [vmem:[#allocation63_spill] sm:$0xff] }
 0x229   :  { %v2448_v60 = vmin.f32 %v7061_v42, %v2416_v47  ;;  %v2449_v2 = vmin.f32 %v6237_v7, %v2417_v0  ;;  %v2586_v11 = vadd.f32 %v2585_v41, %v2447_v59  ;;  %v2232_v20 = vmin.f32 %v6979_v56, %v5842_v28  ;;  %v7065_v7 = vld [vmem:[#allocation68_spill] sm:$0xff]  ;;  %v7067_v48 = vld [vmem:[#allocation15_spill] sm:$0xff]  ;;  %v7071_v59 = vld [vmem:[#allocation50_spill] sm:$0xff] }
 0x22a   :  { %v7062_v58 = vmin.f32 %v6986_v31, %v5808_v57  ;;  %v7063_v6 = vmin.f32 %v6981_v45, %v5827_v37  ;;  %v2328_v5 = vmin.f32 %v2305_v13, %v2324_v50  ;;  %v2330_v33 = vmin.f32 %v7043_v21, %v2326_v8  ;;  %v7076_v8 = vld [vmem:[#allocation35_spill] sm:$0xff] }
 0x22b   :  { %v2331_v62 = vmin.f32 %v7064_v26, %v2327_v44  ;;  %v2360_v27 = vmin.f32 %v6060_v16, %v7065_v7  ;;  %v2587_v9 = vadd.f32 %v2586_v11, %v2448_v60  ;;  %v2361_v10 = vmin.f32 %v6063_v49, %v2329_v1  ;;  %v7072_v16 = vld [vmem:[#allocation16_spill] sm:$0xff]  ;;  %v7074_v49 = vld [vmem:[#allocation45_spill] sm:$0xff]  ;;  %v7079_v1 = vld [vmem:[#allocation111_spill] sm:$0xff] }
 0x22c   :  { %v2262_v61 = vmin.f32 %v6920_v24, %v7062_v58  ;;  %v2263_v35 = vmin.f32 %v5799_v12, %v7063_v6  ;;  %v2390_v31 = vmin.f32 %v6068_v52, %v2358_v39  ;;  %v2391_v54 = vmin.f32 %v6071_v22, %v2359_v55  ;;  %v7080_v55 = vld [vmem:[#allocation49_spill] sm:$0xff]  ;;  %v7087_v26 = vld [vmem:[#allocation51_spill] sm:$0xff] }
 0x22d   :  { %v2420_v19 = vmin.f32 %v2260_v3, %v2388_v34  ;;  %v2421_v45 = vmin.f32 %v7066_v46, %v2389_v51  ;;  %v2450_v47 = vmin.f32 %v7067_v48, %v2418_v18  ;;  %v2451_v0 = vmin.f32 %v7068_v23, %v2419_v40  ;;  %v7077_v3 = vld [vmem:[#allocation57_spill] sm:$0xff]  ;;  %v7091_v23 = vld [vmem:[#allocation20_spill] sm:$0xff] }
 0x22e   :  { %v2588_v21 = vadd.f32 %v2587_v9, %v2449_v2  ;;  %v2102_v15 = vmin.f32 %v7070_v63, %v7069_v32  ;;  %v2103_v43 = vmin.f32 %v7072_v16, %v7071_v59  ;;  %v7075_v13 = vmin.f32 %v7073_v17, %v7074_v49  ;;  %v7094_v16 = vld [vmem:[#allocation60_spill] sm:$0xff] }
 0x22f   :  { %v7078_v44 = vmin.f32 %v7076_v8, %v7077_v3  ;;  %v2264_v41 = vmin.f32 %v5793_v38, %v2232_v20  ;;  %v2332_v34 = vmin.f32 %v7080_v55, %v2328_v5  ;;  %v2362_v51 = vmin.f32 %v6068_v52, %v2330_v33  ;;  %v7098_v8 = vld [vmem:[#allocation19_spill] sm:$0xff] }
 0x230   :  { %v2132_v50 = vmin.f32 %v6979_v56, %v7075_v13  ;;  %v2589_v53 = vadd.f32 %v2588_v21, %v2450_v47  ;;  %v2363_v18 = vmin.f32 %v6071_v22, %v2331_v62  ;;  %v2392_v40 = vmin.f32 %v6076_v14, %v2360_v27  ;;  %v7088_v62 = vld [vmem:[#allocation66_spill] sm:$0xff] }
 0x231   :  { %v2133_v39 = vmin.f32 %v7079_v1, %v7078_v44  ;;  %v2393_v42 = vmin.f32 %v6079_v4, %v2361_v10  ;;  %v2422_v60 = vmin.f32 %v2262_v61, %v2390_v31  ;;  %v2423_v56 = vmin.f32 %v2263_v35, %v2391_v54  ;;  %v7085_v4 = vld [vmem:[#allocation53_spill] sm:$0xff]  ;;  %v7097_v13 = vld [vmem:[#allocation70_spill] sm:$0xff] }
 0x232   :  { %v2452_v2 = vmin.f32 %v2132_v50, %v2420_v19  ;;  %v2590_v58 = vadd.f32 %v2589_v53, %v2451_v0  ;;  %v7081_v6 = vrot.slane %v5842_v28, 1  ;;  %v7082_v20 = vrot.slane %v5827_v37, 1  ;;  %v7086_v61 = vld [vmem:[#allocation69_spill] sm:$0xff]  ;;  %v7089_v19 = vld [vmem:[#allocation56_spill] sm:$0xff]  ;;  %v7099_v44 = vld [vmem:[#allocation18_spill] sm:$0xff] }
 0x233   :  { %v2453_v11 = vmin.f32 %v2133_v39, %v2421_v45  ;;  %v7084_v22 = vrot.slane %v5808_v57, 1  ;;  %v2104_v35 = vmin.f32 %v7086_v61, %v7085_v4  ;;  %v2105_v27 = vmin.f32 %v7088_v62, %v7087_v26 }
 0x234   :  { %v2020_v5 = vsel %vm1756_vm0, %v7082_v20, %v7081_v6  ;;  %v7083_v52 = vmov %v7082_v20  ;;  %v2134_v9 = vmin.f32 %v6920_v24, %v2102_v15  ;;  %v2135_v10 = vmin.f32 %v5799_v12, %v2103_v43  ;;  %v7092_v24 = vld [vmem:[#allocation43_spill] sm:$0xff]  ;;  %v7093_v12 = vld [vmem:[#allocation17_spill] sm:$0xff] }
 0x235   :  { %v2028_v33 = vsel %vm1756_vm0, %v7084_v22, %v7083_v52  ;;  %v2364_v31 = vmin.f32 %v6076_v14, %v2332_v34  ;;  %v2591_v54 = vadd.f32 %v2590_v58, %v2452_v2  ;;  %v2076_v46 = vsel %vm7090_vm15, 1.0, %v7089_v19  ;;  %v2528_v58 = vpop.xlane.xlu0 %2527 }
 0x236   :  { %v2394_v45 = vmin.f32 %v6084_v30, %v2362_v51  ;;  %v2395_v48 = vmin.f32 %v6087_v25, %v2363_v18  ;;  %v2424_v47 = vmin.f32 %v2264_v41, %v2392_v40  ;;  %v2425_v0 = vmin.f32 %v7091_v23, %v2393_v42 }
 0x237   :  { %v2454_v21 = vmin.f32 %v2134_v9, %v2422_v60  ;;  %v2455_v32 = vmin.f32 %v2135_v10, %v2423_v56  ;;  %v2592_v63 = vadd.f32 %v2591_v54, %v2453_v11  ;;  %v2106_v15 = vmin.f32 %v7092_v24, %v2028_v33 }
 0x238   :  { %v2107_v59 = vmin.f32 %v7093_v12, %v2020_v5  ;;  %v2136_v14 = vmin.f32 %v5793_v38, %v2104_v35  ;;  %v2137_v43 = vmin.f32 %v7094_v16, %v2105_v27  ;;  %v7096_v17 = vmin.f32 %v5793_v38, %v7095_v29 }
 0x239   :  { %v2396_v25 = vmin.f32 %v7065_v7, %v2364_v31  ;;  %v2593_v49 = vadd.f32 %v2592_v63, %v2454_v21  ;;  %v2108_v50 = vmin.f32 %v7097_v13, %v2076_v46  ;;  %v2426_v3 = vmin.f32 %v7098_v8, %v2394_v45 }
 0x23a   :  { %v2268_v30 = vmin.f32 %v5842_v28, %v7096_v17  ;;  %v2427_v1 = vmin.f32 %v7099_v44, %v2395_v48  ;;  %v2456_v39 = vmin.f32 %v2136_v14, %v2424_v47  ;;  %v2457_v41 = vmin.f32 %v2137_v43, %v2425_v0 }
 0x23b   :  { %v2594_v55 = vadd.f32 %v2593_v49, %v2455_v32  ;;  %v2138_v34 = vmin.f32 %v5808_v57, %v2106_v15  ;;  %v2139_v51 = vmin.f32 %v5827_v37, %v2107_v59  ;;  %v2140_v18 = vmin.f32 %v5842_v28, %v2108_v50 }
 0x23c   :  { %v2428_v53 = vmin.f32 %v2268_v30, %v2396_v25  ;;  %v2529_v6 = vrot.slane %v2528_v58, 4  ;;  %vm2611_vm0 = vcmp.eq.s32.totalorder %v6983_v36, 2  ;;  %vm2610_vm7 = vcmp.eq.s32.totalorder %v6983_v36, 1 }
 0x23d   :  { %v2595_v38 = vadd.f32 %v2594_v55, %v2456_v39  ;;  %v2458_v40 = vmin.f32 %v2138_v34, %v2426_v3  ;;  %v2459_v7 = vmin.f32 %v2139_v51, %v2427_v1 }
 0x23e   :  { %v2460_v60 = vmin.f32 %v2140_v18, %v2428_v53  ;;  %v2530_v20 = vadd.f32 %v2529_v6, %v2528_v58 }
 0x23f   :  { %v2596_v42 = vadd.f32 %v2595_v38, %v2457_v41 }
 0x240   :  { %v2531_v5 = vrot.slane %v2530_v20, 2 }
 0x241   :  { %v2597_v56 = vadd.f32 %v2596_v42, %v2458_v40 }
 0x242   :  { %v2532_v22 = vadd.f32 %v2531_v5, %v2530_v20 }
 0x243   :  { %v2598_v2 = vadd.f32 %v2597_v56, %v2459_v7 }
 0x244   :  { %v2533_v4 = vrot.slane %v2532_v22, 1 }
 0x245   :  { %v2599_v11 = vadd.f32 %v2598_v2, %v2460_v60 }
 0x246   :  { %v2534_v35 = vadd.f32 %v2533_v4, %v2532_v22 }
 0x247   :  { %2600 = vadd.xlane.f32.xlu0 %v2599_v11 }
 0x274   :  { %v1174_v52 = vpop.xlane.xlu1 %1173 }
 0x275   :  { %v1175_v57 = vrot.slane %v1174_v52, 4 }
 0x277   :  { %v1176_v37 = vadd.f32 %v1175_v57, %v1174_v52 }
 0x279   :  { %v1177_v33 = vrot.slane %v1176_v37, 2 }
 0x27b   :  { %v1178_v61 = vadd.f32 %v1177_v33, %v1176_v37 }
 0x27d   :  { %v1179_v28 = vrot.slane %v1178_v61, 1 }
 0x27f   :  { %v1180_v26 = vadd.f32 %v1179_v28, %v1178_v61 }
 0x281   :  { %2685 = vpush %v1180_v26 }
 0x282   :  { %2687 = vpush %v2534_v35 }
 0x2b2   :  { %s2686_s11 = spop %2685 }
 0x2b3   :  { %s2688_s12 = spop %2687  ;;  %v2616_v47 = vstv %s2686_s11 }
 0x2b4   :  { %v2614_v45 = vstv %s2688_s12 }
 0x2d0   :  { %v2601_v62 = vpop.xlane.xlu0 %2600 }
 0x2d1   :  { %v2602_v27 = vrot.slane %v2601_v62, 4 }
 0x2d3   :  { %v2603_v9 = vadd.f32 %v2602_v27, %v2601_v62 }
 0x2d5   :  { %v2604_v10 = vrot.slane %v2603_v9, 2 }
 0x2d7   :  { %v2605_v31 = vadd.f32 %v2604_v10, %v2603_v9 }
 0x2d9   :  { %v2606_v54 = vrot.slane %v2605_v31, 1 }
 0x2db   :  { %v2607_v19 = vadd.f32 %v2606_v54, %v2605_v31 }
 0x2dd   :  { %2689 = vpush %v2607_v19 }
 0x30e   :  { %s2690_s13 = spop %2689 }
 0x30f   :  { %v2612_v46 = vstv %s2690_s13 }
 0x310   :  { %v2613_v48 = vsel %vm2611_vm0, %v2612_v46, 0.0 }
 0x311   :  { %v2615_v23 = vsel %vm2610_vm7, %v2614_v45, %v2613_v48 }
 0x312   :  { %v2617_v0 = vsel %vm1619_vm6, %v2616_v47, %v2615_v23 }
 0x313   :  { %2618 = vst [vmem:[#allocation10] sm:$0xff] %v2617_v0 }
 0x314   :  { %3266 = shalt.err (!%p3263_p10)
}
 0x315   :  { %2628 = dma.vmem_to_hbm [thread:$0]  %s2626_s15, 128, %s6427_s4, [#allocation4]  }
 0x316   :  { %3281 = dma.done.wait [#allocation4], 128  }
 0x317   :  { %3282 = vsyncadd [#allocation4], 4294967168 }
 0x318   :  { %2632 = vsyncpa [#allocation3], 1 }
 0x319   :  { %2633 = vsyncpa [#allocation6], 1 }
 0x31a   :  { %2634 = vsyncpa [#allocation9], 1 }
 0x31b   :  { %2635 = vsyncpa [#allocation4], 1 }

</bundles_post_ra>
